<compile_context>
chip_gen: v7x
topology: tpu7x:2x2x1
jax: 0.10.0
libtpu: 0.0.40
codegen_flags: <defaults>
</compile_context>

<pallas_src>
import numpy as np

import jax
import jax.numpy as jnp
from jax.experimental import pallas as pl
from jax.experimental.pallas import tpu as pltpu

_K = 5
_WPAD1 = 1184   # >= 1024 + 4*32 + 4 (max conv1 im2col shift)
_WPAD3 = 256    # == 196 + 4*14 + 4 (max conv3 im2col shift)


# ----------------------------------------------------------------------------
# Fused kernel: one image per grid step, everything resident in VMEM.
# ----------------------------------------------------------------------------
def _lenet_kernel(x_ref, w1_ref, b1_ref, p1_ref, w3_ref, b3_ref, p2_ref,
                  w5_ref, b5_ref, w6_ref, b6_ref, w7_ref, b7_ref,
                  out_ref,
                  xs, p1s, a1s, p3s, a3s, c5s):
    f32, bf16 = jnp.float32, jnp.bfloat16

    # ---- conv1 (1 -> 6, 5x5, valid) on the 32x32 grid ----------------------
    # bf16 copy of the input row with a ZERO tail: im2col columns that run
    # past the image stay finite and are dropped by the pool1 matrix.
    xs[:, :1024] = x_ref[0].astype(bf16)
    xs[:, 1024:] = jnp.zeros((1, _WPAD1 - 1024), bf16)
    # im2col: 25 shifted views as plain offset loads -> rows of a VMEM buffer.
    for k in range(_K * _K):
        dy, dx = divmod(k, _K)
        s = dy * 32 + dx
        p1s[k:k + 1, :] = xs[:, s:s + 1024]
    y1 = jnp.dot(w1_ref[...], p1s[...], preferred_element_type=f32)
    y1 = jax.nn.sigmoid(y1 + b1_ref[...])                       # (6, 1024)

    # ---- pool1: valid-window select + 2x2 average as one per-image matmul --
    a1 = jnp.dot(y1.astype(bf16), p1_ref[...],
                 preferred_element_type=f32)                    # (6, 196)

    # ---- conv3 (6 -> 16, 5x5, valid) on the 14x14 grid ---------------------
    a1s[:, :196] = a1.astype(bf16)
    a1s[:, 196:] = jnp.zeros((6, _WPAD3 - 196), bf16)
    for k in range(_K * _K):
        dy, dx = divmod(k, _K)
        s = dy * 14 + dx
        p3s[k * 6:(k + 1) * 6, :] = a1s[:, s:s + 196]
    y3 = jnp.dot(w3_ref[...], p3s[...], preferred_element_type=f32)
    y3 = jax.nn.sigmoid(y3 + b3_ref[...])                       # (16, 196)

    # ---- pool2 --------------------------------------------------------------
    a3 = jnp.dot(y3.astype(bf16), p2_ref[...],
                 preferred_element_type=f32)                    # (16, 25)

    # ---- conv5 (16 -> 120, 5x5 kernel on a 5x5 grid => one dense dot) -------
    # Only output position (0,0) exists; skip im2col and pack the pooled
    # activation into a (400, 1) column in (ky, kx, c) order (matches the
    # column order of the repacked w5).
    a3s[...] = a3.astype(bf16)
    for s in range(_K * _K):
        c5s[s * 16:(s + 1) * 16, :] = a3s[:, s:s + 1]
    a5 = jnp.dot(w5_ref[...], c5s[...], preferred_element_type=f32)
    a5 = jax.nn.sigmoid(a5 + b5_ref[...])                       # (120, 1)

    # ---- f6, f7 (no activation after f6/f7, per the PyTorch module) ---------
    h6 = jnp.dot(w6_ref[...], a5.astype(bf16),
                 preferred_element_type=f32) + b6_ref[...]      # (84, 1)
    y7 = jnp.dot(w7_ref[...], h6.astype(bf16),
                 preferred_element_type=f32) + b7_ref[...]      # (10, 1)
    out_ref[0] = y7


# ----------------------------------------------------------------------------
# Per-image pooling matrix (built once at prep time with numpy).
# Selects the valid conv outputs AND applies the 2x2 average pool.
# ----------------------------------------------------------------------------
def _pool_matrix(grid_h, grid_w, out_h, out_w):
    p = np.zeros((grid_h * grid_w, out_h * out_w), np.float32)
    for u in range(out_h):
        for v in range(out_w):
            for dh in range(2):
                for dw in range(2):
                    p[(2 * u + dh) * grid_w + (2 * v + dw), u * out_w + v] = 0.25
    return p


# ----------------------------------------------------------------------------
# Forward pass (single pallas_call, batch grid)
# ----------------------------------------------------------------------------
def lenet_forward(params, x):
    n = x.shape[0]
    x3 = x.astype(jnp.float32).reshape(n, 1, 32 * 32)

    weights = (params["w1"], params["b1"], params["p1"],
               params["w3"], params["b3"], params["p2"],
               params["w5"], params["b5"],
               params["w6"], params["b6"],
               params["w7"], params["b7"])

    def rep(a):  # weight / constant: full-array block, fetched once
        return pl.BlockSpec(a.shape, lambda b: (0, 0))

    out = pl.pallas_call(
        _lenet_kernel,
        out_shape=jax.ShapeDtypeStruct((n, 10, 1), jnp.float32),
        grid=(n,),
        in_specs=[pl.BlockSpec((1, 1, 1024), lambda b: (b, 0, 0))]
                 + [rep(a) for a in weights],
        out_specs=pl.BlockSpec((1, 10, 1), lambda b: (b, 0, 0)),
        scratch_shapes=[
            pltpu.VMEM((1, _WPAD1), jnp.bfloat16),   # padded bf16 input row
            pltpu.VMEM((25, 1024), jnp.bfloat16),    # conv1 im2col patches
            pltpu.VMEM((6, _WPAD3), jnp.bfloat16),   # padded pooled act (14x14)
            pltpu.VMEM((150, 196), jnp.bfloat16),    # conv3 im2col patches
            pltpu.VMEM((16, 25), jnp.bfloat16),      # pooled act (5x5)
            pltpu.VMEM((400, 1), jnp.bfloat16),      # conv5 flattened input
        ],
        compiler_params=pltpu.CompilerParams(
            dimension_semantics=("parallel",)),
    )(x3, *weights)
    return out.reshape(n, 10)


# ----------------------------------------------------------------------------
# Parameters: torch-layout init + one-time repack into kernel layout
# ----------------------------------------------------------------------------
def init_lenet_params(key):
    """Torch-layout parameters with nn.Conv2d / nn.Linear uniform init bounds."""
    ks = jax.random.split(key, 10)

    def u(k, shape, fan_in):
        b = 1.0 / np.sqrt(fan_in)
        return jax.random.uniform(k, shape, jnp.float32, -b, b)

    return {
        "c1_w": u(ks[0], (6, 1, 5, 5), 25),     "c1_b": u(ks[1], (6,), 25),
        "c3_w": u(ks[2], (16, 6, 5, 5), 150),   "c3_b": u(ks[3], (16,), 150),
        "c5_w": u(ks[4], (120, 16, 5, 5), 400), "c5_b": u(ks[5], (120,), 400),
        "f6_w": u(ks[6], (84, 120), 120),       "f6_b": u(ks[7], (84,), 120),
        "f7_w": u(ks[8], (10, 84), 84),         "f7_b": u(ks[9], (10,), 84),
    }


def prepare_params(tp):
    """Repack once: conv weights -> (OutC, (ky,kx,c)) bf16, FC weights -> bf16,
    biases -> (out, 1) f32 columns, plus the per-image bf16 pool matrices."""
    def conv_w(w):
        o = w.shape[0]
        return jnp.transpose(w, (0, 2, 3, 1)).reshape(o, -1).astype(jnp.bfloat16)

    def col(b):
        return jnp.asarray(b, jnp.float32).reshape(-1, 1)

    return {
        "w1": conv_w(tp["c1_w"]), "b1": col(tp["c1_b"]),
        "w3": conv_w(tp["c3_w"]), "b3": col(tp["c3_b"]),
        "w5": conv_w(tp["c5_w"]), "b5": col(tp["c5_b"]),
        "w6": jnp.asarray(tp["f6_w"], jnp.bfloat16), "b6": col(tp["f6_b"]),
        "w7": jnp.asarray(tp["f7_w"], jnp.bfloat16), "b7": col(tp["f7_b"]),
        "p1": jnp.asarray(_pool_matrix(32, 32, 14, 14), jnp.bfloat16),
        "p2": jnp.asarray(_pool_matrix(14, 14, 5, 5), jnp.bfloat16),
    }


# ----------------------------------------------------------------------------
# Pure-JAX reference (bf16-tolerant sanity check)
# ----------------------------------------------------------------------------
def lenet_reference(tp, x):
    hi = jax.lax.Precision.HIGHEST

    def conv(z, w, b):
        y = jax.lax.conv_general_dilated(
            z, w, window_strides=(1, 1), padding="VALID",
            dimension_numbers=("NCHW", "OIHW", "NCHW"), precision=hi)
        return y + b.reshape(1, -1, 1, 1)

    def pool(z):
        n, c, h, w = z.shape
        return z.reshape(n, c, h // 2, 2, w // 2, 2).mean(axis=(3, 5))

    z = pool(jax.nn.sigmoid(conv(x, tp["c1_w"], tp["c1_b"])))
    z = pool(jax.nn.sigmoid(conv(z, tp["c3_w"], tp["c3_b"])))
    z = jax.nn.sigmoid(conv(z, tp["c5_w"], tp["c5_b"]))
    z = z.reshape(z.shape[0], -1)
    z = jnp.dot(z, tp["f6_w"].T, precision=hi) + tp["f6_b"]
    z = jnp.dot(z, tp["f7_w"].T, precision=hi) + tp["f7_b"]
    return z


if __name__ == "__main__":
    key = jax.random.PRNGKey(0)
    k_param, k_x = jax.random.split(key)
    torch_params = init_lenet_params(k_param)
    params = prepare_params(torch_params)

    # LeNet requires 32x32 single-channel input; small batch of 2.
    x = jax.random.normal(k_x, (2, 1, 32, 32), dtype=jnp.float32)

    out = jax.jit(lenet_forward)(params, x)
    out = jax.block_until_ready(out)
    assert out.shape == (2, 10) and out.dtype == jnp.float32

    # Sanity check vs. pure-JAX reference (loose tolerance for bf16 MXU math).
    ref = lenet_reference(torch_params, x)
    err = float(jnp.max(jnp.abs(out - ref)))
    assert err < 5e-2, f"mismatch vs reference: max abs err = {err}"

    print("KERNEL_OK")
</pallas_src>

<mosaic_0001>
module attributes {stable_mosaic.version = 11 : i64} {
  func.func @_lenet_kernel(%arg0: i32, %arg1: memref<1x1x1024xf32, #tpu.memory_space<vmem>>, %arg2: memref<6x25xbf16, #tpu.memory_space<vmem>>, %arg3: memref<6x1xf32, #tpu.memory_space<vmem>>, %arg4: memref<1024x196xbf16, #tpu.memory_space<vmem>>, %arg5: memref<16x150xbf16, #tpu.memory_space<vmem>>, %arg6: memref<16x1xf32, #tpu.memory_space<vmem>>, %arg7: memref<196x25xbf16, #tpu.memory_space<vmem>>, %arg8: memref<120x400xbf16, #tpu.memory_space<vmem>>, %arg9: memref<120x1xf32, #tpu.memory_space<vmem>>, %arg10: memref<84x120xbf16, #tpu.memory_space<vmem>>, %arg11: memref<84x1xf32, #tpu.memory_space<vmem>>, %arg12: memref<10x84xbf16, #tpu.memory_space<vmem>>, %arg13: memref<10x1xf32, #tpu.memory_space<vmem>>, %arg14: memref<1x10x1xf32, #tpu.memory_space<vmem>>, %arg15: memref<1x1184xbf16, #tpu.memory_space<vmem>>, %arg16: memref<25x1024xbf16, #tpu.memory_space<vmem>>, %arg17: memref<6x256xbf16, #tpu.memory_space<vmem>>, %arg18: memref<150x196xbf16, #tpu.memory_space<vmem>>, %arg19: memref<16x25xbf16, #tpu.memory_space<vmem>>, %arg20: memref<400x1xbf16, #tpu.memory_space<vmem>>) attributes {dimension_semantics = [#tpu.dimension_semantics<parallel>], iteration_bounds = array<i64: 2>, scalar_prefetch = 0 : i64, scratch_operands = 6 : i64, tpu.core_type = #tpu.core_type<tc>, window_params = [{transform_indices = @transform_0, window_bounds = array<i64: 1, 1, 1024>}, {pipeline_mode = #tpu.pipeline_mode<synchronous>, transform_indices = @transform_1, window_bounds = array<i64: 6, 25>}, {pipeline_mode = #tpu.pipeline_mode<synchronous>, transform_indices = @transform_2, window_bounds = array<i64: 6, 1>}, {pipeline_mode = #tpu.pipeline_mode<synchronous>, transform_indices = @transform_3, window_bounds = array<i64: 1024, 196>}, {pipeline_mode = #tpu.pipeline_mode<synchronous>, transform_indices = @transform_4, window_bounds = array<i64: 16, 150>}, {pipeline_mode = #tpu.pipeline_mode<synchronous>, transform_indices = @transform_5, window_bounds = array<i64: 16, 1>}, {pipeline_mode = #tpu.pipeline_mode<synchronous>, transform_indices = @transform_6, window_bounds = array<i64: 196, 25>}, {pipeline_mode = #tpu.pipeline_mode<synchronous>, transform_indices = @transform_7, window_bounds = array<i64: 120, 400>}, {pipeline_mode = #tpu.pipeline_mode<synchronous>, transform_indices = @transform_8, window_bounds = array<i64: 120, 1>}, {pipeline_mode = #tpu.pipeline_mode<synchronous>, transform_indices = @transform_9, window_bounds = array<i64: 84, 120>}, {pipeline_mode = #tpu.pipeline_mode<synchronous>, transform_indices = @transform_10, window_bounds = array<i64: 84, 1>}, {pipeline_mode = #tpu.pipeline_mode<synchronous>, transform_indices = @transform_11, window_bounds = array<i64: 10, 84>}, {pipeline_mode = #tpu.pipeline_mode<synchronous>, transform_indices = @transform_12, window_bounds = array<i64: 10, 1>}, {transform_indices = @transform_13, window_bounds = array<i64: 1, 10, 1>}]} {
    %c0 = arith.constant 0 : index
    %c0_0 = arith.constant 0 : index
    %c0_1 = arith.constant 0 : index
    %0 = vector.load %arg1[%c0, %c0_0, %c0_1] : memref<1x1x1024xf32, #tpu.memory_space<vmem>>, vector<1x1x1024xf32>
    %1 = vector.shape_cast %0 : vector<1x1x1024xf32> to vector<1x1024xf32>
    %2 = arith.truncf %1 : vector<1x1024xf32> to vector<1x1024xbf16>
    %c0_2 = arith.constant 0 : index
    %c0_3 = arith.constant 0 : index
    %3 = vector.load %arg15[%c0_2, %c0_3] : memref<1x1184xbf16, #tpu.memory_space<vmem>>, vector<1x1024xbf16>
    tpu.vector_store %arg15[%c0_2, %c0_3], %2 {strides = array<i32>} : memref<1x1184xbf16, #tpu.memory_space<vmem>>, vector<1x1024xbf16>,
    %cst = arith.constant 0.000000e+00 : bf16
    %4 = vector.broadcast %cst : bf16 to vector<1x160xbf16>
    %c0_4 = arith.constant 0 : index
    %c1024 = arith.constant 1024 : index
    %5 = vector.load %arg15[%c0_4, %c1024] : memref<1x1184xbf16, #tpu.memory_space<vmem>>, vector<1x160xbf16>
    tpu.vector_store %arg15[%c0_4, %c1024], %4 {strides = array<i32>} : memref<1x1184xbf16, #tpu.memory_space<vmem>>, vector<1x160xbf16>,
    %c0_5 = arith.constant 0 : index
    %c0_6 = arith.constant 0 : index
    %6 = vector.load %arg15[%c0_5, %c0_6] : memref<1x1184xbf16, #tpu.memory_space<vmem>>, vector<1x1024xbf16>
    %c0_7 = arith.constant 0 : index
    %c0_8 = arith.constant 0 : index
    %7 = vector.load %arg16[%c0_7, %c0_8] : memref<25x1024xbf16, #tpu.memory_space<vmem>>, vector<1x1024xbf16>
    tpu.vector_store %arg16[%c0_7, %c0_8], %6 {strides = array<i32>} : memref<25x1024xbf16, #tpu.memory_space<vmem>>, vector<1x1024xbf16>,
    %c0_9 = arith.constant 0 : index
    %c1 = arith.constant 1 : index
    %8 = vector.load %arg15[%c0_9, %c1] : memref<1x1184xbf16, #tpu.memory_space<vmem>>, vector<1x1024xbf16>
    %c1_10 = arith.constant 1 : index
    %c0_11 = arith.constant 0 : index
    %9 = vector.load %arg16[%c1_10, %c0_11] : memref<25x1024xbf16, #tpu.memory_space<vmem>>, vector<1x1024xbf16>
    tpu.vector_store %arg16[%c1_10, %c0_11], %8 {strides = array<i32>} : memref<25x1024xbf16, #tpu.memory_space<vmem>>, vector<1x1024xbf16>,
    %c0_12 = arith.constant 0 : index
    %c2 = arith.constant 2 : index
    %10 = vector.load %arg15[%c0_12, %c2] : memref<1x1184xbf16, #tpu.memory_space<vmem>>, vector<1x1024xbf16>
    %c2_13 = arith.constant 2 : index
    %c0_14 = arith.constant 0 : index
    %11 = vector.load %arg16[%c2_13, %c0_14] : memref<25x1024xbf16, #tpu.memory_space<vmem>>, vector<1x1024xbf16>
    tpu.vector_store %arg16[%c2_13, %c0_14], %10 {strides = array<i32>} : memref<25x1024xbf16, #tpu.memory_space<vmem>>, vector<1x1024xbf16>,
    %c0_15 = arith.constant 0 : index
    %c3 = arith.constant 3 : index
    %12 = vector.load %arg15[%c0_15, %c3] : memref<1x1184xbf16, #tpu.memory_space<vmem>>, vector<1x1024xbf16>
    %c3_16 = arith.constant 3 : index
    %c0_17 = arith.constant 0 : index
    %13 = vector.load %arg16[%c3_16, %c0_17] : memref<25x1024xbf16, #tpu.memory_space<vmem>>, vector<1x1024xbf16>
    tpu.vector_store %arg16[%c3_16, %c0_17], %12 {strides = array<i32>} : memref<25x1024xbf16, #tpu.memory_space<vmem>>, vector<1x1024xbf16>,
    %c0_18 = arith.constant 0 : index
    %c4 = arith.constant 4 : index
    %14 = vector.load %arg15[%c0_18, %c4] : memref<1x1184xbf16, #tpu.memory_space<vmem>>, vector<1x1024xbf16>
    %c4_19 = arith.constant 4 : index
    %c0_20 = arith.constant 0 : index
    %15 = vector.load %arg16[%c4_19, %c0_20] : memref<25x1024xbf16, #tpu.memory_space<vmem>>, vector<1x1024xbf16>
    tpu.vector_store %arg16[%c4_19, %c0_20], %14 {strides = array<i32>} : memref<25x1024xbf16, #tpu.memory_space<vmem>>, vector<1x1024xbf16>,
    %c0_21 = arith.constant 0 : index
    %c32 = arith.constant 32 : index
    %16 = vector.load %arg15[%c0_21, %c32] : memref<1x1184xbf16, #tpu.memory_space<vmem>>, vector<1x1024xbf16>
    %c5 = arith.constant 5 : index
    %c0_22 = arith.constant 0 : index
    %17 = vector.load %arg16[%c5, %c0_22] : memref<25x1024xbf16, #tpu.memory_space<vmem>>, vector<1x1024xbf16>
    tpu.vector_store %arg16[%c5, %c0_22], %16 {strides = array<i32>} : memref<25x1024xbf16, #tpu.memory_space<vmem>>, vector<1x1024xbf16>,
    %c0_23 = arith.constant 0 : index
    %c33 = arith.constant 33 : index
    %18 = vector.load %arg15[%c0_23, %c33] : memref<1x1184xbf16, #tpu.memory_space<vmem>>, vector<1x1024xbf16>
    %c6 = arith.constant 6 : index
    %c0_24 = arith.constant 0 : index
    %19 = vector.load %arg16[%c6, %c0_24] : memref<25x1024xbf16, #tpu.memory_space<vmem>>, vector<1x1024xbf16>
    tpu.vector_store %arg16[%c6, %c0_24], %18 {strides = array<i32>} : memref<25x1024xbf16, #tpu.memory_space<vmem>>, vector<1x1024xbf16>,
    %c0_25 = arith.constant 0 : index
    %c34 = arith.constant 34 : index
    %20 = vector.load %arg15[%c0_25, %c34] : memref<1x1184xbf16, #tpu.memory_space<vmem>>, vector<1x1024xbf16>
    %c7 = arith.constant 7 : index
    %c0_26 = arith.constant 0 : index
    %21 = vector.load %arg16[%c7, %c0_26] : memref<25x1024xbf16, #tpu.memory_space<vmem>>, vector<1x1024xbf16>
    tpu.vector_store %arg16[%c7, %c0_26], %20 {strides = array<i32>} : memref<25x1024xbf16, #tpu.memory_space<vmem>>, vector<1x1024xbf16>,
    %c0_27 = arith.constant 0 : index
    %c35 = arith.constant 35 : index
    %22 = vector.load %arg15[%c0_27, %c35] : memref<1x1184xbf16, #tpu.memory_space<vmem>>, vector<1x1024xbf16>
    %c8 = arith.constant 8 : index
    %c0_28 = arith.constant 0 : index
    %23 = vector.load %arg16[%c8, %c0_28] : memref<25x1024xbf16, #tpu.memory_space<vmem>>, vector<1x1024xbf16>
    tpu.vector_store %arg16[%c8, %c0_28], %22 {strides = array<i32>} : memref<25x1024xbf16, #tpu.memory_space<vmem>>, vector<1x1024xbf16>,
    %c0_29 = arith.constant 0 : index
    %c36 = arith.constant 36 : index
    %24 = vector.load %arg15[%c0_29, %c36] : memref<1x1184xbf16, #tpu.memory_space<vmem>>, vector<1x1024xbf16>
    %c9 = arith.constant 9 : index
    %c0_30 = arith.constant 0 : index
    %25 = vector.load %arg16[%c9, %c0_30] : memref<25x1024xbf16, #tpu.memory_space<vmem>>, vector<1x1024xbf16>
    tpu.vector_store %arg16[%c9, %c0_30], %24 {strides = array<i32>} : memref<25x1024xbf16, #tpu.memory_space<vmem>>, vector<1x1024xbf16>,
    %c0_31 = arith.constant 0 : index
    %c64 = arith.constant 64 : index
    %26 = vector.load %arg15[%c0_31, %c64] : memref<1x1184xbf16, #tpu.memory_space<vmem>>, vector<1x1024xbf16>
    %c10 = arith.constant 10 : index
    %c0_32 = arith.constant 0 : index
    %27 = vector.load %arg16[%c10, %c0_32] : memref<25x1024xbf16, #tpu.memory_space<vmem>>, vector<1x1024xbf16>
    tpu.vector_store %arg16[%c10, %c0_32], %26 {strides = array<i32>} : memref<25x1024xbf16, #tpu.memory_space<vmem>>, vector<1x1024xbf16>,
    %c0_33 = arith.constant 0 : index
    %c65 = arith.constant 65 : index
    %28 = vector.load %arg15[%c0_33, %c65] : memref<1x1184xbf16, #tpu.memory_space<vmem>>, vector<1x1024xbf16>
    %c11 = arith.constant 11 : index
    %c0_34 = arith.constant 0 : index
    %29 = vector.load %arg16[%c11, %c0_34] : memref<25x1024xbf16, #tpu.memory_space<vmem>>, vector<1x1024xbf16>
    tpu.vector_store %arg16[%c11, %c0_34], %28 {strides = array<i32>} : memref<25x1024xbf16, #tpu.memory_space<vmem>>, vector<1x1024xbf16>,
    %c0_35 = arith.constant 0 : index
    %c66 = arith.constant 66 : index
    %30 = vector.load %arg15[%c0_35, %c66] : memref<1x1184xbf16, #tpu.memory_space<vmem>>, vector<1x1024xbf16>
    %c12 = arith.constant 12 : index
    %c0_36 = arith.constant 0 : index
    %31 = vector.load %arg16[%c12, %c0_36] : memref<25x1024xbf16, #tpu.memory_space<vmem>>, vector<1x1024xbf16>
    tpu.vector_store %arg16[%c12, %c0_36], %30 {strides = array<i32>} : memref<25x1024xbf16, #tpu.memory_space<vmem>>, vector<1x1024xbf16>,
    %c0_37 = arith.constant 0 : index
    %c67 = arith.constant 67 : index
    %32 = vector.load %arg15[%c0_37, %c67] : memref<1x1184xbf16, #tpu.memory_space<vmem>>, vector<1x1024xbf16>
    %c13 = arith.constant 13 : index
    %c0_38 = arith.constant 0 : index
    %33 = vector.load %arg16[%c13, %c0_38] : memref<25x1024xbf16, #tpu.memory_space<vmem>>, vector<1x1024xbf16>
    tpu.vector_store %arg16[%c13, %c0_38], %32 {strides = array<i32>} : memref<25x1024xbf16, #tpu.memory_space<vmem>>, vector<1x1024xbf16>,
    %c0_39 = arith.constant 0 : index
    %c68 = arith.constant 68 : index
    %34 = vector.load %arg15[%c0_39, %c68] : memref<1x1184xbf16, #tpu.memory_space<vmem>>, vector<1x1024xbf16>
    %c14 = arith.constant 14 : index
    %c0_40 = arith.constant 0 : index
    %35 = vector.load %arg16[%c14, %c0_40] : memref<25x1024xbf16, #tpu.memory_space<vmem>>, vector<1x1024xbf16>
    tpu.vector_store %arg16[%c14, %c0_40], %34 {strides = array<i32>} : memref<25x1024xbf16, #tpu.memory_space<vmem>>, vector<1x1024xbf16>,
    %c0_41 = arith.constant 0 : index
    %c96 = arith.constant 96 : index
    %36 = vector.load %arg15[%c0_41, %c96] : memref<1x1184xbf16, #tpu.memory_space<vmem>>, vector<1x1024xbf16>
    %c15 = arith.constant 15 : index
    %c0_42 = arith.constant 0 : index
    %37 = vector.load %arg16[%c15, %c0_42] : memref<25x1024xbf16, #tpu.memory_space<vmem>>, vector<1x1024xbf16>
    tpu.vector_store %arg16[%c15, %c0_42], %36 {strides = array<i32>} : memref<25x1024xbf16, #tpu.memory_space<vmem>>, vector<1x1024xbf16>,
    %c0_43 = arith.constant 0 : index
    %c97 = arith.constant 97 : index
    %38 = vector.load %arg15[%c0_43, %c97] : memref<1x1184xbf16, #tpu.memory_space<vmem>>, vector<1x1024xbf16>
    %c16 = arith.constant 16 : index
    %c0_44 = arith.constant 0 : index
    %39 = vector.load %arg16[%c16, %c0_44] : memref<25x1024xbf16, #tpu.memory_space<vmem>>, vector<1x1024xbf16>
    tpu.vector_store %arg16[%c16, %c0_44], %38 {strides = array<i32>} : memref<25x1024xbf16, #tpu.memory_space<vmem>>, vector<1x1024xbf16>,
    %c0_45 = arith.constant 0 : index
    %c98 = arith.constant 98 : index
    %40 = vector.load %arg15[%c0_45, %c98] : memref<1x1184xbf16, #tpu.memory_space<vmem>>, vector<1x1024xbf16>
    %c17 = arith.constant 17 : index
    %c0_46 = arith.constant 0 : index
    %41 = vector.load %arg16[%c17, %c0_46] : memref<25x1024xbf16, #tpu.memory_space<vmem>>, vector<1x1024xbf16>
    tpu.vector_store %arg16[%c17, %c0_46], %40 {strides = array<i32>} : memref<25x1024xbf16, #tpu.memory_space<vmem>>, vector<1x1024xbf16>,
    %c0_47 = arith.constant 0 : index
    %c99 = arith.constant 99 : index
    %42 = vector.load %arg15[%c0_47, %c99] : memref<1x1184xbf16, #tpu.memory_space<vmem>>, vector<1x1024xbf16>
    %c18 = arith.constant 18 : index
    %c0_48 = arith.constant 0 : index
    %43 = vector.load %arg16[%c18, %c0_48] : memref<25x1024xbf16, #tpu.memory_space<vmem>>, vector<1x1024xbf16>
    tpu.vector_store %arg16[%c18, %c0_48], %42 {strides = array<i32>} : memref<25x1024xbf16, #tpu.memory_space<vmem>>, vector<1x1024xbf16>,
    %c0_49 = arith.constant 0 : index
    %c100 = arith.constant 100 : index
    %44 = vector.load %arg15[%c0_49, %c100] : memref<1x1184xbf16, #tpu.memory_space<vmem>>, vector<1x1024xbf16>
    %c19 = arith.constant 19 : index
    %c0_50 = arith.constant 0 : index
    %45 = vector.load %arg16[%c19, %c0_50] : memref<25x1024xbf16, #tpu.memory_space<vmem>>, vector<1x1024xbf16>
    tpu.vector_store %arg16[%c19, %c0_50], %44 {strides = array<i32>} : memref<25x1024xbf16, #tpu.memory_space<vmem>>, vector<1x1024xbf16>,
    %c0_51 = arith.constant 0 : index
    %c128 = arith.constant 128 : index
    %46 = vector.load %arg15[%c0_51, %c128] : memref<1x1184xbf16, #tpu.memory_space<vmem>>, vector<1x1024xbf16>
    %c20 = arith.constant 20 : index
    %c0_52 = arith.constant 0 : index
    %47 = vector.load %arg16[%c20, %c0_52] : memref<25x1024xbf16, #tpu.memory_space<vmem>>, vector<1x1024xbf16>
    tpu.vector_store %arg16[%c20, %c0_52], %46 {strides = array<i32>} : memref<25x1024xbf16, #tpu.memory_space<vmem>>, vector<1x1024xbf16>,
    %c0_53 = arith.constant 0 : index
    %c129 = arith.constant 129 : index
    %48 = vector.load %arg15[%c0_53, %c129] : memref<1x1184xbf16, #tpu.memory_space<vmem>>, vector<1x1024xbf16>
    %c21 = arith.constant 21 : index
    %c0_54 = arith.constant 0 : index
    %49 = vector.load %arg16[%c21, %c0_54] : memref<25x1024xbf16, #tpu.memory_space<vmem>>, vector<1x1024xbf16>
    tpu.vector_store %arg16[%c21, %c0_54], %48 {strides = array<i32>} : memref<25x1024xbf16, #tpu.memory_space<vmem>>, vector<1x1024xbf16>,
    %c0_55 = arith.constant 0 : index
    %c130 = arith.constant 130 : index
    %50 = vector.load %arg15[%c0_55, %c130] : memref<1x1184xbf16, #tpu.memory_space<vmem>>, vector<1x1024xbf16>
    %c22 = arith.constant 22 : index
    %c0_56 = arith.constant 0 : index
    %51 = vector.load %arg16[%c22, %c0_56] : memref<25x1024xbf16, #tpu.memory_space<vmem>>, vector<1x1024xbf16>
    tpu.vector_store %arg16[%c22, %c0_56], %50 {strides = array<i32>} : memref<25x1024xbf16, #tpu.memory_space<vmem>>, vector<1x1024xbf16>,
    %c0_57 = arith.constant 0 : index
    %c131 = arith.constant 131 : index
    %52 = vector.load %arg15[%c0_57, %c131] : memref<1x1184xbf16, #tpu.memory_space<vmem>>, vector<1x1024xbf16>
    %c23 = arith.constant 23 : index
    %c0_58 = arith.constant 0 : index
    %53 = vector.load %arg16[%c23, %c0_58] : memref<25x1024xbf16, #tpu.memory_space<vmem>>, vector<1x1024xbf16>
    tpu.vector_store %arg16[%c23, %c0_58], %52 {strides = array<i32>} : memref<25x1024xbf16, #tpu.memory_space<vmem>>, vector<1x1024xbf16>,
    %c0_59 = arith.constant 0 : index
    %c132 = arith.constant 132 : index
    %54 = vector.load %arg15[%c0_59, %c132] : memref<1x1184xbf16, #tpu.memory_space<vmem>>, vector<1x1024xbf16>
    %c24 = arith.constant 24 : index
    %c0_60 = arith.constant 0 : index
    %55 = vector.load %arg16[%c24, %c0_60] : memref<25x1024xbf16, #tpu.memory_space<vmem>>, vector<1x1024xbf16>
    tpu.vector_store %arg16[%c24, %c0_60], %54 {strides = array<i32>} : memref<25x1024xbf16, #tpu.memory_space<vmem>>, vector<1x1024xbf16>,
    %c0_61 = arith.constant 0 : index
    %c0_62 = arith.constant 0 : index
    %56 = vector.load %arg2[%c0_61, %c0_62] : memref<6x25xbf16, #tpu.memory_space<vmem>>, vector<6x25xbf16>
    %c0_63 = arith.constant 0 : index
    %c0_64 = arith.constant 0 : index
    %57 = vector.load %arg16[%c0_63, %c0_64] : memref<25x1024xbf16, #tpu.memory_space<vmem>>, vector<25x1024xbf16>
    %cst_65 = arith.constant dense<0.000000e+00> : vector<6x1024xf32>
    %58 = tpu.matmul %56, %57, %cst_65 {dimension_numbers = #tpu.dot_dimension_numbers<[1], [0], [0], [1], [0, 0, 1, 1], [], []>} : vector<6x25xbf16>, vector<25x1024xbf16>, vector<6x1024xf32> -> vector<6x1024xf32>
    %c0_66 = arith.constant 0 : index
    %c0_67 = arith.constant 0 : index
    %59 = vector.load %arg3[%c0_66, %c0_67] : memref<6x1xf32, #tpu.memory_space<vmem>>, vector<6x1xf32>
    %60 = vector.broadcast %59 : vector<6x1xf32> to vector<6x1024xf32>
    %61 = arith.addf %58, %60 : vector<6x1024xf32>
    %62 = arith.negf %61 : vector<6x1024xf32>
    %63 = math.exp %62 : vector<6x1024xf32>
    %cst_68 = arith.constant 1.000000e+00 : f32
    %64 = vector.broadcast %cst_68 : f32 to vector<6x1024xf32>
    %65 = arith.addf %64, %63 : vector<6x1024xf32>
    %66 = arith.divf %64, %65 : vector<6x1024xf32>
    %67 = arith.truncf %66 : vector<6x1024xf32> to vector<6x1024xbf16>
    %c0_69 = arith.constant 0 : index
    %c0_70 = arith.constant 0 : index
    %68 = vector.load %arg4[%c0_69, %c0_70] : memref<1024x196xbf16, #tpu.memory_space<vmem>>, vector<1024x196xbf16>
    %cst_71 = arith.constant dense<0.000000e+00> : vector<6x196xf32>
    %69 = tpu.matmul %67, %68, %cst_71 {dimension_numbers = #tpu.dot_dimension_numbers<[1], [0], [0], [1], [0, 0, 1, 1], [], []>} : vector<6x1024xbf16>, vector<1024x196xbf16>, vector<6x196xf32> -> vector<6x196xf32>
    %70 = arith.truncf %69 : vector<6x196xf32> to vector<6x196xbf16>
    %c0_72 = arith.constant 0 : index
    %c0_73 = arith.constant 0 : index
    %71 = vector.load %arg17[%c0_72, %c0_73] : memref<6x256xbf16, #tpu.memory_space<vmem>>, vector<6x196xbf16>
    tpu.vector_store %arg17[%c0_72, %c0_73], %70 {strides = array<i32>} : memref<6x256xbf16, #tpu.memory_space<vmem>>, vector<6x196xbf16>,
    %cst_74 = arith.constant 0.000000e+00 : bf16
    %72 = vector.broadcast %cst_74 : bf16 to vector<6x60xbf16>
    %c0_75 = arith.constant 0 : index
    %c196 = arith.constant 196 : index
    %73 = vector.load %arg17[%c0_75, %c196] : memref<6x256xbf16, #tpu.memory_space<vmem>>, vector<6x60xbf16>
    tpu.vector_store %arg17[%c0_75, %c196], %72 {strides = array<i32>} : memref<6x256xbf16, #tpu.memory_space<vmem>>, vector<6x60xbf16>,
    %c0_76 = arith.constant 0 : index
    %c0_77 = arith.constant 0 : index
    %74 = vector.load %arg17[%c0_76, %c0_77] : memref<6x256xbf16, #tpu.memory_space<vmem>>, vector<6x196xbf16>
    %c0_78 = arith.constant 0 : index
    %c0_79 = arith.constant 0 : index
    %75 = vector.load %arg18[%c0_78, %c0_79] : memref<150x196xbf16, #tpu.memory_space<vmem>>, vector<6x196xbf16>
    tpu.vector_store %arg18[%c0_78, %c0_79], %74 {strides = array<i32>} : memref<150x196xbf16, #tpu.memory_space<vmem>>, vector<6x196xbf16>,
    %c0_80 = arith.constant 0 : index
    %c1_81 = arith.constant 1 : index
    %76 = vector.load %arg17[%c0_80, %c1_81] : memref<6x256xbf16, #tpu.memory_space<vmem>>, vector<6x196xbf16>
    %c6_82 = arith.constant 6 : index
    %c0_83 = arith.constant 0 : index
    %77 = vector.load %arg18[%c6_82, %c0_83] : memref<150x196xbf16, #tpu.memory_space<vmem>>, vector<6x196xbf16>
    tpu.vector_store %arg18[%c6_82, %c0_83], %76 {strides = array<i32>} : memref<150x196xbf16, #tpu.memory_space<vmem>>, vector<6x196xbf16>,
    %c0_84 = arith.constant 0 : index
    %c2_85 = arith.constant 2 : index
    %78 = vector.load %arg17[%c0_84, %c2_85] : memref<6x256xbf16, #tpu.memory_space<vmem>>, vector<6x196xbf16>
    %c12_86 = arith.constant 12 : index
    %c0_87 = arith.constant 0 : index
    %79 = vector.load %arg18[%c12_86, %c0_87] : memref<150x196xbf16, #tpu.memory_space<vmem>>, vector<6x196xbf16>
    tpu.vector_store %arg18[%c12_86, %c0_87], %78 {strides = array<i32>} : memref<150x196xbf16, #tpu.memory_space<vmem>>, vector<6x196xbf16>,
    %c0_88 = arith.constant 0 : index
    %c3_89 = arith.constant 3 : index
    %80 = vector.load %arg17[%c0_88, %c3_89] : memref<6x256xbf16, #tpu.memory_space<vmem>>, vector<6x196xbf16>
    %c18_90 = arith.constant 18 : index
    %c0_91 = arith.constant 0 : index
    %81 = vector.load %arg18[%c18_90, %c0_91] : memref<150x196xbf16, #tpu.memory_space<vmem>>, vector<6x196xbf16>
    tpu.vector_store %arg18[%c18_90, %c0_91], %80 {strides = array<i32>} : memref<150x196xbf16, #tpu.memory_space<vmem>>, vector<6x196xbf16>,
    %c0_92 = arith.constant 0 : index
    %c4_93 = arith.constant 4 : index
    %82 = vector.load %arg17[%c0_92, %c4_93] : memref<6x256xbf16, #tpu.memory_space<vmem>>, vector<6x196xbf16>
    %c24_94 = arith.constant 24 : index
    %c0_95 = arith.constant 0 : index
    %83 = vector.load %arg18[%c24_94, %c0_95] : memref<150x196xbf16, #tpu.memory_space<vmem>>, vector<6x196xbf16>
    tpu.vector_store %arg18[%c24_94, %c0_95], %82 {strides = array<i32>} : memref<150x196xbf16, #tpu.memory_space<vmem>>, vector<6x196xbf16>,
    %c0_96 = arith.constant 0 : index
    %c14_97 = arith.constant 14 : index
    %84 = vector.load %arg17[%c0_96, %c14_97] : memref<6x256xbf16, #tpu.memory_space<vmem>>, vector<6x196xbf16>
    %c30 = arith.constant 30 : index
    %c0_98 = arith.constant 0 : index
    %85 = vector.load %arg18[%c30, %c0_98] : memref<150x196xbf16, #tpu.memory_space<vmem>>, vector<6x196xbf16>
    tpu.vector_store %arg18[%c30, %c0_98], %84 {strides = array<i32>} : memref<150x196xbf16, #tpu.memory_space<vmem>>, vector<6x196xbf16>,
    %c0_99 = arith.constant 0 : index
    %c15_100 = arith.constant 15 : index
    %86 = vector.load %arg17[%c0_99, %c15_100] : memref<6x256xbf16, #tpu.memory_space<vmem>>, vector<6x196xbf16>
    %c36_101 = arith.constant 36 : index
    %c0_102 = arith.constant 0 : index
    %87 = vector.load %arg18[%c36_101, %c0_102] : memref<150x196xbf16, #tpu.memory_space<vmem>>, vector<6x196xbf16>
    tpu.vector_store %arg18[%c36_101, %c0_102], %86 {strides = array<i32>} : memref<150x196xbf16, #tpu.memory_space<vmem>>, vector<6x196xbf16>,
    %c0_103 = arith.constant 0 : index
    %c16_104 = arith.constant 16 : index
    %88 = vector.load %arg17[%c0_103, %c16_104] : memref<6x256xbf16, #tpu.memory_space<vmem>>, vector<6x196xbf16>
    %c42 = arith.constant 42 : index
    %c0_105 = arith.constant 0 : index
    %89 = vector.load %arg18[%c42, %c0_105] : memref<150x196xbf16, #tpu.memory_space<vmem>>, vector<6x196xbf16>
    tpu.vector_store %arg18[%c42, %c0_105], %88 {strides = array<i32>} : memref<150x196xbf16, #tpu.memory_space<vmem>>, vector<6x196xbf16>,
    %c0_106 = arith.constant 0 : index
    %c17_107 = arith.constant 17 : index
    %90 = vector.load %arg17[%c0_106, %c17_107] : memref<6x256xbf16, #tpu.memory_space<vmem>>, vector<6x196xbf16>
    %c48 = arith.constant 48 : index
    %c0_108 = arith.constant 0 : index
    %91 = vector.load %arg18[%c48, %c0_108] : memref<150x196xbf16, #tpu.memory_space<vmem>>, vector<6x196xbf16>
    tpu.vector_store %arg18[%c48, %c0_108], %90 {strides = array<i32>} : memref<150x196xbf16, #tpu.memory_space<vmem>>, vector<6x196xbf16>,
    %c0_109 = arith.constant 0 : index
    %c18_110 = arith.constant 18 : index
    %92 = vector.load %arg17[%c0_109, %c18_110] : memref<6x256xbf16, #tpu.memory_space<vmem>>, vector<6x196xbf16>
    %c54 = arith.constant 54 : index
    %c0_111 = arith.constant 0 : index
    %93 = vector.load %arg18[%c54, %c0_111] : memref<150x196xbf16, #tpu.memory_space<vmem>>, vector<6x196xbf16>
    tpu.vector_store %arg18[%c54, %c0_111], %92 {strides = array<i32>} : memref<150x196xbf16, #tpu.memory_space<vmem>>, vector<6x196xbf16>,
    %c0_112 = arith.constant 0 : index
    %c28 = arith.constant 28 : index
    %94 = vector.load %arg17[%c0_112, %c28] : memref<6x256xbf16, #tpu.memory_space<vmem>>, vector<6x196xbf16>
    %c60 = arith.constant 60 : index
    %c0_113 = arith.constant 0 : index
    %95 = vector.load %arg18[%c60, %c0_113] : memref<150x196xbf16, #tpu.memory_space<vmem>>, vector<6x196xbf16>
    tpu.vector_store %arg18[%c60, %c0_113], %94 {strides = array<i32>} : memref<150x196xbf16, #tpu.memory_space<vmem>>, vector<6x196xbf16>,
    %c0_114 = arith.constant 0 : index
    %c29 = arith.constant 29 : index
    %96 = vector.load %arg17[%c0_114, %c29] : memref<6x256xbf16, #tpu.memory_space<vmem>>, vector<6x196xbf16>
    %c66_115 = arith.constant 66 : index
    %c0_116 = arith.constant 0 : index
    %97 = vector.load %arg18[%c66_115, %c0_116] : memref<150x196xbf16, #tpu.memory_space<vmem>>, vector<6x196xbf16>
    tpu.vector_store %arg18[%c66_115, %c0_116], %96 {strides = array<i32>} : memref<150x196xbf16, #tpu.memory_space<vmem>>, vector<6x196xbf16>,
    %c0_117 = arith.constant 0 : index
    %c30_118 = arith.constant 30 : index
    %98 = vector.load %arg17[%c0_117, %c30_118] : memref<6x256xbf16, #tpu.memory_space<vmem>>, vector<6x196xbf16>
    %c72 = arith.constant 72 : index
    %c0_119 = arith.constant 0 : index
    %99 = vector.load %arg18[%c72, %c0_119] : memref<150x196xbf16, #tpu.memory_space<vmem>>, vector<6x196xbf16>
    tpu.vector_store %arg18[%c72, %c0_119], %98 {strides = array<i32>} : memref<150x196xbf16, #tpu.memory_space<vmem>>, vector<6x196xbf16>,
    %c0_120 = arith.constant 0 : index
    %c31 = arith.constant 31 : index
    %100 = vector.load %arg17[%c0_120, %c31] : memref<6x256xbf16, #tpu.memory_space<vmem>>, vector<6x196xbf16>
    %c78 = arith.constant 78 : index
    %c0_121 = arith.constant 0 : index
    %101 = vector.load %arg18[%c78, %c0_121] : memref<150x196xbf16, #tpu.memory_space<vmem>>, vector<6x196xbf16>
    tpu.vector_store %arg18[%c78, %c0_121], %100 {strides = array<i32>} : memref<150x196xbf16, #tpu.memory_space<vmem>>, vector<6x196xbf16>,
    %c0_122 = arith.constant 0 : index
    %c32_123 = arith.constant 32 : index
    %102 = vector.load %arg17[%c0_122, %c32_123] : memref<6x256xbf16, #tpu.memory_space<vmem>>, vector<6x196xbf16>
    %c84 = arith.constant 84 : index
    %c0_124 = arith.constant 0 : index
    %103 = vector.load %arg18[%c84, %c0_124] : memref<150x196xbf16, #tpu.memory_space<vmem>>, vector<6x196xbf16>
    tpu.vector_store %arg18[%c84, %c0_124], %102 {strides = array<i32>} : memref<150x196xbf16, #tpu.memory_space<vmem>>, vector<6x196xbf16>,
    %c0_125 = arith.constant 0 : index
    %c42_126 = arith.constant 42 : index
    %104 = vector.load %arg17[%c0_125, %c42_126] : memref<6x256xbf16, #tpu.memory_space<vmem>>, vector<6x196xbf16>
    %c90 = arith.constant 90 : index
    %c0_127 = arith.constant 0 : index
    %105 = vector.load %arg18[%c90, %c0_127] : memref<150x196xbf16, #tpu.memory_space<vmem>>, vector<6x196xbf16>
    tpu.vector_store %arg18[%c90, %c0_127], %104 {strides = array<i32>} : memref<150x196xbf16, #tpu.memory_space<vmem>>, vector<6x196xbf16>,
    %c0_128 = arith.constant 0 : index
    %c43 = arith.constant 43 : index
    %106 = vector.load %arg17[%c0_128, %c43] : memref<6x256xbf16, #tpu.memory_space<vmem>>, vector<6x196xbf16>
    %c96_129 = arith.constant 96 : index
    %c0_130 = arith.constant 0 : index
    %107 = vector.load %arg18[%c96_129, %c0_130] : memref<150x196xbf16, #tpu.memory_space<vmem>>, vector<6x196xbf16>
    tpu.vector_store %arg18[%c96_129, %c0_130], %106 {strides = array<i32>} : memref<150x196xbf16, #tpu.memory_space<vmem>>, vector<6x196xbf16>,
    %c0_131 = arith.constant 0 : index
    %c44 = arith.constant 44 : index
    %108 = vector.load %arg17[%c0_131, %c44] : memref<6x256xbf16, #tpu.memory_space<vmem>>, vector<6x196xbf16>
    %c102 = arith.constant 102 : index
    %c0_132 = arith.constant 0 : index
    %109 = vector.load %arg18[%c102, %c0_132] : memref<150x196xbf16, #tpu.memory_space<vmem>>, vector<6x196xbf16>
    tpu.vector_store %arg18[%c102, %c0_132], %108 {strides = array<i32>} : memref<150x196xbf16, #tpu.memory_space<vmem>>, vector<6x196xbf16>,
    %c0_133 = arith.constant 0 : index
    %c45 = arith.constant 45 : index
    %110 = vector.load %arg17[%c0_133, %c45] : memref<6x256xbf16, #tpu.memory_space<vmem>>, vector<6x196xbf16>
    %c108 = arith.constant 108 : index
    %c0_134 = arith.constant 0 : index
    %111 = vector.load %arg18[%c108, %c0_134] : memref<150x196xbf16, #tpu.memory_space<vmem>>, vector<6x196xbf16>
    tpu.vector_store %arg18[%c108, %c0_134], %110 {strides = array<i32>} : memref<150x196xbf16, #tpu.memory_space<vmem>>, vector<6x196xbf16>,
    %c0_135 = arith.constant 0 : index
    %c46 = arith.constant 46 : index
    %112 = vector.load %arg17[%c0_135, %c46] : memref<6x256xbf16, #tpu.memory_space<vmem>>, vector<6x196xbf16>
    %c114 = arith.constant 114 : index
    %c0_136 = arith.constant 0 : index
    %113 = vector.load %arg18[%c114, %c0_136] : memref<150x196xbf16, #tpu.memory_space<vmem>>, vector<6x196xbf16>
    tpu.vector_store %arg18[%c114, %c0_136], %112 {strides = array<i32>} : memref<150x196xbf16, #tpu.memory_space<vmem>>, vector<6x196xbf16>,
    %c0_137 = arith.constant 0 : index
    %c56 = arith.constant 56 : index
    %114 = vector.load %arg17[%c0_137, %c56] : memref<6x256xbf16, #tpu.memory_space<vmem>>, vector<6x196xbf16>
    %c120 = arith.constant 120 : index
    %c0_138 = arith.constant 0 : index
    %115 = vector.load %arg18[%c120, %c0_138] : memref<150x196xbf16, #tpu.memory_space<vmem>>, vector<6x196xbf16>
    tpu.vector_store %arg18[%c120, %c0_138], %114 {strides = array<i32>} : memref<150x196xbf16, #tpu.memory_space<vmem>>, vector<6x196xbf16>,
    %c0_139 = arith.constant 0 : index
    %c57 = arith.constant 57 : index
    %116 = vector.load %arg17[%c0_139, %c57] : memref<6x256xbf16, #tpu.memory_space<vmem>>, vector<6x196xbf16>
    %c126 = arith.constant 126 : index
    %c0_140 = arith.constant 0 : index
    %117 = vector.load %arg18[%c126, %c0_140] : memref<150x196xbf16, #tpu.memory_space<vmem>>, vector<6x196xbf16>
    tpu.vector_store %arg18[%c126, %c0_140], %116 {strides = array<i32>} : memref<150x196xbf16, #tpu.memory_space<vmem>>, vector<6x196xbf16>,
    %c0_141 = arith.constant 0 : index
    %c58 = arith.constant 58 : index
    %118 = vector.load %arg17[%c0_141, %c58] : memref<6x256xbf16, #tpu.memory_space<vmem>>, vector<6x196xbf16>
    %c132_142 = arith.constant 132 : index
    %c0_143 = arith.constant 0 : index
    %119 = vector.load %arg18[%c132_142, %c0_143] : memref<150x196xbf16, #tpu.memory_space<vmem>>, vector<6x196xbf16>
    tpu.vector_store %arg18[%c132_142, %c0_143], %118 {strides = array<i32>} : memref<150x196xbf16, #tpu.memory_space<vmem>>, vector<6x196xbf16>,
    %c0_144 = arith.constant 0 : index
    %c59 = arith.constant 59 : index
    %120 = vector.load %arg17[%c0_144, %c59] : memref<6x256xbf16, #tpu.memory_space<vmem>>, vector<6x196xbf16>
    %c138 = arith.constant 138 : index
    %c0_145 = arith.constant 0 : index
    %121 = vector.load %arg18[%c138, %c0_145] : memref<150x196xbf16, #tpu.memory_space<vmem>>, vector<6x196xbf16>
    tpu.vector_store %arg18[%c138, %c0_145], %120 {strides = array<i32>} : memref<150x196xbf16, #tpu.memory_space<vmem>>, vector<6x196xbf16>,
    %c0_146 = arith.constant 0 : index
    %c60_147 = arith.constant 60 : index
    %122 = vector.load %arg17[%c0_146, %c60_147] : memref<6x256xbf16, #tpu.memory_space<vmem>>, vector<6x196xbf16>
    %c144 = arith.constant 144 : index
    %c0_148 = arith.constant 0 : index
    %123 = vector.load %arg18[%c144, %c0_148] : memref<150x196xbf16, #tpu.memory_space<vmem>>, vector<6x196xbf16>
    tpu.vector_store %arg18[%c144, %c0_148], %122 {strides = array<i32>} : memref<150x196xbf16, #tpu.memory_space<vmem>>, vector<6x196xbf16>,
    %c0_149 = arith.constant 0 : index
    %c0_150 = arith.constant 0 : index
    %124 = vector.load %arg5[%c0_149, %c0_150] : memref<16x150xbf16, #tpu.memory_space<vmem>>, vector<16x150xbf16>
    %c0_151 = arith.constant 0 : index
    %c0_152 = arith.constant 0 : index
    %125 = vector.load %arg18[%c0_151, %c0_152] : memref<150x196xbf16, #tpu.memory_space<vmem>>, vector<150x196xbf16>
    %cst_153 = arith.constant dense<0.000000e+00> : vector<16x196xf32>
    %126 = tpu.matmul %124, %125, %cst_153 {dimension_numbers = #tpu.dot_dimension_numbers<[1], [0], [0], [1], [0, 0, 1, 1], [], []>} : vector<16x150xbf16>, vector<150x196xbf16>, vector<16x196xf32> -> vector<16x196xf32>
    %c0_154 = arith.constant 0 : index
    %c0_155 = arith.constant 0 : index
    %127 = vector.load %arg6[%c0_154, %c0_155] : memref<16x1xf32, #tpu.memory_space<vmem>>, vector<16x1xf32>
    %128 = vector.broadcast %127 : vector<16x1xf32> to vector<16x196xf32>
    %129 = arith.addf %126, %128 : vector<16x196xf32>
    %130 = arith.negf %129 : vector<16x196xf32>
    %131 = math.exp %130 : vector<16x196xf32>
    %cst_156 = arith.constant 1.000000e+00 : f32
    %132 = vector.broadcast %cst_156 : f32 to vector<16x196xf32>
    %133 = arith.addf %132, %131 : vector<16x196xf32>
    %134 = arith.divf %132, %133 : vector<16x196xf32>
    %135 = arith.truncf %134 : vector<16x196xf32> to vector<16x196xbf16>
    %c0_157 = arith.constant 0 : index
    %c0_158 = arith.constant 0 : index
    %136 = vector.load %arg7[%c0_157, %c0_158] : memref<196x25xbf16, #tpu.memory_space<vmem>>, vector<196x25xbf16>
    %cst_159 = arith.constant dense<0.000000e+00> : vector<16x25xf32>
    %137 = tpu.matmul %135, %136, %cst_159 {dimension_numbers = #tpu.dot_dimension_numbers<[1], [0], [0], [1], [0, 0, 1, 1], [], []>} : vector<16x196xbf16>, vector<196x25xbf16>, vector<16x25xf32> -> vector<16x25xf32>
    %138 = arith.truncf %137 : vector<16x25xf32> to vector<16x25xbf16>
    %c0_160 = arith.constant 0 : index
    %c0_161 = arith.constant 0 : index
    %139 = vector.load %arg19[%c0_160, %c0_161] : memref<16x25xbf16, #tpu.memory_space<vmem>>, vector<16x25xbf16>
    tpu.vector_store %arg19[%c0_160, %c0_161], %138 {strides = array<i32>} : memref<16x25xbf16, #tpu.memory_space<vmem>>, vector<16x25xbf16>,
    %c0_162 = arith.constant 0 : index
    %c0_163 = arith.constant 0 : index
    %140 = vector.load %arg19[%c0_162, %c0_163] : memref<16x25xbf16, #tpu.memory_space<vmem>>, vector<16x1xbf16>
    %c0_164 = arith.constant 0 : index
    %c0_165 = arith.constant 0 : index
    %141 = vector.load %arg20[%c0_164, %c0_165] : memref<400x1xbf16, #tpu.memory_space<vmem>>, vector<16x1xbf16>
    tpu.vector_store %arg20[%c0_164, %c0_165], %140 {strides = array<i32>} : memref<400x1xbf16, #tpu.memory_space<vmem>>, vector<16x1xbf16>,
    %c0_166 = arith.constant 0 : index
    %c1_167 = arith.constant 1 : index
    %142 = vector.load %arg19[%c0_166, %c1_167] : memref<16x25xbf16, #tpu.memory_space<vmem>>, vector<16x1xbf16>
    %c16_168 = arith.constant 16 : index
    %c0_169 = arith.constant 0 : index
    %143 = vector.load %arg20[%c16_168, %c0_169] : memref<400x1xbf16, #tpu.memory_space<vmem>>, vector<16x1xbf16>
    tpu.vector_store %arg20[%c16_168, %c0_169], %142 {strides = array<i32>} : memref<400x1xbf16, #tpu.memory_space<vmem>>, vector<16x1xbf16>,
    %c0_170 = arith.constant 0 : index
    %c2_171 = arith.constant 2 : index
    %144 = vector.load %arg19[%c0_170, %c2_171] : memref<16x25xbf16, #tpu.memory_space<vmem>>, vector<16x1xbf16>
    %c32_172 = arith.constant 32 : index
    %c0_173 = arith.constant 0 : index
    %145 = vector.load %arg20[%c32_172, %c0_173] : memref<400x1xbf16, #tpu.memory_space<vmem>>, vector<16x1xbf16>
    tpu.vector_store %arg20[%c32_172, %c0_173], %144 {strides = array<i32>} : memref<400x1xbf16, #tpu.memory_space<vmem>>, vector<16x1xbf16>,
    %c0_174 = arith.constant 0 : index
    %c3_175 = arith.constant 3 : index
    %146 = vector.load %arg19[%c0_174, %c3_175] : memref<16x25xbf16, #tpu.memory_space<vmem>>, vector<16x1xbf16>
    %c48_176 = arith.constant 48 : index
    %c0_177 = arith.constant 0 : index
    %147 = vector.load %arg20[%c48_176, %c0_177] : memref<400x1xbf16, #tpu.memory_space<vmem>>, vector<16x1xbf16>
    tpu.vector_store %arg20[%c48_176, %c0_177], %146 {strides = array<i32>} : memref<400x1xbf16, #tpu.memory_space<vmem>>, vector<16x1xbf16>,
    %c0_178 = arith.constant 0 : index
    %c4_179 = arith.constant 4 : index
    %148 = vector.load %arg19[%c0_178, %c4_179] : memref<16x25xbf16, #tpu.memory_space<vmem>>, vector<16x1xbf16>
    %c64_180 = arith.constant 64 : index
    %c0_181 = arith.constant 0 : index
    %149 = vector.load %arg20[%c64_180, %c0_181] : memref<400x1xbf16, #tpu.memory_space<vmem>>, vector<16x1xbf16>
    tpu.vector_store %arg20[%c64_180, %c0_181], %148 {strides = array<i32>} : memref<400x1xbf16, #tpu.memory_space<vmem>>, vector<16x1xbf16>,
    %c0_182 = arith.constant 0 : index
    %c5_183 = arith.constant 5 : index
    %150 = vector.load %arg19[%c0_182, %c5_183] : memref<16x25xbf16, #tpu.memory_space<vmem>>, vector<16x1xbf16>
    %c80 = arith.constant 80 : index
    %c0_184 = arith.constant 0 : index
    %151 = vector.load %arg20[%c80, %c0_184] : memref<400x1xbf16, #tpu.memory_space<vmem>>, vector<16x1xbf16>
    tpu.vector_store %arg20[%c80, %c0_184], %150 {strides = array<i32>} : memref<400x1xbf16, #tpu.memory_space<vmem>>, vector<16x1xbf16>,
    %c0_185 = arith.constant 0 : index
    %c6_186 = arith.constant 6 : index
    %152 = vector.load %arg19[%c0_185, %c6_186] : memref<16x25xbf16, #tpu.memory_space<vmem>>, vector<16x1xbf16>
    %c96_187 = arith.constant 96 : index
    %c0_188 = arith.constant 0 : index
    %153 = vector.load %arg20[%c96_187, %c0_188] : memref<400x1xbf16, #tpu.memory_space<vmem>>, vector<16x1xbf16>
    tpu.vector_store %arg20[%c96_187, %c0_188], %152 {strides = array<i32>} : memref<400x1xbf16, #tpu.memory_space<vmem>>, vector<16x1xbf16>,
    %c0_189 = arith.constant 0 : index
    %c7_190 = arith.constant 7 : index
    %154 = vector.load %arg19[%c0_189, %c7_190] : memref<16x25xbf16, #tpu.memory_space<vmem>>, vector<16x1xbf16>
    %c112 = arith.constant 112 : index
    %c0_191 = arith.constant 0 : index
    %155 = vector.load %arg20[%c112, %c0_191] : memref<400x1xbf16, #tpu.memory_space<vmem>>, vector<16x1xbf16>
    tpu.vector_store %arg20[%c112, %c0_191], %154 {strides = array<i32>} : memref<400x1xbf16, #tpu.memory_space<vmem>>, vector<16x1xbf16>,
    %c0_192 = arith.constant 0 : index
    %c8_193 = arith.constant 8 : index
    %156 = vector.load %arg19[%c0_192, %c8_193] : memref<16x25xbf16, #tpu.memory_space<vmem>>, vector<16x1xbf16>
    %c128_194 = arith.constant 128 : index
    %c0_195 = arith.constant 0 : index
    %157 = vector.load %arg20[%c128_194, %c0_195] : memref<400x1xbf16, #tpu.memory_space<vmem>>, vector<16x1xbf16>
    tpu.vector_store %arg20[%c128_194, %c0_195], %156 {strides = array<i32>} : memref<400x1xbf16, #tpu.memory_space<vmem>>, vector<16x1xbf16>,
    %c0_196 = arith.constant 0 : index
    %c9_197 = arith.constant 9 : index
    %158 = vector.load %arg19[%c0_196, %c9_197] : memref<16x25xbf16, #tpu.memory_space<vmem>>, vector<16x1xbf16>
    %c144_198 = arith.constant 144 : index
    %c0_199 = arith.constant 0 : index
    %159 = vector.load %arg20[%c144_198, %c0_199] : memref<400x1xbf16, #tpu.memory_space<vmem>>, vector<16x1xbf16>
    tpu.vector_store %arg20[%c144_198, %c0_199], %158 {strides = array<i32>} : memref<400x1xbf16, #tpu.memory_space<vmem>>, vector<16x1xbf16>,
    %c0_200 = arith.constant 0 : index
    %c10_201 = arith.constant 10 : index
    %160 = vector.load %arg19[%c0_200, %c10_201] : memref<16x25xbf16, #tpu.memory_space<vmem>>, vector<16x1xbf16>
    %c160 = arith.constant 160 : index
    %c0_202 = arith.constant 0 : index
    %161 = vector.load %arg20[%c160, %c0_202] : memref<400x1xbf16, #tpu.memory_space<vmem>>, vector<16x1xbf16>
    tpu.vector_store %arg20[%c160, %c0_202], %160 {strides = array<i32>} : memref<400x1xbf16, #tpu.memory_space<vmem>>, vector<16x1xbf16>,
    %c0_203 = arith.constant 0 : index
    %c11_204 = arith.constant 11 : index
    %162 = vector.load %arg19[%c0_203, %c11_204] : memref<16x25xbf16, #tpu.memory_space<vmem>>, vector<16x1xbf16>
    %c176 = arith.constant 176 : index
    %c0_205 = arith.constant 0 : index
    %163 = vector.load %arg20[%c176, %c0_205] : memref<400x1xbf16, #tpu.memory_space<vmem>>, vector<16x1xbf16>
    tpu.vector_store %arg20[%c176, %c0_205], %162 {strides = array<i32>} : memref<400x1xbf16, #tpu.memory_space<vmem>>, vector<16x1xbf16>,
    %c0_206 = arith.constant 0 : index
    %c12_207 = arith.constant 12 : index
    %164 = vector.load %arg19[%c0_206, %c12_207] : memref<16x25xbf16, #tpu.memory_space<vmem>>, vector<16x1xbf16>
    %c192 = arith.constant 192 : index
    %c0_208 = arith.constant 0 : index
    %165 = vector.load %arg20[%c192, %c0_208] : memref<400x1xbf16, #tpu.memory_space<vmem>>, vector<16x1xbf16>
    tpu.vector_store %arg20[%c192, %c0_208], %164 {strides = array<i32>} : memref<400x1xbf16, #tpu.memory_space<vmem>>, vector<16x1xbf16>,
    %c0_209 = arith.constant 0 : index
    %c13_210 = arith.constant 13 : index
    %166 = vector.load %arg19[%c0_209, %c13_210] : memref<16x25xbf16, #tpu.memory_space<vmem>>, vector<16x1xbf16>
    %c208 = arith.constant 208 : index
    %c0_211 = arith.constant 0 : index
    %167 = vector.load %arg20[%c208, %c0_211] : memref<400x1xbf16, #tpu.memory_space<vmem>>, vector<16x1xbf16>
    tpu.vector_store %arg20[%c208, %c0_211], %166 {strides = array<i32>} : memref<400x1xbf16, #tpu.memory_space<vmem>>, vector<16x1xbf16>,
    %c0_212 = arith.constant 0 : index
    %c14_213 = arith.constant 14 : index
    %168 = vector.load %arg19[%c0_212, %c14_213] : memref<16x25xbf16, #tpu.memory_space<vmem>>, vector<16x1xbf16>
    %c224 = arith.constant 224 : index
    %c0_214 = arith.constant 0 : index
    %169 = vector.load %arg20[%c224, %c0_214] : memref<400x1xbf16, #tpu.memory_space<vmem>>, vector<16x1xbf16>
    tpu.vector_store %arg20[%c224, %c0_214], %168 {strides = array<i32>} : memref<400x1xbf16, #tpu.memory_space<vmem>>, vector<16x1xbf16>,
    %c0_215 = arith.constant 0 : index
    %c15_216 = arith.constant 15 : index
    %170 = vector.load %arg19[%c0_215, %c15_216] : memref<16x25xbf16, #tpu.memory_space<vmem>>, vector<16x1xbf16>
    %c240 = arith.constant 240 : index
    %c0_217 = arith.constant 0 : index
    %171 = vector.load %arg20[%c240, %c0_217] : memref<400x1xbf16, #tpu.memory_space<vmem>>, vector<16x1xbf16>
    tpu.vector_store %arg20[%c240, %c0_217], %170 {strides = array<i32>} : memref<400x1xbf16, #tpu.memory_space<vmem>>, vector<16x1xbf16>,
    %c0_218 = arith.constant 0 : index
    %c16_219 = arith.constant 16 : index
    %172 = vector.load %arg19[%c0_218, %c16_219] : memref<16x25xbf16, #tpu.memory_space<vmem>>, vector<16x1xbf16>
    %c256 = arith.constant 256 : index
    %c0_220 = arith.constant 0 : index
    %173 = vector.load %arg20[%c256, %c0_220] : memref<400x1xbf16, #tpu.memory_space<vmem>>, vector<16x1xbf16>
    tpu.vector_store %arg20[%c256, %c0_220], %172 {strides = array<i32>} : memref<400x1xbf16, #tpu.memory_space<vmem>>, vector<16x1xbf16>,
    %c0_221 = arith.constant 0 : index
    %c17_222 = arith.constant 17 : index
    %174 = vector.load %arg19[%c0_221, %c17_222] : memref<16x25xbf16, #tpu.memory_space<vmem>>, vector<16x1xbf16>
    %c272 = arith.constant 272 : index
    %c0_223 = arith.constant 0 : index
    %175 = vector.load %arg20[%c272, %c0_223] : memref<400x1xbf16, #tpu.memory_space<vmem>>, vector<16x1xbf16>
    tpu.vector_store %arg20[%c272, %c0_223], %174 {strides = array<i32>} : memref<400x1xbf16, #tpu.memory_space<vmem>>, vector<16x1xbf16>,
    %c0_224 = arith.constant 0 : index
    %c18_225 = arith.constant 18 : index
    %176 = vector.load %arg19[%c0_224, %c18_225] : memref<16x25xbf16, #tpu.memory_space<vmem>>, vector<16x1xbf16>
    %c288 = arith.constant 288 : index
    %c0_226 = arith.constant 0 : index
    %177 = vector.load %arg20[%c288, %c0_226] : memref<400x1xbf16, #tpu.memory_space<vmem>>, vector<16x1xbf16>
    tpu.vector_store %arg20[%c288, %c0_226], %176 {strides = array<i32>} : memref<400x1xbf16, #tpu.memory_space<vmem>>, vector<16x1xbf16>,
    %c0_227 = arith.constant 0 : index
    %c19_228 = arith.constant 19 : index
    %178 = vector.load %arg19[%c0_227, %c19_228] : memref<16x25xbf16, #tpu.memory_space<vmem>>, vector<16x1xbf16>
    %c304 = arith.constant 304 : index
    %c0_229 = arith.constant 0 : index
    %179 = vector.load %arg20[%c304, %c0_229] : memref<400x1xbf16, #tpu.memory_space<vmem>>, vector<16x1xbf16>
    tpu.vector_store %arg20[%c304, %c0_229], %178 {strides = array<i32>} : memref<400x1xbf16, #tpu.memory_space<vmem>>, vector<16x1xbf16>,
    %c0_230 = arith.constant 0 : index
    %c20_231 = arith.constant 20 : index
    %180 = vector.load %arg19[%c0_230, %c20_231] : memref<16x25xbf16, #tpu.memory_space<vmem>>, vector<16x1xbf16>
    %c320 = arith.constant 320 : index
    %c0_232 = arith.constant 0 : index
    %181 = vector.load %arg20[%c320, %c0_232] : memref<400x1xbf16, #tpu.memory_space<vmem>>, vector<16x1xbf16>
    tpu.vector_store %arg20[%c320, %c0_232], %180 {strides = array<i32>} : memref<400x1xbf16, #tpu.memory_space<vmem>>, vector<16x1xbf16>,
    %c0_233 = arith.constant 0 : index
    %c21_234 = arith.constant 21 : index
    %182 = vector.load %arg19[%c0_233, %c21_234] : memref<16x25xbf16, #tpu.memory_space<vmem>>, vector<16x1xbf16>
    %c336 = arith.constant 336 : index
    %c0_235 = arith.constant 0 : index
    %183 = vector.load %arg20[%c336, %c0_235] : memref<400x1xbf16, #tpu.memory_space<vmem>>, vector<16x1xbf16>
    tpu.vector_store %arg20[%c336, %c0_235], %182 {strides = array<i32>} : memref<400x1xbf16, #tpu.memory_space<vmem>>, vector<16x1xbf16>,
    %c0_236 = arith.constant 0 : index
    %c22_237 = arith.constant 22 : index
    %184 = vector.load %arg19[%c0_236, %c22_237] : memref<16x25xbf16, #tpu.memory_space<vmem>>, vector<16x1xbf16>
    %c352 = arith.constant 352 : index
    %c0_238 = arith.constant 0 : index
    %185 = vector.load %arg20[%c352, %c0_238] : memref<400x1xbf16, #tpu.memory_space<vmem>>, vector<16x1xbf16>
    tpu.vector_store %arg20[%c352, %c0_238], %184 {strides = array<i32>} : memref<400x1xbf16, #tpu.memory_space<vmem>>, vector<16x1xbf16>,
    %c0_239 = arith.constant 0 : index
    %c23_240 = arith.constant 23 : index
    %186 = vector.load %arg19[%c0_239, %c23_240] : memref<16x25xbf16, #tpu.memory_space<vmem>>, vector<16x1xbf16>
    %c368 = arith.constant 368 : index
    %c0_241 = arith.constant 0 : index
    %187 = vector.load %arg20[%c368, %c0_241] : memref<400x1xbf16, #tpu.memory_space<vmem>>, vector<16x1xbf16>
    tpu.vector_store %arg20[%c368, %c0_241], %186 {strides = array<i32>} : memref<400x1xbf16, #tpu.memory_space<vmem>>, vector<16x1xbf16>,
    %c0_242 = arith.constant 0 : index
    %c24_243 = arith.constant 24 : index
    %188 = vector.load %arg19[%c0_242, %c24_243] : memref<16x25xbf16, #tpu.memory_space<vmem>>, vector<16x1xbf16>
    %c384 = arith.constant 384 : index
    %c0_244 = arith.constant 0 : index
    %189 = vector.load %arg20[%c384, %c0_244] : memref<400x1xbf16, #tpu.memory_space<vmem>>, vector<16x1xbf16>
    tpu.vector_store %arg20[%c384, %c0_244], %188 {strides = array<i32>} : memref<400x1xbf16, #tpu.memory_space<vmem>>, vector<16x1xbf16>,
    %c0_245 = arith.constant 0 : index
    %c0_246 = arith.constant 0 : index
    %190 = vector.load %arg8[%c0_245, %c0_246] : memref<120x400xbf16, #tpu.memory_space<vmem>>, vector<120x400xbf16>
    %c0_247 = arith.constant 0 : index
    %c0_248 = arith.constant 0 : index
    %191 = vector.load %arg20[%c0_247, %c0_248] : memref<400x1xbf16, #tpu.memory_space<vmem>>, vector<400x1xbf16>
    %cst_249 = arith.constant dense<0.000000e+00> : vector<120x1xf32>
    %192 = tpu.matmul %190, %191, %cst_249 {dimension_numbers = #tpu.dot_dimension_numbers<[1], [0], [0], [1], [0, 0, 1, 1], [], []>} : vector<120x400xbf16>, vector<400x1xbf16>, vector<120x1xf32> -> vector<120x1xf32>
    %c0_250 = arith.constant 0 : index
    %c0_251 = arith.constant 0 : index
    %193 = vector.load %arg9[%c0_250, %c0_251] : memref<120x1xf32, #tpu.memory_space<vmem>>, vector<120x1xf32>
    %194 = arith.addf %192, %193 : vector<120x1xf32>
    %195 = arith.negf %194 : vector<120x1xf32>
    %196 = math.exp %195 : vector<120x1xf32>
    %cst_252 = arith.constant 1.000000e+00 : f32
    %197 = vector.broadcast %cst_252 : f32 to vector<120x1xf32>
    %198 = arith.addf %197, %196 : vector<120x1xf32>
    %199 = arith.divf %197, %198 : vector<120x1xf32>
    %c0_253 = arith.constant 0 : index
    %c0_254 = arith.constant 0 : index
    %200 = vector.load %arg10[%c0_253, %c0_254] : memref<84x120xbf16, #tpu.memory_space<vmem>>, vector<84x120xbf16>
    %201 = arith.truncf %199 : vector<120x1xf32> to vector<120x1xbf16>
    %cst_255 = arith.constant dense<0.000000e+00> : vector<84x1xf32>
    %202 = tpu.matmul %200, %201, %cst_255 {dimension_numbers = #tpu.dot_dimension_numbers<[1], [0], [0], [1], [0, 0, 1, 1], [], []>} : vector<84x120xbf16>, vector<120x1xbf16>, vector<84x1xf32> -> vector<84x1xf32>
    %c0_256 = arith.constant 0 : index
    %c0_257 = arith.constant 0 : index
    %203 = vector.load %arg11[%c0_256, %c0_257] : memref<84x1xf32, #tpu.memory_space<vmem>>, vector<84x1xf32>
    %204 = arith.addf %202, %203 : vector<84x1xf32>
    %c0_258 = arith.constant 0 : index
    %c0_259 = arith.constant 0 : index
    %205 = vector.load %arg12[%c0_258, %c0_259] : memref<10x84xbf16, #tpu.memory_space<vmem>>, vector<10x84xbf16>
    %206 = arith.truncf %204 : vector<84x1xf32> to vector<84x1xbf16>
    %cst_260 = arith.constant dense<0.000000e+00> : vector<10x1xf32>
    %207 = tpu.matmul %205, %206, %cst_260 {dimension_numbers = #tpu.dot_dimension_numbers<[1], [0], [0], [1], [0, 0, 1, 1], [], []>} : vector<10x84xbf16>, vector<84x1xbf16>, vector<10x1xf32> -> vector<10x1xf32>
    %c0_261 = arith.constant 0 : index
    %c0_262 = arith.constant 0 : index
    %208 = vector.load %arg13[%c0_261, %c0_262] : memref<10x1xf32, #tpu.memory_space<vmem>>, vector<10x1xf32>
    %209 = arith.addf %207, %208 : vector<10x1xf32>
    %c0_263 = arith.constant 0 : index
    %c0_264 = arith.constant 0 : index
    %c0_265 = arith.constant 0 : index
    %210 = vector.load %arg14[%c0_263, %c0_264, %c0_265] : memref<1x10x1xf32, #tpu.memory_space<vmem>>, vector<1x10x1xf32>
    %211 = vector.shape_cast %210 : vector<1x10x1xf32> to vector<10x1xf32>
    %212 = vector.shape_cast %209 : vector<10x1xf32> to vector<1x10x1xf32>
    tpu.vector_store %arg14[%c0_263, %c0_264, %c0_265], %212 {strides = array<i32>} : memref<1x10x1xf32, #tpu.memory_space<vmem>>, vector<1x10x1xf32>,
    return
  }
  func.func @transform_0(%arg0: i32) -> (i32, i32, i32) {
    %c0_i32 = arith.constant 0 : i32
    %c0_i32_0 = arith.constant 0 : i32
    %c0_i32_1 = arith.constant 0 : i32
    return %arg0, %c0_i32, %c0_i32_0 : i32, i32, i32
  }
  func.func @transform_1(%arg0: i32) -> (i32, i32) {
    %c0_i32 = arith.constant 0 : i32
    %c0_i32_0 = arith.constant 0 : i32
    %c0_i32_1 = arith.constant 0 : i32
    return %c0_i32, %c0_i32_0 : i32, i32
  }
  func.func @transform_2(%arg0: i32) -> (i32, i32) {
    %c0_i32 = arith.constant 0 : i32
    %c0_i32_0 = arith.constant 0 : i32
    %c0_i32_1 = arith.constant 0 : i32
    return %c0_i32, %c0_i32_0 : i32, i32
  }
  func.func @transform_3(%arg0: i32) -> (i32, i32) {
    %c0_i32 = arith.constant 0 : i32
    %c0_i32_0 = arith.constant 0 : i32
    %c0_i32_1 = arith.constant 0 : i32
    return %c0_i32, %c0_i32_0 : i32, i32
  }
  func.func @transform_4(%arg0: i32) -> (i32, i32) {
    %c0_i32 = arith.constant 0 : i32
    %c0_i32_0 = arith.constant 0 : i32
    %c0_i32_1 = arith.constant 0 : i32
    return %c0_i32, %c0_i32_0 : i32, i32
  }
  func.func @transform_5(%arg0: i32) -> (i32, i32) {
    %c0_i32 = arith.constant 0 : i32
    %c0_i32_0 = arith.constant 0 : i32
    %c0_i32_1 = arith.constant 0 : i32
    return %c0_i32, %c0_i32_0 : i32, i32
  }
  func.func @transform_6(%arg0: i32) -> (i32, i32) {
    %c0_i32 = arith.constant 0 : i32
    %c0_i32_0 = arith.constant 0 : i32
    %c0_i32_1 = arith.constant 0 : i32
    return %c0_i32, %c0_i32_0 : i32, i32
  }
  func.func @transform_7(%arg0: i32) -> (i32, i32) {
    %c0_i32 = arith.constant 0 : i32
    %c0_i32_0 = arith.constant 0 : i32
    %c0_i32_1 = arith.constant 0 : i32
    return %c0_i32, %c0_i32_0 : i32, i32
  }
  func.func @transform_8(%arg0: i32) -> (i32, i32) {
    %c0_i32 = arith.constant 0 : i32
    %c0_i32_0 = arith.constant 0 : i32
    %c0_i32_1 = arith.constant 0 : i32
    return %c0_i32, %c0_i32_0 : i32, i32
  }
  func.func @transform_9(%arg0: i32) -> (i32, i32) {
    %c0_i32 = arith.constant 0 : i32
    %c0_i32_0 = arith.constant 0 : i32
    %c0_i32_1 = arith.constant 0 : i32
    return %c0_i32, %c0_i32_0 : i32, i32
  }
  func.func @transform_10(%arg0: i32) -> (i32, i32) {
    %c0_i32 = arith.constant 0 : i32
    %c0_i32_0 = arith.constant 0 : i32
    %c0_i32_1 = arith.constant 0 : i32
    return %c0_i32, %c0_i32_0 : i32, i32
  }
  func.func @transform_11(%arg0: i32) -> (i32, i32) {
    %c0_i32 = arith.constant 0 : i32
    %c0_i32_0 = arith.constant 0 : i32
    %c0_i32_1 = arith.constant 0 : i32
    return %c0_i32, %c0_i32_0 : i32, i32
  }
  func.func @transform_12(%arg0: i32) -> (i32, i32) {
    %c0_i32 = arith.constant 0 : i32
    %c0_i32_0 = arith.constant 0 : i32
    %c0_i32_1 = arith.constant 0 : i32
    return %c0_i32, %c0_i32_0 : i32, i32
  }
  func.func @transform_13(%arg0: i32) -> (i32, i32, i32) {
    %c0_i32 = arith.constant 0 : i32
    %c0_i32_0 = arith.constant 0 : i32
    %c0_i32_1 = arith.constant 0 : i32
    return %arg0, %c0_i32, %c0_i32_0 : i32, i32, i32
  }
}

</mosaic_0001>

<bundles_post_ra>
// kernel: lenet_forward.1
= control target key start
LH: loop header
LB: loop body
LE: loop exit
PB: predicated region body
PF: predicated region fallthrough
CT: control target
= control target key end

     0   :  { %s7427_s25 = smov 0   ;;  %s9878_s0 = inlined_call_operand.vmem [shape: f32[2,1,1024], index: 0, kind: input, shape index: {}]   ;;  %s9879_s1 = inlined_call_operand.vmem [shape: bf16[6,25], index: 1, kind: input, shape index: {}]   ;;  %s9880_s2 = inlined_call_operand.vmem [shape: f32[6,1], index: 2, kind: input, shape index: {}]   ;;  %s9881_s3 = inlined_call_operand.vmem [shape: bf16[1024,196], index: 3, kind: input, shape index: {}]   ;;  %s9882_s4 = inlined_call_operand.vmem [shape: bf16[16,150], index: 4, kind: input, shape index: {}]   ;;  %s9883_s5 = inlined_call_operand.vmem [shape: f32[16,1], index: 5, kind: input, shape index: {}]   ;;  %s9884_s6 = inlined_call_operand.vmem [shape: bf16[196,25], index: 6, kind: input, shape index: {}]   ;;  %s9885_s7 = inlined_call_operand.vmem [shape: bf16[120,400], index: 7, kind: input, shape index: {}]   ;;  %s9886_s8 = inlined_call_operand.vmem [shape: f32[120,1], index: 8, kind: input, shape index: {}]   ;;  %s9887_s9 = inlined_call_operand.vmem [shape: bf16[84,120], index: 9, kind: input, shape index: {}]   ;;  %s9888_s10 = inlined_call_operand.vmem [shape: f32[84,1], index: 10, kind: input, shape index: {}]   ;;  %s9889_s11 = inlined_call_operand.vmem [shape: bf16[10,84], index: 11, kind: input, shape index: {}]   ;;  %s9890_s12 = inlined_call_operand.vmem [shape: f32[10,1], index: 12, kind: input, shape index: {}]   ;;  %s9891_s13 = inlined_call_operand.vmem [shape: f32[2,10,1], index: 13, kind: output, shape index: {}]  }
   0x1 LB: > { %s6279_s26 = sadd.s32 4294967295, %s7296_s25   ;;  %p6283_p0 = scmp.ge.s32.totalorder %s7296_s25, 1  ;;  %s7296_s25 = sphi %s7427_s25, %s23_s25  }
   0x2   : > { %p386_p1 = scmp.lt.s32.totalorder %s7296_s25, 3 }
   0x4   : > { %p387_p2 = pnand %p6283_p0, %p386_p1 }
   0x6   : > { %390 = sbr.rel (%p387_p2) target bundleno = 2555 (0x9fb), region = 72 }
   0xd   : > { %p429_p3 = scmp.lt.s32.totalorder %s6279_s26, 1  ;;  %v441_v0 = vlaneseq  ;;  %vm9893_vm0 = vcmask 1040384   ;;  %vm548_vm1 = vsmask.f32 256  ;;  %v7298_v1 = vmov 1966171168  }
   0xe   : > { %v502_v2 = vunpack.c.l.s4 %v7298_v1  ;;  %vm7436_vm2 = vmand %vm9893_vm0, %vm548_vm1  ;;  %vm550_vm3 = vcmask 1041409   ;;  %vm9894_vm4 = vsmask.f32 1280  ;;  %vm9896_vm5 = vcmask 1042434   ;;  %v578_v48 = vld [vmem:[#allocation2] sm:$0xff]  ;;  %s9923_s14 = smov 64  }
   0xf   : > { %s10222_s26 = smov (!%p429_p3, %s6279_s26), 1  ;;  %v7442_v4 = vshrl.u32 %v441_v0, 7  ;;  %vm7446_vm6 = vmand %vm550_vm3, %vm9894_vm4  ;;  %vm555_vm7 = vsmask.f32 2304  ;;  %vm9892_vm8 = vcmask 1043459   ;;  %vm9895_vm11 = vcmask 1044484  }
  0x10   : > { %v503_v6 = vunpack.c.0.s8 %v502_v2  ;;  %vm553_vm9 = vmor %vm7446_vm6, %vm7436_vm2  ;;  %vm559_vm10 = vsmask.f32 3328  ;;  %vm563_vm12 = vsmask.f32 4352  ;;  %s6284_s27 = sshll.u32 %s10222_s26, 3  ;;  %v10006_v19 = vmov 0 }
  0x11   : > { %v443_v7 = vsub.s32 0, %v7442_v4  ;;  %v447_v8 = vsub.s32 1, %v7442_v4  ;;  %v451_v9 = vsub.s32 2, %v7442_v4  ;;  %v455_v10 = vsub.s32 3, %v7442_v4  ;;  %vm7460_vm13 = vmand %vm9896_vm5, %vm555_vm7  ;;  %s432_s30 = scalar_lea.vmem %s9878_s0, %s6284_s27  ;;  %s7301_s15 = smov 126  }
  0x12   : > { %v459_v12 = vsub.s32 4, %v7442_v4  ;;  %v463_v13 = vsub.s32 5, %v7442_v4  ;;  %v467_v14 = vsub.s32 6, %v7442_v4  ;;  %v471_v15 = vsub.s32 7, %v7442_v4  ;;  %vm7478_vm14 = vmor %vm7460_vm13, %vm553_vm9  ;;  %v439_v17 = vld [vmem:[%s432_s30] sm:$0xff]  ;;  %s7302_s16 = smov 29  }
  0x13   : > { %v506_v18 = vsub.s32 %v503_v6, %v7442_v4  ;;  %vm7485_vm15 = vmand %vm9892_vm8, %vm559_vm10  ;;  %vm566_vm1 = vcmask 1045509   ;;  %vm567_vm7 = vsmask.f32 5376  ;;  %v444_v20 = vrot.slane %v439_v17, %v443_v7  ;;  %v584_v61 = vld [vmem:[#allocation2 + $0x8] sm:$0x3]  ;;  %s9916_s17 = smov 93  }
  0x14   : > { %v10007_v19 = vsel %vm7485_vm15, 4294967295, %v10006_v19  ;;  %v448_v21 = vrot.slane %v439_v17, %v447_v8  ;;  %v452_v22 = vrot.slane %v439_v17, %v451_v9  ;;  %v456_v23 = vrot.slane %v439_v17, %v455_v10  ;;  %vm561_vm9 = vmor %vm7485_vm15, %vm7478_vm14  ;;  %s9919_s18 = smov 124   ;;  %s9912_s19 = smov 31   ;;  %v639_v41 = vld [vmem:[#allocation3] sm:$0x11] }
  0x15   : > { %v460_v24 = vrot.slane %v439_v17, %v459_v12  ;;  %v464_v25 = vrot.slane %v439_v17, %v463_v13  ;;  %v468_v26 = vrot.slane %v439_v17, %v467_v14  ;;  %v472_v27 = vrot.slane %v439_v17, %v471_v15  ;;  %vm7495_vm10 = vmand %vm9895_vm11, %vm563_vm12  ;;  %s9918_s20 = smov 95   ;;  %s9914_s21 = smov 60   ;;  %v6891_v55 = vld [vmem:[%s9881_s3] ss:$8 sps:$4 sm:$0xff]   ;;  %v6917_v54 = vld [vmem:[%s9881_s3 + $0x84] ss:$8 sps:$4 sm:$0xff]  }
  0x16   : > { %v6287_v29 = vpack.c.bf16 %v448_v21, %v444_v20  ;;  %v6288_v30 = vpack.c.bf16 %v456_v23, %v452_v22  ;;  %vm7501_vm8 = vmor %vm7495_vm10, %vm561_vm9  ;;  %vm9897_vm0 = vcmask 1046534   ;;  %vm571_vm14 = vsmask.f32 6400  ;;  %s9910_s22 = smov 62   ;;  %s7309_s23 = smov 125  }
  0x17   : > { %v6289_v32 = vpack.c.bf16 %v464_v25, %v460_v24  ;;  %v6290_v33 = vpack.c.bf16 %v472_v27, %v468_v26  ;;  %vm7507_vm4 = vmand %vm566_vm1, %vm567_vm7  ;;  %v10012_v34 = vmov 0  ;;  %vm9898_vm12 = vcmask 1047559   ;;  %s7310_s24 = smov 127   ;;  %s9902_s27 = smov 94   ;;  %v6909_v59 = vld [vmem:[%s9881_s3 + $0x60] ss:$8 sps:$4 sm:$0xff]  }
  0x18   : > { %v10013_v34 = vsel %vm7507_vm4, 4294967295, %v10012_v34  ;;  %v507_v35 = vrot.slane %v6287_v29, %v506_v18  ;;  %v514_v36 = vrot.slane %v6288_v30, %v506_v18  ;;  %vm569_vm9 = vmor %vm7507_vm4, %vm7501_vm8  ;;  %vm575_vm11 = vsmask.f32 7424  ;;  %s9904_s28 = smov 96   ;;  %s9935_s29 = smov 63  }
  0x19   : > { %v7299_v37 = vmov 1935823168   ;;  %v521_v39 = vrot.slane %v6289_v32, %v506_v18  ;;  %v528_v40 = vrot.slane %v6290_v33, %v506_v18  ;;  %vm7516_vm5 = vmand %vm9897_vm0, %vm571_vm14  ;;  %vm991_vm14 = vsmask.f32 7942  ;;  %s9906_s30 = smov 92  }
  0x1a   : > { %v591_v38 = vunpack.c.l.s4 %v7299_v37  ;;  %v529_v42 = vcombine.low %v507_v35, %v514_v36  ;;  %vm7522_vm7 = vmor %vm7516_vm5, %vm569_vm9  ;;  %v10020_v50 = vmov 0  ;;  %vm993_vm9 = vsmask.f32 7958 }
  0x1b   : > { %v530_v45 = vcombine.low %v521_v39, %v528_v40  ;;  %vm7527_vm8 = vmand %vm9898_vm12, %vm575_vm11  ;;  %vm1224_vm4 = vsmask.f32 7946 }
  0x1c   : > { %v592_v44 = vunpack.c.0.s8 %v591_v38  ;;  %v537_v47 = vrot.slane %v529_v42, %v506_v18  ;;  %vm7535_vm0 = vmor %vm7495_vm10, %vm7436_vm2 }
  0x1d   : > { %v544_v49 = vrot.slane %v530_v45, %v506_v18  ;;  %v10021_v50 = vsel %vm7535_vm0, 4294967295, %v10020_v50  ;;  %vm577_vm11 = vmor %vm7527_vm8, %vm7522_vm7  ;;  %vm1226_vm0 = vsmask.f32 7962 }
  0x1e   : > { %v7544_v51 = vsub.s32 %v592_v44, %v7442_v4  ;;  %vm992_vm12 = vmand %vm550_vm3, %vm991_vm14  ;;  %vm10026_vm3 = vcmask 1042434  }
  0x1f   : > { %v545_v52 = vcombine.low %v537_v47, %v544_v49  ;;  %vm994_vm15 = vmand %vm566_vm1, %vm993_vm9  ;;  %vm10027_vm1 = vcmask 1046534   ;;  %vm10031_vm9 = vnez %v10013_v34 }
  0x20   : > { %vm7550_vm10 = vmor %vm994_vm15, %vm992_vm12 }
  0x21   : > { %v7548_v53 = vsel %vm577_vm11, %v545_v52, %v578_v48  ;;  %vm7559_vm7 = vmor %vm7516_vm5, %vm7460_vm13 }
  0x22   : > { %580 = vst [vmem:[#allocation2] sm:$0xff] %v7548_v53  ;;  %v1707_v56 = vrot.slane %v7548_v53, %v7544_v51  ;;  %v1012_v57 = vcombine.low %v7548_v53, %v7548_v53  ;;  %vm1225_vm15 = vmand %vm10026_vm3, %vm1224_vm4  ;;  %vm581_vm4 = vcmask 254977   ;;  %v1700_v35 = vcombine.high %v7548_v53, %v7548_v53  ;;  %v2877_v53 = vld [vmem:[#allocation3 + $0x40] sm:$0x44] }
  0x23   : > { %vm1227_vm12 = vmand %vm10027_vm1, %vm1226_vm0  ;;  %vm10030_vm0 = vsmask.f32 1280  ;;  %vm9997_vm3 = vcmask 1043456   ;;  %vm9927_vm1 = vcmask 760832  }
  0x24   : > { %v7570_v58 = vrot.slane %v1707_v56, %v7544_v51  ;;  %vm7572_vm14 = vmor %vm1227_vm12, %vm1225_vm15  ;;  %v1019_v60 = vrot.slane %v1012_v57, %v7544_v51  ;;  %v1715_v62 = vcombine.low %v1707_v56, %v1707_v56  ;;  %v1494_v3 = vcombine.high %v1707_v56, %v1707_v56 }
  0x25   : > { %vm582_vm5 = vmand %vm581_vm4, %vm10030_vm0  ;;  %v7672_v43 = vrot.slane %v1700_v35, %v7544_v51  ;;  %v2883_v35 = vld [vmem:[#allocation3 + $0x50] sm:$0x44]  ;;  %vm9934_vm15 = vcmask 1031168   ;;  %vm9924_vm12 = vcmask 523264   ;;  %vm9926_vm4 = vcmask 252928  }
  0x26   : > { %1762 = vrot.lane.b32.xlu1 %v7570_v58, %s9923_s14  ;;  %841 = vrot.lane.b32.xlu0 %v7570_v58, %s7301_s15  ;;  %v1035_v63 = vrot.slane %v1019_v60, %v7544_v51  ;;  %vm583_vm13 = vmor %vm582_vm5, %vm7436_vm2  ;;  %v7601_v2 = vrot.slane %v1715_v62, %v7544_v51  ;;  %v7607_v4 = vrot.slane %v1494_v3, %v7544_v51  ;;  %v944_v13 = vshll.u32 %v7570_v58, 16 }
  0x27   : > { %v585_v0 = vsel %vm583_vm13, 0, %v584_v61  ;;  %vm7593_vm11 = vmor %vm10031_vm9, %vm7446_vm6  ;;  %vm10034_vm2 = vnez %v10007_v19  ;;  %v1260_v9 = vcombine.low %v1019_v60, %v1019_v60  ;;  %v1027_v10 = vcombine.high %v1019_v60, %v1019_v60 }
  0x28   : > { %586 = vst [vmem:[#allocation2 + $0x8] sm:$0x3] %v585_v0  ;;  %vm7621_vm6 = vmor %vm7527_vm8, %vm10034_vm2  ;;  %v948_v14 = vshll.u32 %v7607_v4, 16  ;;  %v946_v17 = vrot.slane %v944_v13, 7  ;;  %v1413_v21 = vrot.slane %v944_v13, 5  ;;  %v1179_v23 = vrot.slane %v944_v13, 6 }
  0x29   : > { %v1268_v12 = vrot.slane %v1260_v9, %v7544_v51  ;;  %v1042_v15 = vrot.slane %v1027_v10, %v7544_v51  ;;  %v7662_v34 = vld [vmem:[#allocation2] sm:$0xff]  ;;  %vm10037_vm8 = vnez %v10021_v50  ;;  %v795_v49 = vcombine.low %v7672_v43, %v7672_v43  ;;  %v642_v9 = vld [vmem:[#allocation3 + $0x8] sm:$0x11] }
  0x2a   : > { %2665 = vrot.lane.b32.xlu1 %v7570_v58, %s7302_s16  ;;  %1538 = vrot.lane.b32.xlu0 %v7570_v58, %s9916_s17  ;;  %v950_v18 = vrot.slane %v948_v14, 7  ;;  %v6790_v20 = vpack.i.bf16 %v948_v14, %v944_v13  ;;  %v1417_v24 = vrot.slane %v948_v14, 5  ;;  %v1183_v25 = vrot.slane %v948_v14, 6  ;;  %v6918_v50 = vld [vmem:[%s9881_s3 + $0x90] ss:$8 sps:$4 sm:$0xff]  }
  0x2b   : > { %v596_v40 = vrot.slane %v7662_v34, %v7544_v51  ;;  %v816_v57 = vrot.slane %v795_v49, %v7544_v51  ;;  %v7698_v62 = vrot.slane %v7672_v43, %v7544_v51  ;;  %v9940_v10 = vmov 0  }
  0x2c   : > { %v6795_v22 = vpack.i.bf16 %v950_v18, %v946_v17  ;;  %v6805_v27 = vpack.i.bf16 %v1417_v24, %v1413_v21  ;;  %v6800_v28 = vpack.i.bf16 %v1183_v25, %v1179_v23  ;;  %3498 = vmatprep.mubr.bf16.mxu0 %v9940_v10  ;;  %6880 = vset.pattern.permute.xlu1 %v9940_v10  ;;  %vm9925_vm0 = vcmask 236544  }
  0x2d   : > { %v612_v42 = vrot.slane %v596_v40, %v7544_v51  ;;  %v604_v0 = vcombine.high %v596_v40, %v596_v40  ;;  %v952_v14 = vshll.u32 %v7698_v62, 16  ;;  %3621 = vmatprep.mubr.bf16.mxu1 %v9940_v10  ;;  %6881 = vset.pattern.permute.xlu0 %v9940_v10  ;;  %v1495_v25 = vcombine.high %v7672_v43, %v7672_v43 }
  0x2e   : > { %1072 = vrot.lane.b32.xlu1 %v1035_v63, %s9919_s18  ;;  %2441 = vrot.lane.b32.xlu0 %v7570_v58, %s9912_s19  ;;  %vm9930_vm5 = vcmask 777216   ;;  %vm9932_vm13 = vcmask 1014784   ;;  %vm9931_vm9 = vcmask 490496   ;;  %vm9933_vm2 = vcmask 506880  }
  0x2f   : > { %v7609_v5 = vld [vmem:[#allocation2 + $0x1] sm:$0xff]  ;;  %v640_v47 = vsel %vm10037_vm8, %v612_v42, %v639_v41  ;;  %v954_v18 = vrot.slane %v952_v14, 7  ;;  %v1421_v23 = vrot.slane %v952_v14, 5  ;;  %v1187_v24 = vrot.slane %v952_v14, 6 }
  0x30   : > { %v3015_v6 = vcombine.low %v7609_v5, %v7609_v5  ;;  %v7646_v26 = vrot.slane %v7609_v5, %v7544_v51  ;;  %v7674_v44 = vld [vmem:[#allocation2 + $0x1] sm:$0xff]  ;;  %641 = vst [vmem:[#allocation3] sm:$0x11] %v640_v47  ;;  %v3119_v60 = vcombine.high %v7609_v5, %v7609_v5 }
  0x31   : > { %v2828_v48 = vcombine.low %v7674_v44, %v7674_v44 }
  0x32   : > { %1308 = vrot.lane.b32.xlu1 %v1035_v63, %s9918_s20  ;;  %839 = vrot.lane.b32.xlu0 %v7601_v2, %s7301_s15  ;;  %v3022_v8 = vrot.slane %v3015_v6, %v7544_v51  ;;  %v3134_v29 = vcombine.high %v7646_v26, %v7646_v26  ;;  %v7654_v30 = vrot.slane %v7646_v26, %v7544_v51 }
  0x33   : > { %v2835_v52 = vrot.slane %v2828_v48, %v7544_v51  ;;  %v3031_v13 = vcombine.low %v7646_v26, %v7646_v26 }
  0x34   : > { %v3045_v11 = vrot.slane %v3022_v8, %v7544_v51  ;;  %v3030_v16 = vcombine.low %v3022_v8, %v3022_v8  ;;  %v3149_v31 = vrot.slane %v3134_v29, %v7544_v51  ;;  %v3179_v32 = vshll.u32 %v7654_v30, 16 }
  0x35   : > { %v2851_v56 = vrot.slane %v2835_v52, %v7544_v51  ;;  %v2843_v3 = vcombine.high %v2835_v52, %v2835_v52  ;;  %v619_v8 = vrot.slane %v604_v0, %v7544_v51  ;;  %v3052_v17 = vrot.slane %v3031_v13, %v7544_v51 }
  0x36   : > { %1540 = vrot.lane.b32.xlu1 %v7607_v4, %s9916_s17  ;;  %1760 = vrot.lane.b32.xlu0 %v7601_v2, %s9923_s14  ;;  %v3038_v19 = vrot.slane %v3030_v16, %v7544_v51  ;;  %v3183_v33 = vshll.u32 %v3149_v31, 16  ;;  %v3181_v36 = vrot.slane %v3179_v32, 5  ;;  %v2955_v37 = vrot.slane %v3179_v32, 6 }
  0x37   : > { %v2878_v61 = vsel %vm7559_vm7, %v2851_v56, %v2877_v53  ;;  %v2858_v6 = vrot.slane %v2843_v3, %v7544_v51  ;;  %v1523_v29 = vrot.slane %v1495_v25, %v7544_v51  ;;  %v868_v56 = vld [vmem:[#allocation3] sm:$0x22] }
  0x38   : > { %v3185_v38 = vrot.slane %v3183_v33, 5  ;;  %v2959_v39 = vrot.slane %v3183_v33, 6  ;;  %2879 = vst [vmem:[#allocation3 + $0x40] sm:$0x44] %v2878_v61 }
  0x39   : > { %v7786_v43 = vshll.u32 %v1523_v29, 16 }
  0x3a   : > { %2217 = vrot.lane.b32.xlu1 %v1035_v63, %s9914_s21  ;;  %1987 = vrot.lane.b32.xlu0 %v1035_v63, %s9910_s22  ;;  %v6845_v45 = vpack.i.bf16 %v3185_v38, %v3181_v36  ;;  %v6840_v46 = vpack.i.bf16 %v2959_v39, %v2955_v37  ;;  %v3133_v63 = vrot.slane %v3119_v60, %v7544_v51 }
  0x3b   : > { %v7797_v48 = vrot.slane %v7786_v43, 7  ;;  %v1191_v60 = vrot.slane %v7786_v43, 6 }
  0x3c   : > { %v3156_v5 = vrot.slane %v3133_v63, %v7544_v51  ;;  %v2909_v26 = vcombine.high %v3133_v63, %v3133_v63 }
  0x3e   : > { %2443 = vrot.lane.b32.xlu1 %v7607_v4, %s9912_s19  ;;  %2663 = vrot.lane.b32.xlu0 %v7601_v2, %s7302_s16  ;;  %v3187_v16 = vshll.u32 %v3156_v5, 16 }
  0x42   : > { %3078 = vrot.lane.b32.xlu1 %v3045_v11, %s7301_s15  ;;  %1306 = vrot.lane.b32.xlu0 %v1268_v12, %s9918_s20  ;;  %v2880_v11 = vld [vmem:[#allocation3 + $0x48] sm:$0x44] }
  0x46   : > { %1074 = vrot.lane.b32.xlu1 %v1042_v15, %s9919_s18  ;;  %2215 = vrot.lane.b32.xlu0 %v1268_v12, %s9914_s21  ;;  %v643_v12 = vsel %vm10037_vm8, %v619_v8, %v642_v9 }
  0x47   : > { %644 = vst [vmem:[#allocation3 + $0x8] sm:$0x11] %v643_v12  ;;  %v1788_v12 = vld [vmem:[#allocation3 + $0x20] sm:$0x22] }
  0x4a   : > { %1989 = vrot.lane.b32.xlu1 %v1042_v15, %s9910_s22  ;;  %3076 = vrot.lane.b32.xlu0 %v3038_v19, %s7301_s15  ;;  %v2881_v15 = vsel %vm7559_vm7, %v2858_v6, %v2880_v11  ;;  %v3189_v19 = vrot.slane %v3187_v16, 5  ;;  %v1566_v11 = vld [vmem:[#allocation3 + $0x20] sm:$0x11] }
  0x4b   : > { %2882 = vst [vmem:[#allocation3 + $0x48] sm:$0x44] %v2881_v15 }
  0x4c   : > { %v6855_v21 = vpack.i.bf16 %v3189_v19, %v954_v18 }
  0x4e   : > { %6796 = vrot.lane.b32.xlu1 %v6795_v22, %s7309_s23  ;;  %6791 = vrot.lane.b32.xlu0 %v6790_v20, %s7310_s24 }
  0x52   : > { %6806 = vrot.lane.b32.xlu1 %v6805_v27, %s9902_s27  ;;  %6801 = vrot.lane.b32.xlu0 %v6800_v28, %s9904_s28  ;;  %s9908_s27 = smov 32   ;;  %s9929_s28 = smov 61  }
  0x56   : > { %6816 = vrot.lane.b32.xlu1 %v6795_v22, %s9935_s29  ;;  %6811 = vrot.lane.b32.xlu0 %v6790_v20, %s9906_s30  ;;  %s9921_s30 = smov 28  }
  0x5a   : > { %6826 = vrot.lane.b32.xlu1 %v6805_v27, %s9908_s27  ;;  %6821 = vrot.lane.b32.xlu0 %v6800_v28, %s9929_s28  ;;  %s9928_s27 = smov 30   ;;  %v7751_v27 = vrot.slane %v7674_v44, %v7544_v51 }
  0x5c   : > { %v2865_v32 = vrot.slane %v7751_v27, %v7544_v51 }
  0x5e   : > { %6836 = vrot.lane.b32.xlu1 %v6795_v22, %s9921_s30  ;;  %6831 = vrot.lane.b32.xlu0 %v6790_v20, %s9928_s27  ;;  %v2963_v20 = vrot.slane %v3187_v16, 6  ;;  %v2884_v38 = vsel %vm7559_vm7, %v2865_v32, %v2883_v35  ;;  %v2691_v35 = vld [vmem:[#allocation3 + $0x40] sm:$0x22] }
  0x5f   : > { %2885 = vst [vmem:[#allocation3 + $0x50] sm:$0x44] %v2884_v38 }
  0x60   : > { %v6850_v22 = vpack.i.bf16 %v2963_v20, %v952_v14 }
  0x62   : > { %6846 = vrot.lane.b32.xlu1 %v6845_v45, %s7309_s23  ;;  %6841 = vrot.lane.b32.xlu0 %v6840_v46, %s7310_s24 }
  0x66   : > { %3302 = vrot.lane.b32.xlu1 %v3149_v31, %s9919_s18  ;;  %3300 = vrot.lane.b32.xlu0 %v7654_v30, %s9919_s18  ;;  %v7758_v31 = vrot.slane %v2909_v26, %v7544_v51 }
  0x68   : > { %v2965_v40 = vshll.u32 %v7758_v31, 16 }
  0x6a   : > { %1076 = vrot.lane.b32.xlu1 %v7570_v58, %s9919_s18  ;;  %843 = vrot.lane.b32.xlu0 %v816_v57, %s7301_s15  ;;  %v2967_v44 = vrot.slane %v2965_v40, 6 }
  0x6c   : > { %v6860_v47 = vpack.i.bf16 %v2967_v44, %v7786_v43 }
  0x6e   : > { %1542 = vrot.lane.b32.xlu1 %v7698_v62, %s9916_s17  ;;  %1310 = vrot.lane.b32.xlu0 %v7601_v2, %s9918_s20  ;;  %s10041_s17 = smov 32  }
  0x72   : > { %1991 = vrot.lane.b32.xlu1 %v7570_v58, %s9910_s22  ;;  %1764 = vrot.lane.b32.xlu0 %v816_v57, %s9923_s14  ;;  %s10038_s22 = smov 94  }
  0x76   : > { %2445 = vrot.lane.b32.xlu1 %v7698_v62, %s9912_s19  ;;  %2219 = vrot.lane.b32.xlu0 %v7601_v2, %s9914_s21  ;;  %s10039_s19 = smov 96   ;;  %s10040_s21 = smov 92   ;;  %v589_v2 = vcombine.high %v7662_v34, %v7662_v34  ;;  %v645_v34 = vld [vmem:[#allocation3 + $0x10] sm:$0x11] }
  0x78   : > { %v7754_v28 = vrot.slane %v589_v2, %v7544_v51 }
  0x7a   : > { %3080 = vrot.lane.b32.xlu1 %v3052_v17, %s7301_s15  ;;  %2667 = vrot.lane.b32.xlu0 %v816_v57, %s7302_s16  ;;  %v626_v33 = vrot.slane %v7754_v28, %v7544_v51 }
  0x7c   : > { %v646_v39 = vsel %vm10037_vm8, %v626_v33, %v645_v34 }
  0x7d   : > { %647 = vst [vmem:[#allocation3 + $0x10] sm:$0x11] %v646_v39 }
  0x7e   : > { %6856 = vrot.lane.b32.xlu1 %v6855_v21, %s7309_s23  ;;  %6851 = vrot.lane.b32.xlu0 %v6850_v22, %s7310_s24  ;;  %v6292_v21 = vld.sshfl [vmem:[#allocation2 + $0x8] sm:$0x1 pattern:$0x73625140] }
  0x7f   : > { %v6886_v22 = vld [vmem:[#allocation2 + $0x8] ss:$0 sps:$4 sm:$0x11]   ;;  %v831_v26 = vcombine.low %v6292_v21, %v6292_v21 }
  0x80   : > { %v1297_v39 = vrot.slane %v6886_v22, %v7544_v51 }
  0x82   : > { %1434 = vrot.lane.b32.xlu1 %v1421_v23, %s10038_s22  ;;  %1200 = vrot.lane.b32.xlu0 %v1187_v24, %s10039_s19 }
  0x86   : > { %1887 = vrot.lane.b32.xlu1 %v954_v18, %s9935_s29  ;;  %1660 = vrot.lane.b32.xlu0 %v952_v14, %s10040_s21 }
  0x8a   : > { %2342 = vrot.lane.b32.xlu1 %v1421_v23, %s10041_s17  ;;  %2114 = vrot.lane.b32.xlu0 %v1187_v24, %s9929_s28  ;;  %v6884_v23 = vld [vmem:[#allocation2 + $0x8] ss:$0 sps:$4 sm:$0x11]   ;;  %v2469_v24 = vld [vmem:[#allocation3 + $0x40] sm:$0x11] }
  0x8e   : > { %2790 = vrot.lane.b32.xlu1 %v954_v18, %s9921_s30  ;;  %2563 = vrot.lane.b32.xlu0 %v952_v14, %s9928_s27  ;;  %s10044_s30 = smov 62  }
  0x92   : > { %845 = vrot.lane.b32.xlu1 %v7698_v62, %s7301_s15  ;;  %3304 = vrot.lane.b32.xlu0 %v3156_v5, %s9919_s18 }
  0x96   : > { %1312 = vrot.lane.b32.xlu1 %v7570_v58, %s9918_s20  ;;  %1078 = vrot.lane.b32.xlu0 %v7607_v4, %s9919_s18  ;;  %s10042_s20 = smov 93   ;;  %s10043_s18 = smov 60  }
  0x98   : > { %v7768_v36 = vpop.permute.xlu1 %1762  ;;  %v7770_v37 = vpop.permute.xlu0 %841 }
  0x99   : > { %v9957_v52 = vrot.slane %v7770_v37, 4 }
  0x9a   : > { %1766 = vrot.lane.b32.xlu1 %v7698_v62, %s9923_s14  ;;  %1544 = vrot.lane.b32.xlu0 %v1523_v29, %s10042_s20  ;;  %s10045_s14 = smov 31  }
  0x9c   : > { %v7780_v41 = vpop.permute.xlu1 %2665  ;;  %v1539_v42 = vpop.permute.xlu0 %1538 }
  0x9d   : > { %v1548_v5 = vrot.slane %v1539_v42, 4  ;;  %v9944_v32 = vrot.slane %v7780_v41, 4 }
  0x9e   : > { %2221 = vrot.lane.b32.xlu1 %v7570_v58, %s10043_s18  ;;  %1993 = vrot.lane.b32.xlu0 %v7607_v4, %s10044_s30  ;;  %v3193_v58 = vrot.slane %v2965_v40, 5  ;;  %v6888_v40 = vld [vmem:[#allocation2 + $0x8] ss:$0 sps:$4 sm:$0x11]  }
  0xa0   : > { %v7788_v45 = vpop.permute.xlu1 %1072  ;;  %v7790_v46 = vpop.permute.xlu0 %2441  ;;  %v6865_v57 = vpack.i.bf16 %v3193_v58, %v7797_v48  ;;  %v6889_v58 = vld [vmem:[#allocation2 + $0x9] ss:$0 sps:$4 sm:$0x11]  }
  0xa1   : > { %v2451_v33 = vrot.slane %v7790_v46, 4 }
  0xa2   : > { %2669 = vrot.lane.b32.xlu1 %v7698_v62, %s7302_s16  ;;  %2447 = vrot.lane.b32.xlu0 %v1523_v29, %s10045_s14  ;;  %v9952_v62 = vrot.slane %v7768_v36, 4  ;;  %v6887_v29 = vld [vmem:[#allocation2 + $0x8] ss:$0 sps:$4 sm:$0x11]  }
  0xa4   : > { %v7799_v49 = vpop.permute.xlu1 %1308  ;;  %v840_v4 = vpop.permute.xlu0 %839 }
  0xa5   : > { %v849_v53 = vrot.slane %v840_v4, 4 }
  0xa6   : > { %3082 = vrot.lane.b32.xlu0 %v7654_v30, %s7301_s15  ;;  %6861 = vrot.lane.b32.xlu1 %v6860_v47, %s7310_s24  ;;  %v1425_v30 = vrot.slane %v7786_v43, 5  ;;  %v1064_v47 = vrot.slane %v6884_v23, %v7544_v51 }
  0xa7   : > { %v854_v61 = vsel %vm9997_vm3, %v849_v53, %v9957_v52 }
  0xa8   : > { %v856_v63 = vsel %vm9934_vm15, %v840_v4, %v854_v61  ;;  %v7812_v0 = vpop.permute.xlu1 %1540  ;;  %v1761_v3 = vpop.permute.xlu0 %1760  ;;  %v9954_v61 = vrot.slane %v7799_v49, 4 }
  0xa9   : > { %v869_v6 = vsel %vm7593_vm11, %v856_v63, %v868_v56  ;;  %v9955_v8 = vrot.slane %v7812_v0, 4  ;;  %v1770_v9 = vrot.slane %v1761_v3, 4 }
  0xaa   : > { %870 = vst [vmem:[#allocation3] sm:$0x22] %v869_v6  ;;  %6866 = vrot.lane.b32.xlu0 %v6865_v57, %s7309_s23  ;;  %1202 = vrot.lane.b32.xlu1 %v1191_v60, %s10039_s19  ;;  %v7870_v6 = vrot.slane %v831_v26, %v7544_v51 }
  0xab   : > { %v1553_v13 = vsel %vm9997_vm3, %v1548_v5, %v9955_v8  ;;  %v1775_v14 = vsel %vm9997_vm3, %v1770_v9, %v9952_v62  ;;  %v1298_v9 = vcombine.low %v1297_v39, %v1297_v39 }
  0xac   : > { %v1555_v15 = vsel %vm9927_vm1, %v1539_v42, %v1553_v13  ;;  %v1777_v16 = vsel %vm9924_vm12, %v1761_v3, %v1775_v14  ;;  %v7828_v17 = vpop.permute.xlu1 %2217  ;;  %v7830_v18 = vpop.permute.xlu0 %1987  ;;  %vm760_vm12 = vsmask.f32 7954  ;;  %v1071_v13 = vrot.slane %v1064_v47, %v7544_v51 }
  0xad   : > { %v1567_v19 = vsel %vm10037_vm8, %v1555_v15, %v1566_v11  ;;  %v1789_v20 = vsel %vm7593_vm11, %v1777_v16, %v1788_v12  ;;  %v2206_v11 = vrot.slane %v6888_v40, %v7544_v51  ;;  %v3067_v14 = vrot.slane %v6889_v58, %v7544_v51  ;;  %v6306_v15 = vld.sshfl [vmem:[#allocation2 + $0x9] sm:$0x1 pattern:$0x73625140] }
  0xae   : > { %1568 = vst [vmem:[#allocation3 + $0x20] sm:$0x11] %v1567_v19  ;;  %1790 = vst [vmem:[#allocation3 + $0x20] sm:$0x22] %v1789_v20  ;;  %1436 = vrot.lane.b32.xlu0 %v1425_v30, %s10038_s22  ;;  %1662 = vrot.lane.b32.xlu1 %v7786_v43, %s10040_s21  ;;  %v7883_v20 = vrot.slane %v6292_v21, %v7544_v51  ;;  %v9948_v23 = vrot.slane %v7828_v17, 4  ;;  %v1305_v21 = vrot.slane %v1298_v9, %v7544_v51 }
  0xaf   : > { %v7901_v39 = vrot.slane %v6306_v15, %v7544_v51 }
  0xb0   : > { %v7839_v2 = vpop.permute.xlu1 %2443  ;;  %v2664_v25 = vpop.permute.xlu0 %2663 }
  0xb1   : > { %v9949_v34 = vrot.slane %v7839_v2, 4  ;;  %v2673_v38 = vrot.slane %v2664_v25, 4  ;;  %v2969_v9 = vshll.u32 %v7901_v39, 16 }
  0xb2   : > { %1889 = vrot.lane.b32.xlu0 %v7797_v48, %s9935_s29  ;;  %2116 = vrot.lane.b32.xlu1 %v1191_v60, %s9929_s28  ;;  %v1979_v60 = vrot.slane %v6887_v29, %v7544_v51  ;;  %v1101_v29 = vld [vmem:[#allocation3] sm:$0x44]  ;;  %s10047_s28 = smov 124   ;;  %s10054_s29 = smov 95  }
  0xb3   : > { %v2456_v42 = vsel %vm9997_vm3, %v2451_v33, %v9949_v34  ;;  %v2678_v44 = vsel %vm9997_vm3, %v2673_v38, %v9944_v32  ;;  %v2243_v33 = vld [vmem:[#allocation3 + $0x20] sm:$0x88]  ;;  %v7898_v38 = vshll.u32 %v7883_v20, 16 }
  0xb4   : > { %v2458_v4 = vsel %vm9926_vm4, %v7790_v46, %v2456_v42  ;;  %v2680_v53 = vsel %vm9925_vm0, %v2664_v25, %v2678_v44  ;;  %v7858_v56 = vpop.permute.xlu1 %3078  ;;  %v1307_v57 = vpop.permute.xlu0 %1306  ;;  %v1335_v46 = vld [vmem:[#allocation3] sm:$0x88]  ;;  %vm758_vm0 = vsmask.f32 7938  ;;  %vm1458_vm4 = vsmask.f32 7950 }
  0xb5   : > { %v2470_v63 = vsel %vm10037_vm8, %v2458_v4, %v2469_v24  ;;  %v2692_v3 = vsel %vm7593_vm11, %v2680_v53, %v2691_v35  ;;  %v1316_v5 = vrot.slane %v1307_v57, 4  ;;  %v7886_v22 = vrot.slane %v1979_v60, %v7544_v51 }
  0xb6   : > { %2471 = vst [vmem:[#allocation3 + $0x40] sm:$0x11] %v2470_v63  ;;  %2693 = vst [vmem:[#allocation3 + $0x40] sm:$0x22] %v2692_v3  ;;  %2344 = vrot.lane.b32.xlu0 %v1425_v30, %s10041_s17  ;;  %2565 = vrot.lane.b32.xlu1 %v7786_v43, %s9928_s27  ;;  %v1082_v30 = vrot.slane %v7788_v45, 4  ;;  %s10046_s27 = smov 28   ;;  %v2207_v35 = vcombine.low %v2206_v11, %v2206_v11  ;;  %v3068_v42 = vcombine.low %v3067_v14, %v3067_v14 }
  0xb7   : > { %v1321_v12 = vsel %vm9997_vm3, %v1316_v5, %v9954_v61  ;;  %v9945_v44 = vrot.slane %v7858_v56, 4  ;;  %v2015_v63 = vld [vmem:[#allocation3 + $0x20] sm:$0x44] }
  0xb8   : > { %v1323_v43 = vsel %vm9930_vm5, %v1307_v57, %v1321_v12  ;;  %v7880_v16 = vpop.permute.xlu1 %1074  ;;  %v2216_v19 = vpop.permute.xlu0 %2215  ;;  %v7935_v14 = vrot.slane %v3068_v42, %v7544_v51 }
  0xb9   : > { %v1336_v24 = vsel %vm7621_vm6, %v1323_v43, %v1335_v46  ;;  %v9960_v25 = vrot.slane %v7880_v16, 4  ;;  %v2225_v26 = vrot.slane %v2216_v19, 4  ;;  %v3103_v46 = vld [vmem:[#allocation3 + $0x40] sm:$0x88] }
  0xba   : > { %1337 = vst [vmem:[#allocation3] sm:$0x88] %v1336_v24  ;;  %2792 = vrot.lane.b32.xlu0 %v7797_v48, %s10046_s27  ;;  %3306 = vrot.lane.b32.xlu1 %v7758_v31, %s10047_s28  ;;  %v1997_v31 = vrot.slane %v7830_v18, 4  ;;  %v605_v24 = vcombine.high %v7754_v28, %v7754_v28 }
  0xbb   : > { %v1087_v40 = vsel %vm9997_vm3, %v1082_v30, %v9960_v25  ;;  %v2230_v48 = vsel %vm9997_vm3, %v2225_v26, %v9948_v23 }
  0xbc   : > { %v1089_v47 = vsel %vm9932_vm13, %v7788_v45, %v1087_v40  ;;  %v2232_v58 = vsel %vm9931_vm9, %v2216_v19, %v2230_v48  ;;  %v7914_v4 = vpop.permute.xlu1 %1989  ;;  %v3077_v53 = vpop.permute.xlu0 %3076  ;;  %v7925_v45 = vrot.slane %v2207_v35, %v7544_v51  ;;  %v2844_v19 = vcombine.high %v7751_v27, %v7751_v27 }
  0xbd   : > { %v1102_v57 = vsel %vm7559_vm7, %v1089_v47, %v1101_v29  ;;  %v2244_v60 = vsel %vm7621_vm6, %v2232_v58, %v2243_v33  ;;  %v9953_v3 = vrot.slane %v7914_v4, 4  ;;  %v3086_v5 = vrot.slane %v3077_v53, 4 }
  0xbe   : > { %1103 = vst [vmem:[#allocation3] sm:$0x44] %v1102_v57  ;;  %2245 = vst [vmem:[#allocation3 + $0x20] sm:$0x88] %v2244_v60  ;;  %847 = vrot.lane.b32.xlu0 %v7870_v6, %s7301_s15  ;;  %1080 = vrot.lane.b32.xlu1 %v1071_v13, %s10047_s28  ;;  %vm10048_vm9 = vcmask 1044484   ;;  %v2872_v48 = vrot.slane %v2844_v19, %v7544_v51  ;;  %v633_v42 = vrot.slane %v605_v24, %v7544_v51  ;;  %vm10059_vm13 = vcmask 1047559  }
  0xbf   : > { %v2002_v11 = vsel %vm9997_vm3, %v1997_v31, %v9953_v3  ;;  %v3091_v12 = vsel %vm9997_vm3, %v3086_v5, %v9945_v44  ;;  %vm7950_vm1 = vmand %vm10048_vm9, %vm760_vm12  ;;  %vm10055_vm12 = vcmask 1043459   ;;  %v648_v57 = vld [vmem:[#allocation3 + $0x18] sm:$0x11]  ;;  %v763_v24 = vld [vmem:[#allocation3] sm:$0x11]  ;;  %v3197_v31 = vrot.slane %v2969_v9, 5 }
  0xc0   : > { %v2004_v13 = vsel %vm9933_vm2, %v7830_v18, %v2002_v11  ;;  %v3092_v15 = vsel %vm9934_vm15, %v3077_v53, %v3091_v12  ;;  %v7940_v30 = vpop.permute.xlu1 %6796  ;;  %v7942_v43 = vpop.permute.xlu0 %6791  ;;  %vm10051_vm2 = vcmask 1040384   ;;  %vm7975_vm9 = vmand %vm10055_vm12, %vm1458_vm4  ;;  %v9962_v53 = vrot.slane %v7898_v38, 6  ;;  %v2886_v12 = vld [vmem:[#allocation3 + $0x58] sm:$0x44] }
  0xc1   : > { %v2016_v18 = vsel %vm7559_vm7, %v2004_v13, %v2015_v63  ;;  %v3104_v29 = vsel %vm7621_vm6, %v3092_v15, %v3103_v46  ;;  %v9939_v33 = vunpack.i.h.bf16 %v7940_v30  ;;  %v6798_v35 = vunpack.i.l.bf16 %v7940_v30  ;;  %vm7962_vm15 = vmand %vm10051_vm2, %vm758_vm0 }
  0xc2   : > { %2017 = vst [vmem:[#allocation3 + $0x20] sm:$0x44] %v2016_v18  ;;  %3105 = vst [vmem:[#allocation3 + $0x40] sm:$0x88] %v3104_v29  ;;  %v9936_v28 = vunpack.i.h.bf16 %v7942_v43  ;;  %v6793_v40 = vunpack.i.l.bf16 %v7942_v43  ;;  %1314 = vrot.lane.b32.xlu0 %v1305_v21, %s10054_s29  ;;  %1546 = vrot.lane.b32.xlu1 %v7883_v20, %s10042_s20  ;;  %vm1899_vm0 = vcmask 515072   ;;  %v7984_v21 = vrot.slane %v7898_v38, 7 }
  0xc3   : > { %v7981_v47 = vrot.slane %v9939_v33, 4  ;;  %v973_v58 = vrot.slane %v6798_v35, 4  ;;  %vm10058_vm2 = vsmask.f32 7966  ;;  %vm1672_vm4 = vcmask 752640   ;;  %s10065_s20 = smov 64  }
  0xc4   : > { %vm7989_vm5 = vmand %vm10059_vm13, %vm10058_vm2  ;;  %v7995_v60 = vrot.slane %v9936_v28, 4  ;;  %v739_v63 = vrot.slane %v6793_v40, 4  ;;  %v7997_v5 = vpop.permute.xlu1 %6806  ;;  %v7999_v46 = vpop.permute.xlu0 %6801  ;;  %v8003_v11 = vrot.slane %v2969_v9, 6  ;;  %v649_v13 = vsel %vm10037_vm8, %v633_v42, %v648_v57  ;;  %v996_v57 = vld [vmem:[#allocation3] sm:$0x22]  ;;  %s7323_s29 = smov 85  }
  0xc5   : > { %v978_v15 = vsel %vm9997_vm3, %v973_v58, %v7981_v47  ;;  %vm8013_vm13 = vmor %vm7950_vm1, %vm7962_vm15  ;;  %v9938_v18 = vunpack.i.h.bf16 %v7997_v5  ;;  %v6808_v29 = vunpack.i.l.bf16 %v7997_v5  ;;  %v9937_v28 = vunpack.i.h.bf16 %v7999_v46  ;;  %650 = vst [vmem:[#allocation3 + $0x18] sm:$0x11] %v649_v13 }
  0xc6   : > { %vm10064_vm12 = vcmask 1022976   ;;  %v745_v27 = vsel %vm9997_vm3, %v739_v63, %v7995_v60  ;;  %v6803_v26 = vunpack.i.l.bf16 %v7999_v46  ;;  %1768 = vrot.lane.b32.xlu0 %v7870_v6, %s10065_s20  ;;  %1995 = vrot.lane.b32.xlu1 %v7886_v22, %s10044_s30  ;;  %v2887_v58 = vsel %vm7559_vm7, %v2872_v48, %v2886_v12  ;;  %vm8041_vm2 = vmor %vm7989_vm5, %vm7975_vm9  ;;  %s7324_s30 = smov 114   ;;  %s7325_s20 = smov 72  }
  0xc7   : > { %v980_v42 = vsel %vm10064_vm12, %v6798_v35, %v978_v15  ;;  %vm10066_vm15 = vcmask 1039360   ;;  %v8035_v15 = vrot.slane %v9938_v18, 4  ;;  %v1440_v63 = vrot.slane %v6808_v29, 4  ;;  %2888 = vst [vmem:[#allocation3 + $0x58] sm:$0x44] %v2887_v58 }
  0xc8   : > { %v997_v13 = vsel %vm7550_vm10, %v980_v42, %v996_v57  ;;  %v747_v35 = vsel %vm10066_vm15, %v6793_v40, %v745_v27  ;;  %vm2354_vm1 = vcmask 261120   ;;  %v8049_v40 = vrot.slane %v9937_v28, 4  ;;  %v8051_v42 = vpop.permute.xlu1 %6816  ;;  %v8053_v57 = vpop.permute.xlu0 %6811 }
  0xc9   : > { %998 = vst [vmem:[#allocation3] sm:$0x22] %v997_v13  ;;  %v764_v48 = vsel %vm8013_vm13, %v747_v35, %v763_v24  ;;  %v1206_v12 = vrot.slane %v6803_v26, 4  ;;  %vm2126_vm12 = vcmask 498688   ;;  %v1445_v51 = vsel %vm9997_vm3, %v1440_v63, %v8035_v15  ;;  %v1463_v35 = vld [vmem:[#allocation3] sm:$0x88] }
  0xca   : > { %765 = vst [vmem:[#allocation3] sm:$0x11] %v764_v48  ;;  %v9943_v27 = vunpack.i.h.bf16 %v8051_v42  ;;  %v6818_v24 = vunpack.i.l.bf16 %v8051_v42  ;;  %v9942_v58 = vunpack.i.h.bf16 %v8053_v57  ;;  %vm10069_vm5 = vcmask 769024   ;;  %2223 = vrot.lane.b32.xlu0 %v7925_v45, %s10043_s18  ;;  %2449 = vrot.lane.b32.xlu1 %v7883_v20, %s10045_s14  ;;  %v1229_v48 = vld [vmem:[#allocation3] sm:$0x44]  ;;  %s10072_s14 = smov 63  }
  0xcb   : > { %v1447_v13 = vsel %vm10069_vm5, %v6808_v29, %v1445_v51  ;;  %v1211_v28 = vsel %vm9997_vm3, %v1206_v12, %v8049_v40  ;;  %v6813_v18 = vunpack.i.l.bf16 %v8053_v57  ;;  %v9961_v9 = vrot.slane %v7898_v38, 5  ;;  %v3225_v52 = vld [vmem:[#allocation3 + $0x40] sm:$0x88]  ;;  %s7329_s18 = smov 100  }
  0xcc   : > { %v1464_v63 = vsel %vm8041_vm2, %v1447_v13, %v1463_v35  ;;  %vm10070_vm9 = vcmask 785408   ;;  %v8076_v51 = vrot.slane %v9943_v27, 4  ;;  %v1893_v12 = vrot.slane %v6818_v24, 4  ;;  %v8084_v10 = vpop.permute.xlu1 %6826  ;;  %v8086_v13 = vpop.permute.xlu0 %6821 }
  0xcd   : > { %v1213_v29 = vsel %vm10070_vm9, %v6803_v26, %v1211_v28  ;;  %vm9963_vm15 = vcmask 228352   ;;  %1465 = vst [vmem:[#allocation3] sm:$0x88] %v1464_v63  ;;  %v8082_v20 = vrot.slane %v9942_v58, 4  ;;  %v1666_v33 = vrot.slane %v6813_v18, 4 }
  0xce   : > { %v1230_v45 = vsel %vm7572_vm14, %v1213_v29, %v1229_v48  ;;  %vm9958_vm5 = vcmask 244736   ;;  %v6870_v28 = vpack.i.bf16 %v8003_v11, %v7898_v38  ;;  %v1898_v26 = vsel %vm9997_vm3, %v1893_v12, %v8076_v51  ;;  %v1911_v58 = vld [vmem:[#allocation3 + $0x20] sm:$0x22]  ;;  %2671 = vrot.lane.b32.xlu0 %v7870_v6, %s7302_s16  ;;  %3084 = vrot.lane.b32.xlu1 %v7935_v14, %s7301_s15  ;;  %s10075_s16 = smov 61  }
  0xcf   : > { %1231 = vst [vmem:[#allocation3] sm:$0x44] %v1230_v45  ;;  %v9947_v35 = vunpack.i.h.bf16 %v8084_v10  ;;  %v6828_v63 = vunpack.i.l.bf16 %v8084_v10  ;;  %v9946_v48 = vunpack.i.h.bf16 %v8086_v13  ;;  %v1900_v29 = vsel %vm1899_vm0, %v6818_v24, %v1898_v26  ;;  %v1684_v45 = vld [vmem:[#allocation3 + $0x20] sm:$0x11] }
  0xd0   : > { %v1671_v27 = vsel %vm9997_vm3, %v1666_v33, %v8082_v20  ;;  %v6823_v32 = vunpack.i.l.bf16 %v8086_v13  ;;  %v6875_v11 = vpack.i.bf16 %v3197_v31, %v7984_v21  ;;  %v1912_v12 = vsel %vm7550_vm10, %v1900_v29, %v1911_v58  ;;  %v8117_v44 = vpop.permute.xlu1 %6836  ;;  %v8119_v58 = vpop.permute.xlu0 %6831 }
  0xd1   : > { %v1673_v24 = vsel %vm1672_vm4, %v6813_v18, %v1671_v27  ;;  %v8109_v26 = vrot.slane %v9947_v35, 4  ;;  %v2348_v33 = vrot.slane %v6828_v63, 4  ;;  %1913 = vst [vmem:[#allocation3 + $0x20] sm:$0x22] %v1912_v12  ;;  %v8115_v14 = vrot.slane %v9946_v48, 4 }
  0xd2   : > { %v1685_v6 = vsel %vm8013_vm13, %v1673_v24, %v1684_v45  ;;  %v2120_v31 = vrot.slane %v6823_v32, 4  ;;  %v9951_v27 = vunpack.i.h.bf16 %v8117_v44  ;;  %v6838_v29 = vunpack.i.l.bf16 %v8117_v44  ;;  %v2366_v24 = vld [vmem:[#allocation3 + $0x20] sm:$0x88]  ;;  %6871 = vrot.lane.b32.xlu0 %v6870_v28, %s7310_s24  ;;  %6876 = vrot.lane.b32.xlu1 %v6875_v11, %s7309_s23 }
  0xd3   : > { %1686 = vst [vmem:[#allocation3 + $0x20] sm:$0x11] %v1685_v6  ;;  %v2353_v18 = vsel %vm9997_vm3, %v2348_v33, %v8109_v26  ;;  %v9950_v12 = vunpack.i.h.bf16 %v8119_v58  ;;  %v6833_v35 = vunpack.i.l.bf16 %v8119_v58  ;;  %v2138_v6 = vld [vmem:[#allocation3 + $0x20] sm:$0x44]  ;;  %vm10071_vm9 = vcmask 1022976  }
  0xd4   : > { %v2355_v45 = vsel %vm2354_vm1, %v6828_v63, %v2353_v18  ;;  %v2125_v48 = vsel %vm9997_vm3, %v2120_v31, %v8115_v14  ;;  %v8137_v34 = vrot.slane %v9951_v27, 4  ;;  %v2796_v63 = vrot.slane %v6838_v29, 4  ;;  %v8145_v18 = vpop.permute.xlu1 %6846 }
  0xd5   : > { %v2367_v33 = vsel %vm8041_vm2, %v2355_v45, %v2366_v24  ;;  %v2127_v23 = vsel %vm2126_vm12, %v6823_v32, %v2125_v48  ;;  %v8143_v28 = vrot.slane %v9950_v12, 4  ;;  %v2569_v11 = vrot.slane %v6833_v35, 4  ;;  %v8147_v45 = vpop.permute.xlu0 %6841 }
  0xd6   : > { %2368 = vst [vmem:[#allocation3 + $0x20] sm:$0x88] %v2367_v33  ;;  %v2139_v31 = vsel %vm7572_vm14, %v2127_v23, %v2138_v6  ;;  %v2801_v32 = vsel %vm9997_vm3, %v2796_v63, %v8137_v34  ;;  %v9956_v48 = vunpack.i.h.bf16 %v8145_v18  ;;  %v6848_v24 = vunpack.i.l.bf16 %v8145_v18  ;;  %v2814_v6 = vld [vmem:[#allocation3 + $0x40] sm:$0x22]  ;;  %1204 = vrot.lane.b32.xlu0 %v9962_v53, %s10039_s19  ;;  %1438 = vrot.lane.b32.xlu1 %v9961_v9, %s10038_s22  ;;  %s9994_s22 = smov 111  }
  0xd7   : > { %2140 = vst [vmem:[#allocation3 + $0x20] sm:$0x44] %v2139_v31  ;;  %v9959_v33 = vunpack.i.h.bf16 %v8147_v45  ;;  %v2803_v23 = vsel %vm9963_vm15, %v6838_v29, %v2801_v32  ;;  %v2574_v12 = vsel %vm9997_vm3, %v2569_v11, %v8143_v28  ;;  %v6843_v27 = vunpack.i.l.bf16 %v8147_v45  ;;  %v2587_v31 = vld [vmem:[#allocation3 + $0x40] sm:$0x11] }
  0xd8   : > { %v2815_v63 = vsel %vm7550_vm10, %v2803_v23, %v2814_v6  ;;  %v2576_v29 = vsel %vm9958_vm5, %v6833_v35, %v2574_v12  ;;  %v8169_v32 = vrot.slane %v9956_v48, 4  ;;  %v3208_v11 = vrot.slane %v6848_v24, 4  ;;  %v8177_v8 = vpop.permute.xlu1 %3302  ;;  %v2999_v12 = vld [vmem:[#allocation3 + $0x40] sm:$0x44] }
  0xd9   : > { %2816 = vst [vmem:[#allocation3 + $0x40] sm:$0x22] %v2815_v63  ;;  %v2588_v62 = vsel %vm8013_vm13, %v2576_v29, %v2587_v31  ;;  %v8175_v3 = vrot.slane %v9959_v33, 4  ;;  %v2982_v61 = vrot.slane %v6843_v27, 4  ;;  %v3301_v23 = vpop.permute.xlu0 %3300  ;;  %v9977_v6 = vrot.slane %v8177_v8, 4  ;;  %v3340_v9 = vld [vmem:[#allocation3] sm:$0xff] }
  0xda   : > { %2589 = vst [vmem:[#allocation3 + $0x40] sm:$0x11] %v2588_v62  ;;  %v3213_v35 = vsel %vm9997_vm3, %v3208_v11, %v8169_v32  ;;  %v3310_v48 = vrot.slane %v3301_v23, 4  ;;  %v3327_v29 = vld [vmem:[#allocation3 + $0x60] sm:$0x11]  ;;  %1664 = vrot.lane.b32.xlu0 %v7898_v38, %s10040_s21  ;;  %1891 = vrot.lane.b32.xlu1 %v7984_v21, %s10072_s14  ;;  %vm10073_vm5 = vcmask 1039360  }
  0xdb   : > { %v3214_v63 = vsel %vm10071_vm9, %v6848_v24, %v3213_v35  ;;  %v2987_v31 = vsel %vm9997_vm3, %v2982_v61, %v8175_v3  ;;  %vm10074_vm9 = vcmask 1014784   ;;  %vm3439_vm15 = vcmask 1044480   ;;  %s7326_s14 = smov 113   ;;  %s7330_s21 = smov 99  }
  0xdc   : > { %v3226_v62 = vsel %vm8041_vm2, %v3214_v63, %v3225_v52  ;;  %v2988_v11 = vsel %vm10073_vm5, %v6843_v27, %v2987_v31  ;;  %v3315_v24 = vsel %vm9997_vm3, %v3310_v48, %v9977_v6  ;;  %v8198_v33 = vpop.permute.xlu1 %1076  ;;  %v1104_v31 = vld [vmem:[#allocation3 + $0x8] sm:$0x44]  ;;  %vm10080_vm5 = vmmov %vm10074_vm9  ;;  %v10103_v6 = vunpack.i.h.bf16 %v7940_v30 }
  0xdd   : > { %3227 = vst [vmem:[#allocation3 + $0x40] sm:$0x88] %v3226_v62  ;;  %v3000_v61 = vsel %vm7572_vm14, %v2988_v11, %v2999_v12  ;;  %v3316_v35 = vsel %vm10074_vm9, %v3301_v23, %v3315_v24  ;;  %v8200_v25 = vpop.permute.xlu0 %843  ;;  %v9964_v27 = vrot.slane %v8198_v33, 4  ;;  %v871_v12 = vld [vmem:[#allocation3 + $0x8] sm:$0x22]  ;;  %v10076_v23 = vrot.slane %v7898_v38, 6 }
  0xde   : > { %v3344_v53 = vld [vmem:[#allocation3 + $0x20] sm:$0xff]  ;;  %3001 = vst [vmem:[#allocation3 + $0x40] sm:$0x44] %v3000_v61  ;;  %v3328_v52 = vsel %vm10037_vm8, %v3316_v35, %v3327_v29  ;;  %v9978_v48 = vrot.slane %v8200_v25, 4  ;;  %v10077_v62 = vrot.slane %v7898_v38, 5  ;;  %v10078_v29 = vrot.slane %v7880_v16, 4 }
  0xdf   : > { %v6310_v63 = vcombine.high %v3340_v9, %v3344_v53  ;;  %3329 = vst [vmem:[#allocation3 + $0x60] sm:$0x11] %v3328_v52  ;;  %2118 = vrot.lane.b32.xlu0 %v10076_v23, %s10075_s16  ;;  %v6309_v11 = vcombine.low %v3340_v9, %v3344_v53  ;;  %v10079_v61 = vrot.slane %v7770_v37, 4  ;;  %vm10081_vm9 = vcmask 1031168   ;;  %s9996_s16 = smov 112  }
  0xe0   : > { %2346 = vrot.lane.b32.xlu1 %v10077_v62, %s10041_s17  ;;  %v1090_v24 = vsel %vm9997_vm3, %v10078_v29, %v9964_v27  ;;  %v8226_v53 = vpop.permute.xlu1 %1542  ;;  %v7320_v62 = vmov 65535   ;;  %s10082_s17 = smov 30   ;;  %v10107_v30 = vunpack.i.h.bf16 %v7942_v43 }
  0xe1   : > { %v857_v35 = vsel %vm9997_vm3, %v10079_v61, %v9978_v48  ;;  %3466 = vmatprep.subr.bf16.mxu0 %v6310_v63  ;;  %v1091_v52 = vsel %vm10080_vm5, %v7880_v16, %v1090_v24  ;;  %v8228_v9 = vpop.permute.xlu0 %1310  ;;  %v3440_v29 = vsel %vm9997_vm3, 4294967295, %v7320_v62  ;;  %v9965_v16 = vrot.slane %v8226_v53, 4 }
  0xe2   : > { %v858_v23 = vsel %vm10081_vm9, %v7770_v37, %v857_v35  ;;  %3467 = vmatpush1.bf16.msra.mxu0 %v6309_v11  ;;  %v1105_v27 = vsel %vm7559_vm7, %v1091_v52, %v1104_v31  ;;  %v9966_v24 = vrot.slane %v8228_v9, 4  ;;  %v1569_v37 = vld [vmem:[#allocation3 + $0x28] sm:$0x11]  ;;  %v1338_v11 = vld [vmem:[#allocation3 + $0x8] sm:$0x88]  ;;  %v10083_v31 = vrot.slane %v7812_v0, 4 }
  0xe3   : > { %v872_v63 = vsel %vm7593_vm11, %v858_v23, %v871_v12  ;;  %1106 = vst [vmem:[#allocation3 + $0x8] sm:$0x44] %v1105_v27  ;;  %2567 = vrot.lane.b32.xlu0 %v7898_v38, %s10082_s17  ;;  %v10084_v61 = vrot.slane %v7799_v49, 4  ;;  %v3356_v35 = vld [vmem:[%s9880_s2] sm:$0x3f]  ;;  %vm10085_vm5 = vcmask 760832  }
  0xe4   : > { %873 = vst [vmem:[#allocation3 + $0x8] sm:$0x22] %v872_v63  ;;  %2794 = vrot.lane.b32.xlu1 %v7984_v21, %s10046_s27  ;;  %v1556_v12 = vsel %vm9997_vm3, %v10083_v31, %v9965_v16  ;;  %vm10086_vm9 = vcmask 777216   ;;  %v8258_v52 = vpop.permute.xlu1 %1991  ;;  %v8263_v62 = vsel %vm3439_vm15, %v3440_v29, 0  ;;  %vm10089_vm15 = vcmask 506880   ;;  %s7322_s27 = smov 98  }
  0xe5   : > { %v1324_v27 = vsel %vm9997_vm3, %v10084_v61, %v9966_v24  ;;  %v1557_v38 = vsel %vm10085_vm5, %v7812_v0, %v1556_v12  ;;  %v8260_v23 = vpop.permute.xlu0 %1764  ;;  %v9967_v61 = vrot.slane %v8258_v52, 4  ;;  %v3348_v12 = vld [vmem:[#allocation3 + $0x40] sm:$0xff]  ;;  %vm10090_vm5 = vcmask 523264   ;;  %s9995_s17 = smov 110  }
  0xe6   : > { %v1325_v21 = vsel %vm10086_vm9, %v7799_v49, %v1324_v27  ;;  %v1570_v63 = vsel %vm10037_vm8, %v1557_v38, %v1569_v37  ;;  %v9976_v0 = vrot.slane %v8260_v23, 4  ;;  %v3352_v16 = vld [vmem:[#allocation3 + $0x60] sm:$0x11]  ;;  %v2018_v49 = vld [vmem:[#allocation3 + $0x28] sm:$0x44]  ;;  %v10087_v37 = vrot.slane %v7914_v4, 4 }
  0xe7   : > { %v1339_v31 = vsel %vm7621_vm6, %v1325_v21, %v1338_v11  ;;  %1571 = vst [vmem:[#allocation3 + $0x28] sm:$0x11] %v1570_v63  ;;  %v1791_v27 = vld [vmem:[#allocation3 + $0x28] sm:$0x22]  ;;  %3308 = vrot.lane.b32.xlu0 %v7901_v39, %s10047_s28  ;;  %v6318_v29 = vcombine.high %v3348_v12, %v3352_v16  ;;  %v6317_v24 = vcombine.low %v3348_v12, %v3352_v16  ;;  %v10088_v38 = vrot.slane %v7768_v36, 4 }
  0xe8   : > { %1340 = vst [vmem:[#allocation3 + $0x8] sm:$0x88] %v1339_v31  ;;  %3359 = vperm.xlu1 %6880, %v3356_v35   ;;  %v2005_v11 = vsel %vm9997_vm3, %v10087_v37, %v9967_v61  ;;  %v8287_v16 = vpop.permute.xlu1 %2445  ;;  %vm9981_vm9 = vcmask 203776  }
  0xe9   : > { %v1778_v21 = vsel %vm9997_vm3, %v10088_v38, %v9976_v0  ;;  %v2006_v63 = vsel %vm10089_vm15, %v7914_v4, %v2005_v11  ;;  %v8289_v35 = vpop.permute.xlu0 %2219  ;;  %v3446_v31 = vand.u32 %v6318_v29, %v8263_v62  ;;  %v3443_v12 = vand.u32 %v6317_v24, %v8263_v62  ;;  %v2246_v11 = vld [vmem:[#allocation3 + $0x28] sm:$0x88] }
  0xea   : > { %v1779_v39 = vsel %vm10090_vm5, %v7768_v36, %v1778_v21  ;;  %v2019_v37 = vsel %vm7559_vm7, %v2006_v63, %v2018_v49  ;;  %v9968_v61 = vrot.slane %v8287_v16, 4  ;;  %v9974_v4 = vrot.slane %v8289_v35, 4  ;;  %v2472_v36 = vld [vmem:[#allocation3 + $0x48] sm:$0x11]  ;;  %v8312_v21 = vld [vmem:[%s9879_s1] sm:$0x7] }
  0xeb   : > { %v1792_v38 = vsel %vm7593_vm11, %v1779_v39, %v1791_v27  ;;  %2020 = vst [vmem:[#allocation3 + $0x28] sm:$0x44] %v2019_v37  ;;  %3468 = vmatprep.subr.bf16.mxu0 %v3446_v31  ;;  %v10091_v29 = vrot.slane %v7839_v2, 4  ;;  %v10092_v49 = vrot.slane %v7828_v17, 4  ;;  %vm10093_vm15 = vcmask 252928  }
  0xec   : > { %1793 = vst [vmem:[#allocation3 + $0x28] sm:$0x22] %v1792_v38  ;;  %3469 = vmatpush1.bf16.msra.mxu0 %v3443_v12  ;;  %vm10094_vm5 = vcmask 490496   ;;  %v8318_v31 = vpop.permute.xlu1 %3080 }
  0xed   : > { %v2459_v24 = vsel %vm9997_vm3, %v10091_v29, %v9968_v61  ;;  %v2233_v27 = vsel %vm9997_vm3, %v10092_v49, %v9974_v4  ;;  %v8320_v37 = vpop.permute.xlu0 %2667  ;;  %v9969_v29 = vrot.slane %v8318_v31, 4 }
  0xee   : > { %v2460_v63 = vsel %vm10093_vm15, %v7839_v2, %v2459_v24  ;;  %v2234_v39 = vsel %vm10094_vm5, %v7828_v17, %v2233_v27  ;;  %v9970_v49 = vrot.slane %v8320_v37, 4  ;;  %v3106_v2 = vld [vmem:[#allocation3 + $0x48] sm:$0x88]  ;;  %v2694_v24 = vld [vmem:[#allocation3 + $0x48] sm:$0x22]  ;;  %v10095_v17 = vrot.slane %v7858_v56, 4 }
  0xef   : > { %v2473_v38 = vsel %vm10037_vm8, %v2460_v63, %v2472_v36  ;;  %v2247_v12 = vsel %vm7621_vm6, %v2234_v39, %v2246_v11  ;;  %6325 = vmatmul.mubr.msk.bf16.vlgmr.msra.gmra.mrb[0].mxu0 %vm9981_vm9, %v8312_v21  ;;  %v10096_v11 = vrot.slane %v7780_v41, 4  ;;  %v10097_v63 = vmov 0  }
  0xf0   : > { %2474 = vst [vmem:[#allocation3 + $0x48] sm:$0x11] %v2473_v38  ;;  %2248 = vst [vmem:[#allocation3 + $0x28] sm:$0x88] %v2247_v12  ;;  %v3093_v36 = vsel %vm9997_vm3, %v10095_v17, %v9969_v29  ;;  %3539 = vmatprep.mubr.bf16.mxu0 %v10097_v63  ;;  %vm10098_vm15 = vcmask 1031168   ;;  %vm10099_vm5 = vcmask 236544   ;;  %v8345_v12 = vpop.permute.xlu1 %6856 }
  0xf1   : > { %v2681_v27 = vsel %vm9997_vm3, %v10096_v11, %v9970_v49  ;;  %v3094_v39 = vsel %vm10098_vm15, %v7858_v56, %v3093_v36  ;;  %10100 = vst [vmem:[#allocation8_spill] sm:$0xff] %v8345_v12  ;;  %v8347_v61 = vpop.permute.xlu0 %6851  ;;  %v9971_v11 = vunpack.i.h.bf16 %v8345_v12  ;;  %v9972_v49 = vunpack.i.l.bf16 %v8345_v12  ;;  %v999_v12 = vld [vmem:[#allocation3 + $0x8] sm:$0x22] }
  0xf2   : > { %v2682_v38 = vsel %vm10099_vm5, %v7780_v41, %v2681_v27  ;;  %v3107_v17 = vsel %vm7621_vm6, %v3094_v39, %v3106_v2  ;;  %v9973_v56 = vunpack.i.h.bf16 %v8347_v61  ;;  %v9975_v41 = vunpack.i.l.bf16 %v8347_v61 }
  0xf3   : > { %v2695_v29 = vsel %vm7593_vm11, %v2682_v38, %v2694_v24  ;;  %3108 = vst [vmem:[#allocation3 + $0x48] sm:$0x88] %v3107_v17  ;;  %v8359_v36 = vrot.slane %v9971_v11, 4  ;;  %v8363_v2 = vrot.slane %v9972_v49, 4  ;;  %v3002_v11 = vld [vmem:[#allocation3 + $0x48] sm:$0x44] }
  0xf4   : > { %2696 = vst [vmem:[#allocation3 + $0x48] sm:$0x22] %v2695_v29  ;;  %v8367_v24 = vrot.slane %v9973_v56, 4  ;;  %v8371_v27 = vrot.slane %v9975_v41, 4  ;;  %v8373_v29 = vpop.permute.xlu1 %1434  ;;  %v766_v49 = vld [vmem:[#allocation3 + $0x8] sm:$0x11]  ;;  %v10101_v41 = vunpack.i.h.bf16 %v8145_v18  ;;  %v10105_v18 = vunpack.i.h.bf16 %v8147_v45 }
  0xf5   : > { %v8375_v39 = vpop.permute.xlu0 %1200  ;;  %v3215_v38 = vsel %vm9997_vm3, %v8169_v32, %v8359_v36  ;;  %v981_v17 = vsel %vm9997_vm3, %v7981_v47, %v8363_v2  ;;  %v1442_v56 = vrot.slane %v8373_v29, 4  ;;  %vm10102_vm15 = vcmask 1022976  }
  0xf6   : > { %v3216_v0 = vsel %vm10102_vm15, %v10101_v41, %v3215_v38  ;;  %vm10104_vm5 = vmmov %vm10102_vm15  ;;  %v2989_v32 = vsel %vm9997_vm3, %v8175_v3, %v8367_v24  ;;  %v748_v47 = vsel %vm9997_vm3, %v7995_v60, %v8371_v27  ;;  %vm10106_vm9 = vcmask 1039360   ;;  %v1466_v38 = vld [vmem:[#allocation3 + $0x8] sm:$0x88] }
  0xf7   : > { %v982_v48 = vsel %vm10104_vm5, %v10103_v6, %v981_v17  ;;  %v2990_v41 = vsel %vm10106_vm9, %v10105_v18, %v2989_v32  ;;  %vm10108_vm15 = vmmov %vm10106_vm9  ;;  %v1448_v3 = vsel %vm9997_vm3, %v8035_v15, %v1442_v56  ;;  %v10109_v45 = vunpack.i.h.bf16 %v7997_v5 }
  0xf8   : > { %v1000_v4 = vsel %vm7550_vm10, %v982_v48, %v999_v12  ;;  %v749_v6 = vsel %vm10108_vm15, %v10107_v30, %v748_v47  ;;  %v3003_v60 = vsel %vm7572_vm14, %v2990_v41, %v3002_v11  ;;  %vm10110_vm5 = vcmask 769024   ;;  %v8420_v32 = vpop.permute.xlu1 %1887  ;;  %v1232_v11 = vld [vmem:[#allocation3 + $0x8] sm:$0x44] }
  0xf9   : > { %1001 = vst [vmem:[#allocation3 + $0x8] sm:$0x22] %v1000_v4  ;;  %v767_v48 = vsel %vm8013_vm13, %v749_v6, %v766_v49  ;;  %v1449_v12 = vsel %vm10110_vm5, %v10109_v45, %v1448_v3  ;;  %v10111_v43 = vrot.slane %v8375_v39, 4  ;;  %v8422_v15 = vpop.permute.xlu0 %1660  ;;  %3004 = vst [vmem:[#allocation3 + $0x48] sm:$0x44] %v3003_v60  ;;  %v10112_v5 = vunpack.i.h.bf16 %v7999_v46 }
  0xfa   : > { %v3228_v4 = vld [vmem:[#allocation3 + $0x48] sm:$0x88]  ;;  %768 = vst [vmem:[#allocation3 + $0x8] sm:$0x11] %v767_v48  ;;  %v1467_v49 = vsel %vm8041_vm2, %v1449_v12, %v1466_v38  ;;  %vm10113_vm9 = vcmask 785408   ;;  %v1895_v18 = vrot.slane %v8420_v32, 4  ;;  %v10114_v3 = vunpack.i.h.bf16 %v8051_v42 }
  0xfb   : > { %v1214_v17 = vsel %vm9997_vm3, %v8049_v40, %v10111_v43  ;;  %v1668_v41 = vrot.slane %v8422_v15, 4  ;;  %v3229_v40 = vsel %vm8041_vm2, %v3216_v0, %v3228_v4  ;;  %1468 = vst [vmem:[#allocation3 + $0x8] sm:$0x88] %v1467_v49  ;;  %v1914_v60 = vld [vmem:[#allocation3 + $0x28] sm:$0x22]  ;;  %v10115_v45 = vunpack.i.h.bf16 %v8053_v57 }
  0xfc   : > { %v1215_v47 = vsel %vm10113_vm9, %v10112_v5, %v1214_v17  ;;  %3230 = vst [vmem:[#allocation3 + $0x48] sm:$0x88] %v3229_v40  ;;  %v1901_v46 = vsel %vm9997_vm3, %v8076_v51, %v1895_v18  ;;  %v1687_v48 = vld [vmem:[#allocation3 + $0x28] sm:$0x11]  ;;  %v8449_v38 = vpop.permute.xlu1 %2342  ;;  %v10116_v49 = vunpack.i.h.bf16 %v8084_v10  ;;  %v2369_v5 = vld [vmem:[#allocation3 + $0x28] sm:$0x88]  ;;  %v10117_v40 = vunpack.i.h.bf16 %v8086_v13 }
  0xfd   : > { %v1233_v30 = vsel %vm7572_vm14, %v1215_v47, %v1232_v11  ;;  %v1674_v6 = vsel %vm9997_vm3, %v8082_v20, %v1668_v41  ;;  %v1902_v0 = vsel %vm1899_vm0, %v10114_v3, %v1901_v46  ;;  %v8451_v43 = vpop.permute.xlu0 %2114  ;;  %v2350_v42 = vrot.slane %v8449_v38, 4  ;;  %v2141_v47 = vld [vmem:[#allocation3 + $0x28] sm:$0x44] }
  0xfe   : > { %1234 = vst [vmem:[#allocation3 + $0x8] sm:$0x44] %v1233_v30  ;;  %v1675_v12 = vsel %vm1672_vm4, %v10115_v45, %v1674_v6  ;;  %v1915_v51 = vsel %vm7550_vm10, %v1902_v0, %v1914_v60  ;;  %v2122_v17 = vrot.slane %v8451_v43, 4  ;;  %v10118_v60 = vunpack.i.h.bf16 %v8117_v44  ;;  %v2817_v45 = vld [vmem:[#allocation3 + $0x48] sm:$0x22] }
  0xff   : > { %v1688_v20 = vsel %vm8013_vm13, %v1675_v12, %v1687_v48  ;;  %1916 = vst [vmem:[#allocation3 + $0x28] sm:$0x22] %v1915_v51  ;;  %v2356_v57 = vsel %vm9997_vm3, %v8109_v26, %v2350_v42  ;;  %vm10119_vm15 = vcmask 228352   ;;  %v2590_v12 = vld [vmem:[#allocation3 + $0x48] sm:$0x11]  ;;  %v10120_v51 = vunpack.i.h.bf16 %v8119_v58 }
 0x100   : > { %1689 = vst [vmem:[#allocation3 + $0x28] sm:$0x11] %v1688_v20  ;;  %v2128_v4 = vsel %vm9997_vm3, %v8115_v14, %v2122_v17  ;;  %v2357_v11 = vsel %vm2354_vm1, %v10116_v49, %v2356_v57  ;;  %v8473_v46 = vpop.permute.xlu1 %2790  ;;  %vm10121_vm5 = vcmask 244736   ;;  %v3330_v58 = vld [vmem:[#allocation3 + $0x68] sm:$0x11]  ;;  %vm10124_vm9 = vcmask 1031168  }
 0x101   : > { %v2129_v30 = vsel %vm2126_vm12, %v10117_v40, %v2128_v4  ;;  %v8475_v6 = vpop.permute.xlu0 %2563  ;;  %v2370_v26 = vsel %vm8041_vm2, %v2357_v11, %v2369_v5  ;;  %v2798_v10 = vrot.slane %v8473_v46, 4  ;;  %v874_v11 = vld [vmem:[#allocation3 + $0x10] sm:$0x22]  ;;  %v10122_v5 = vrot.slane %v8200_v25, 4 }
 0x102   : > { %v2142_v14 = vsel %vm7572_vm14, %v2129_v30, %v2141_v47  ;;  %v2571_v3 = vrot.slane %v8475_v6, 4  ;;  %2371 = vst [vmem:[#allocation3 + $0x28] sm:$0x88] %v2370_v26  ;;  %v10123_v40 = vrot.slane %v8177_v8, 4 }
 0x103   : > { %2143 = vst [vmem:[#allocation3 + $0x28] sm:$0x44] %v2142_v14  ;;  %v2804_v13 = vsel %vm9997_vm3, %v8137_v34, %v2798_v10 }
 0x104   : > { %v2577_v0 = vsel %vm9997_vm3, %v8143_v28, %v2571_v3  ;;  %v2805_v48 = vsel %vm10119_vm15, %v10118_v60, %v2804_v13  ;;  %v8497_v57 = vpop.permute.xlu1 %845  ;;  %vm10125_vm15 = vcmask 1014784  }
 0x105   : > { %v2578_v20 = vsel %vm10121_vm5, %v10120_v51, %v2577_v0  ;;  %v8499_v4 = vpop.permute.xlu0 %3304  ;;  %v2818_v34 = vsel %vm7550_vm10, %v2805_v48, %v2817_v45  ;;  %v852_v44 = vrot.slane %v8497_v57, 4  ;;  %v3341_v51 = vld [vmem:[#allocation3 + $0x8] sm:$0xff]  ;;  %vm10128_vm5 = vcmask 777216  }
 0x106   : > { %v2591_v28 = vsel %vm8013_vm13, %v2578_v20, %v2590_v12  ;;  %v3312_v49 = vrot.slane %v8499_v4, 4  ;;  %2819 = vst [vmem:[#allocation3 + $0x48] sm:$0x22] %v2818_v34 }
 0x107   : > { %2592 = vst [vmem:[#allocation3 + $0x48] sm:$0x11] %v2591_v28  ;;  %v859_v47 = vsel %vm9997_vm3, %v10122_v5, %v852_v44  ;;  %v10126_v5 = vrot.slane %v8228_v9, 4 }
 0x108   : > { %v3317_v30 = vsel %vm9997_vm3, %v10123_v40, %v3312_v49  ;;  %v860_v26 = vsel %vm10124_vm9, %v8200_v25, %v859_v47  ;;  %v8521_v13 = vpop.permute.xlu1 %1312  ;;  %v1341_v25 = vld [vmem:[#allocation3 + $0x10] sm:$0x88]  ;;  %vm10129_vm9 = vmmov %vm10125_vm15 }
 0x109   : > { %v3318_v14 = vsel %vm10125_vm15, %v8177_v8, %v3317_v30  ;;  %v8523_v0 = vpop.permute.xlu0 %1078  ;;  %v875_v60 = vsel %vm7593_vm11, %v860_v26, %v874_v11  ;;  %v1319_v45 = vrot.slane %v8521_v13, 4  ;;  %v1107_v8 = vld [vmem:[#allocation3 + $0x10] sm:$0x44]  ;;  %vm10132_vm15 = vcmask 523264  }
 0x10a   : > { %v3331_v48 = vsel %vm10037_vm8, %v3318_v14, %v3330_v58  ;;  %v1085_v12 = vrot.slane %v8523_v0, 4  ;;  %v3345_v20 = vld [vmem:[#allocation3 + $0x28] sm:$0xff]  ;;  %876 = vst [vmem:[#allocation3 + $0x10] sm:$0x22] %v875_v60  ;;  %v10127_v58 = vrot.slane %v8198_v33, 4 }
 0x10b   : > { %3332 = vst [vmem:[#allocation3 + $0x68] sm:$0x11] %v3331_v48  ;;  %v6311_v34 = vcombine.low %v3341_v51, %v3345_v20  ;;  %v6312_v28 = vcombine.high %v3341_v51, %v3345_v20  ;;  %v1326_v11 = vsel %vm9997_vm3, %v10126_v5, %v1319_v45  ;;  %v10130_v5 = vrot.slane %v8260_v23, 4 }
 0x10c   : > { %v1092_v47 = vsel %vm9997_vm3, %v10127_v58, %v1085_v12  ;;  %v1327_v40 = vsel %vm10128_vm5, %v8228_v9, %v1326_v11  ;;  %v8545_v26 = vpop.permute.xlu1 %1766  ;;  %v1794_v9 = vld [vmem:[#allocation3 + $0x30] sm:$0x22]  ;;  %vm10133_vm5 = vcmask 760832  }
 0x10d   : > { %v1093_v30 = vsel %vm10129_vm9, %v8198_v33, %v1092_v47  ;;  %v8547_v14 = vpop.permute.xlu0 %1544  ;;  %3507 = vmatprep.subr.bf16.mxu0 %v6312_v28  ;;  %v1342_v60 = vsel %vm7621_vm6, %v1327_v40, %v1341_v25  ;;  %v9982_v51 = vrot.slane %v8545_v26, 4  ;;  %v1572_v33 = vld [vmem:[#allocation3 + $0x30] sm:$0x11]  ;;  %v10131_v25 = vrot.slane %v8226_v53, 4 }
 0x10e   : > { %v1108_v48 = vsel %vm7559_vm7, %v1093_v30, %v1107_v8  ;;  %v9993_v20 = vrot.slane %v8547_v14, 4  ;;  %3508 = vmatpush1.bf16.msra.mxu0 %v6311_v34  ;;  %1343 = vst [vmem:[#allocation3 + $0x10] sm:$0x88] %v1342_v60  ;;  %vm10136_vm9 = vcmask 490496  }
 0x10f   : > { %1109 = vst [vmem:[#allocation3 + $0x10] sm:$0x44] %v1108_v48  ;;  %v1780_v28 = vsel %vm9997_vm3, %v10130_v5, %v9982_v51  ;;  %v3349_v5 = vld [vmem:[#allocation3 + $0x48] sm:$0xff]  ;;  %v10134_v51 = vrot.slane %v8289_v35, 4 }
 0x110   : > { %v1558_v8 = vsel %vm9997_vm3, %v10131_v25, %v9993_v20  ;;  %v1781_v11 = vsel %vm10132_vm15, %v8260_v23, %v1780_v28  ;;  %v8569_v58 = vpop.permute.xlu1 %2221  ;;  %v2249_v23 = vld [vmem:[#allocation3 + $0x30] sm:$0x88]  ;;  %vm10137_vm15 = vcmask 506880  }
 0x111   : > { %v1559_v34 = vsel %vm10133_vm5, %v8226_v53, %v1558_v8  ;;  %v8571_v47 = vpop.permute.xlu0 %1993  ;;  %v1795_v40 = vsel %vm7593_vm11, %v1781_v11, %v1794_v9  ;;  %v9983_v60 = vrot.slane %v8569_v58, 4  ;;  %v2021_v53 = vld [vmem:[#allocation3 + $0x30] sm:$0x44]  ;;  %vm10140_vm5 = vcmask 236544  }
 0x112   : > { %v1573_v30 = vsel %vm10037_vm8, %v1559_v34, %v1572_v33  ;;  %v9984_v48 = vrot.slane %v8571_v47, 4  ;;  %v3353_v25 = vld [vmem:[#allocation3 + $0x68] sm:$0x11]  ;;  %1796 = vst [vmem:[#allocation3 + $0x30] sm:$0x22] %v1795_v40  ;;  %v10135_v33 = vrot.slane %v8258_v52, 4 }
 0x113   : > { %1574 = vst [vmem:[#allocation3 + $0x30] sm:$0x11] %v1573_v30  ;;  %v6319_v28 = vcombine.low %v3349_v5, %v3353_v25  ;;  %v6320_v8 = vcombine.high %v3349_v5, %v3353_v25  ;;  %v2235_v9 = vsel %vm9997_vm3, %v10134_v51, %v9983_v60 }
 0x114   : > { %v2007_v11 = vsel %vm9997_vm3, %v10135_v33, %v9984_v48  ;;  %v2236_v34 = vsel %vm10136_vm9, %v8289_v35, %v2235_v9  ;;  %v8593_v30 = vpop.permute.xlu1 %2669  ;;  %v2475_v9 = vld [vmem:[#allocation3 + $0x50] sm:$0x11]  ;;  %vm10141_vm9 = vcmask 252928  }
 0x115   : > { %v2008_v40 = vsel %vm10137_vm15, %v8258_v52, %v2007_v11  ;;  %v8595_v5 = vpop.permute.xlu0 %2447  ;;  %v3452_v25 = vand.u32 %v6320_v8, %v8263_v62  ;;  %v3449_v51 = vand.u32 %v6319_v28, %v8263_v62  ;;  %v2250_v60 = vsel %vm7621_vm6, %v2236_v34, %v2249_v23  ;;  %v2697_v52 = vld [vmem:[#allocation3 + $0x50] sm:$0x22] }
 0x116   : > { %v2022_v33 = vsel %vm7559_vm7, %v2008_v40, %v2021_v53  ;;  %v9988_v48 = vrot.slane %v8593_v30, 4  ;;  %v9989_v35 = vrot.slane %v8595_v5, 4  ;;  %2251 = vst [vmem:[#allocation3 + $0x30] sm:$0x88] %v2250_v60  ;;  %v10138_v8 = vrot.slane %v8320_v37, 4 }
 0x117   : > { %2023 = vst [vmem:[#allocation3 + $0x30] sm:$0x44] %v2022_v33  ;;  %3509 = vmatprep.subr.bf16.mxu0 %v3452_v25  ;;  %v10139_v23 = vrot.slane %v8287_v16, 4  ;;  %vm10142_vm15 = vcmask 203776  }
 0x118   : > { %v2683_v28 = vsel %vm9997_vm3, %v10138_v8, %v9988_v48  ;;  %3510 = vmatpush1.bf16.msra.mxu0 %v3449_v51  ;;  %v8621_v40 = vpop.permute.xlu1 %6861 }
 0x119   : > { %v2461_v53 = vsel %vm9997_vm3, %v10139_v23, %v9989_v35  ;;  %v2684_v60 = vsel %vm10140_vm5, %v8320_v37, %v2683_v28  ;;  %v8619_v34 = vpop.permute.xlu0 %3082  ;;  %v9985_v51 = vunpack.i.h.bf16 %v8621_v40  ;;  %v3109_v37 = vld [vmem:[#allocation3 + $0x50] sm:$0x88]  ;;  %v9987_v28 = vunpack.i.l.bf16 %v8621_v40 }
 0x11a   : > { %v2462_v11 = vsel %vm10141_vm9, %v8287_v16, %v2461_v53  ;;  %v2698_v25 = vsel %vm7593_vm11, %v2684_v60, %v2697_v52  ;;  %v9986_v8 = vrot.slane %v8619_v34, 4  ;;  %v10143_v16 = vrot.slane %v8318_v31, 4  ;;  %v3005_v53 = vld [vmem:[#allocation3 + $0x50] sm:$0x44] }
 0x11b   : > { %v2476_v33 = vsel %vm10037_vm8, %v2462_v11, %v2475_v9  ;;  %2699 = vst [vmem:[#allocation3 + $0x50] sm:$0x22] %v2698_v25  ;;  %6326 = vmatmul.mubr.msk.bf16.vlgmr.msra.gmra.mrb[4].mxu0 %vm10142_vm15, %v8312_v21  ;;  %v8639_v9 = vrot.slane %v9985_v51, 4  ;;  %vm10144_vm5 = vcmask 1031168   ;;  %v8646_v60 = vrot.slane %v9987_v28, 4 }
 0x11c   : > { %2477 = vst [vmem:[#allocation3 + $0x50] sm:$0x11] %v2476_v33  ;;  %v3095_v52 = vsel %vm9997_vm3, %v10143_v16, %v9986_v8  ;;  %3580 = vmatprep.mubr.bf16.mxu0 %v10097_v63  ;;  %v8650_v25 = vpop.permute.xlu1 %1202  ;;  %v769_v51 = vld [vmem:[#allocation3 + $0x10] sm:$0x11]  ;;  %vm10146_vm9 = vcmask 1039360  }
 0x11d   : > { %v3096_v23 = vsel %vm10144_vm5, %v8318_v31, %v3095_v52  ;;  %v8648_v11 = vpop.permute.xlu0 %6866  ;;  %v2991_v16 = vsel %vm9997_vm3, %v8367_v24, %v8639_v9  ;;  %v10145_v52 = vunpack.i.h.bf16 %v8347_v61  ;;  %v750_v48 = vsel %vm9997_vm3, %v8371_v27, %v8646_v60  ;;  %vm10148_vm15 = vmmov %vm10146_vm9 }
 0x11e   : > { %v3110_v33 = vsel %vm7621_vm6, %v3096_v23, %v3109_v37  ;;  %v9991_v8 = vunpack.i.h.bf16 %v8648_v11  ;;  %v9992_v31 = vunpack.i.l.bf16 %v8648_v11  ;;  %v9990_v37 = vrot.slane %v8650_v25, 4 }
 0x11f   : > { %3111 = vst [vmem:[#allocation3 + $0x50] sm:$0x88] %v3110_v33  ;;  %v2992_v28 = vsel %vm10146_vm9, %v10145_v52, %v2991_v16  ;;  %v10147_v24 = vunpack.i.l.bf16 %v8347_v61  ;;  %vm10150_vm5 = vcmask 785408   ;;  %vm10153_vm9 = vcmask 1022976  }
 0x120   : > { %v3006_v23 = vsel %vm7572_vm14, %v2992_v28, %v3005_v53  ;;  %v8673_v33 = vrot.slane %v9991_v8, 4  ;;  %v8677_v16 = vrot.slane %v9992_v31, 4  ;;  %v10149_v28 = vrot.slane %v8375_v39, 4 }
 0x121   : > { %v751_v35 = vsel %vm10148_vm15, %v10147_v24, %v750_v48  ;;  %3007 = vst [vmem:[#allocation3 + $0x50] sm:$0x44] %v3006_v23  ;;  %v8686_v53 = vpop.permute.xlu0 %1436  ;;  %v8688_v48 = vpop.permute.xlu1 %1662  ;;  %vm10155_vm15 = vmmov %vm10153_vm9 }
 0x122   : > { %v770_v27 = vsel %vm8013_vm13, %v751_v35, %v769_v51  ;;  %v1216_v61 = vsel %vm9997_vm3, %v10149_v28, %v9990_v37  ;;  %v3217_v52 = vsel %vm9997_vm3, %v8359_v36, %v8673_v33  ;;  %v983_v23 = vsel %vm9997_vm3, %v8363_v2, %v8677_v16  ;;  %v1235_v35 = vld [vmem:[#allocation3 + $0x10] sm:$0x44]  ;;  %v1002_v28 = vld [vmem:[#allocation3 + $0x10] sm:$0x22] }
 0x123   : > { %771 = vst [vmem:[#allocation3 + $0x10] sm:$0x11] %v770_v27  ;;  %v1217_v51 = vsel %vm10150_vm5, %v8375_v39, %v1216_v61  ;;  %v1443_v24 = vrot.slane %v8686_v53, 4  ;;  %v10151_v37 = vld [vmem:[#allocation8_spill] sm:$0xff]  ;;  %v1669_v36 = vrot.slane %v8688_v48, 4  ;;  %vm10156_vm5 = vcmask 769024  }
 0x124   : > { %v10152_v8 = vunpack.i.l.bf16 %v10151_v37  ;;  %v1236_v27 = vsel %vm7572_vm14, %v1217_v51, %v1235_v35  ;;  %v10154_v39 = vunpack.i.h.bf16 %v10151_v37 }
 0x125   : > { %1237 = vst [vmem:[#allocation3 + $0x10] sm:$0x44] %v1236_v27  ;;  %v1450_v2 = vsel %vm9997_vm3, %v1442_v56, %v1443_v24  ;;  %v8722_v35 = vpop.permute.xlu0 %1889  ;;  %v8724_v51 = vpop.permute.xlu1 %2116 }
 0x126   : > { %v984_v31 = vsel %vm10153_vm9, %v10152_v8, %v983_v23  ;;  %v3218_v61 = vsel %vm10155_vm15, %v10154_v39, %v3217_v52  ;;  %v1469_v8 = vld [vmem:[#allocation3 + $0x10] sm:$0x88]  ;;  %v1451_v23 = vsel %vm10156_vm5, %v8373_v29, %v1450_v2  ;;  %v1690_v52 = vld [vmem:[#allocation3 + $0x30] sm:$0x11]  ;;  %v1896_v29 = vrot.slane %v8722_v35, 4 }
 0x127   : > { %v1003_v20 = vsel %vm7550_vm10, %v984_v31, %v1002_v28  ;;  %v1676_v31 = vsel %vm9997_vm3, %v1668_v41, %v1669_v36  ;;  %v3231_v56 = vld [vmem:[#allocation3 + $0x50] sm:$0x88]  ;;  %v1470_v37 = vsel %vm8041_vm2, %v1451_v23, %v1469_v8  ;;  %v2123_v28 = vrot.slane %v8724_v51, 4  ;;  %v1917_v39 = vld [vmem:[#allocation3 + $0x30] sm:$0x22] }
 0x128   : > { %1004 = vst [vmem:[#allocation3 + $0x10] sm:$0x22] %v1003_v20  ;;  %v1677_v20 = vsel %vm1672_vm4, %v8422_v15, %v1676_v31  ;;  %v3232_v27 = vsel %vm8041_vm2, %v3218_v61, %v3231_v56  ;;  %1471 = vst [vmem:[#allocation3 + $0x10] sm:$0x88] %v1470_v37  ;;  %v1903_v2 = vsel %vm9997_vm3, %v1895_v18, %v1896_v29  ;;  %v2144_v8 = vld [vmem:[#allocation3 + $0x30] sm:$0x44] }
 0x129   : > { %v1691_v41 = vsel %vm8013_vm13, %v1677_v20, %v1690_v52  ;;  %3233 = vst [vmem:[#allocation3 + $0x50] sm:$0x88] %v3232_v27  ;;  %v2130_v15 = vsel %vm9997_vm3, %v2122_v17, %v2123_v28  ;;  %v1904_v61 = vsel %vm1899_vm0, %v8420_v32, %v1903_v2  ;;  %v8750_v31 = vpop.permute.xlu0 %2344  ;;  %v8752_v56 = vpop.permute.xlu1 %2565  ;;  %v2372_v20 = vld [vmem:[#allocation3 + $0x30] sm:$0x88]  ;;  %vm10157_vm9 = vcmask 244736  }
 0x12a   : > { %1692 = vst [vmem:[#allocation3 + $0x30] sm:$0x11] %v1691_v41  ;;  %v2131_v23 = vsel %vm2126_vm12, %v8451_v43, %v2130_v15  ;;  %v1918_v18 = vsel %vm7550_vm10, %v1904_v61, %v1917_v39  ;;  %v2351_v17 = vrot.slane %v8750_v31, 4  ;;  %v2572_v52 = vrot.slane %v8752_v56, 4  ;;  %v2593_v41 = vld [vmem:[#allocation3 + $0x50] sm:$0x11] }
 0x12b   : > { %v2145_v37 = vsel %vm7572_vm14, %v2131_v23, %v2144_v8  ;;  %1919 = vst [vmem:[#allocation3 + $0x30] sm:$0x22] %v1918_v18  ;;  %v2820_v18 = vld [vmem:[#allocation3 + $0x50] sm:$0x22]  ;;  %vm10158_vm15 = vcmask 228352   ;;  %vm10159_vm5 = vcmask 1014784  }
 0x12c   : > { %2146 = vst [vmem:[#allocation3 + $0x30] sm:$0x44] %v2145_v37  ;;  %v2358_v32 = vsel %vm9997_vm3, %v2350_v42, %v2351_v17  ;;  %v2579_v43 = vsel %vm9997_vm3, %v2571_v3, %v2572_v52 }
 0x12d   : > { %v2359_v27 = vsel %vm2354_vm1, %v8449_v38, %v2358_v32  ;;  %v2580_v2 = vsel %vm10157_vm9, %v8475_v6, %v2579_v43  ;;  %v8774_v15 = vpop.permute.xlu0 %2792  ;;  %v8776_v39 = vpop.permute.xlu1 %3306  ;;  %v3333_v38 = vld [vmem:[#allocation3 + $0x70] sm:$0x11]  ;;  %vm10160_vm9 = vcmask 1031168  }
 0x12e   : > { %v2373_v42 = vsel %vm8041_vm2, %v2359_v27, %v2372_v20  ;;  %v2594_v61 = vsel %vm8013_vm13, %v2580_v2, %v2593_v41  ;;  %v2799_v3 = vrot.slane %v8774_v15, 4  ;;  %v3313_v8 = vrot.slane %v8776_v39, 4 }
 0x12f   : > { %2374 = vst [vmem:[#allocation3 + $0x30] sm:$0x88] %v2373_v42  ;;  %2595 = vst [vmem:[#allocation3 + $0x50] sm:$0x11] %v2594_v61  ;;  %v1110_v42 = vld [vmem:[#allocation3 + $0x18] sm:$0x44] }
 0x130   : > { %v2806_v6 = vsel %vm9997_vm3, %v2798_v10, %v2799_v3  ;;  %v3319_v23 = vsel %vm9997_vm3, %v3312_v49, %v3313_v8  ;;  %v877_v49 = vld [vmem:[#allocation3 + $0x18] sm:$0x22] }
 0x131   : > { %v2807_v37 = vsel %vm10158_vm15, %v8473_v46, %v2806_v6  ;;  %v3320_v32 = vsel %vm10159_vm5, %v8499_v4, %v3319_v23  ;;  %v848_v43 = vpop.permute.xlu0 %847  ;;  %v1081_v20 = vpop.permute.xlu1 %1080  ;;  %vm10161_vm15 = vmmov %vm10159_vm5  ;;  %vm10163_vm5 = vcmask 777216  }
 0x132   : > { %v2821_v27 = vsel %vm7550_vm10, %v2807_v37, %v2820_v18  ;;  %v3334_v10 = vsel %vm10037_vm8, %v3320_v32, %v3333_v38  ;;  %v853_v41 = vrot.slane %v848_v43, 4  ;;  %v1086_v2 = vrot.slane %v1081_v20, 4  ;;  %v3342_v43 = vld [vmem:[#allocation3 + $0x10] sm:$0xff] }
 0x133   : > { %2822 = vst [vmem:[#allocation3 + $0x50] sm:$0x22] %v2821_v27  ;;  %3335 = vst [vmem:[#allocation3 + $0x70] sm:$0x11] %v3334_v10  ;;  %v1575_v27 = vld [vmem:[#allocation3 + $0x38] sm:$0x11] }
 0x134   : > { %v861_v46 = vsel %vm9997_vm3, %v852_v44, %v853_v41  ;;  %v1094_v4 = vsel %vm9997_vm3, %v1085_v12, %v1086_v2  ;;  %v1344_v12 = vld [vmem:[#allocation3 + $0x18] sm:$0x88]  ;;  %v10162_v41 = vrot.slane %v8547_v14, 4 }
 0x135   : > { %v862_v61 = vsel %vm10160_vm9, %v8497_v57, %v861_v46  ;;  %v1095_v38 = vsel %vm10161_vm15, %v8523_v0, %v1094_v4  ;;  %v1315_v6 = vpop.permute.xlu0 %1314  ;;  %v1547_v23 = vpop.permute.xlu1 %1546  ;;  %vm10164_vm9 = vcmask 760832   ;;  %vm10167_vm15 = vcmask 523264  }
 0x136   : > { %v878_v18 = vsel %vm7593_vm11, %v862_v61, %v877_v49  ;;  %v1111_v37 = vsel %vm7559_vm7, %v1095_v38, %v1110_v42  ;;  %v1320_v32 = vrot.slane %v1315_v6, 4  ;;  %v1552_v44 = vrot.slane %v1547_v23, 4  ;;  %v3346_v20 = vld [vmem:[#allocation3 + $0x30] sm:$0xff] }
 0x137   : > { %879 = vst [vmem:[#allocation3 + $0x18] sm:$0x22] %v878_v18  ;;  %1112 = vst [vmem:[#allocation3 + $0x18] sm:$0x44] %v1111_v37  ;;  %v6313_v57 = vcombine.low %v3342_v43, %v3346_v20  ;;  %v6314_v10 = vcombine.high %v3342_v43, %v3346_v20  ;;  %v2024_v37 = vld [vmem:[#allocation3 + $0x38] sm:$0x44] }
 0x138   : > { %v1328_v0 = vsel %vm9997_vm3, %v1319_v45, %v1320_v32  ;;  %v1560_v2 = vsel %vm9997_vm3, %v10162_v41, %v1552_v44  ;;  %v10165_v44 = vrot.slane %v8545_v26, 4  ;;  %v10166_v20 = vrot.slane %v8571_v47, 4 }
 0x139   : > { %v1329_v49 = vsel %vm10163_vm5, %v8521_v13, %v1328_v0  ;;  %v1561_v42 = vsel %vm10164_vm9, %v8547_v14, %v1560_v2  ;;  %v1769_v46 = vpop.permute.xlu0 %1768  ;;  %v1996_v4 = vpop.permute.xlu1 %1995  ;;  %3548 = vmatprep.subr.bf16.mxu0 %v6314_v10  ;;  %v1797_v13 = vld [vmem:[#allocation3 + $0x38] sm:$0x22]  ;;  %vm10168_vm5 = vcmask 506880   ;;  %vm10172_vm9 = vcmask 252928  }
 0x13a   : > { %v1345_v61 = vsel %vm7621_vm6, %v1329_v49, %v1344_v12  ;;  %v1576_v38 = vsel %vm10037_vm8, %v1561_v42, %v1575_v27  ;;  %v1774_v45 = vrot.slane %v1769_v46, 4  ;;  %v2001_v6 = vrot.slane %v1996_v4, 4  ;;  %3549 = vmatpush1.bf16.msra.mxu0 %v6313_v57  ;;  %v3350_v23 = vld [vmem:[#allocation3 + $0x50] sm:$0xff]  ;;  %v6893_v49 = vld [vmem:[%s9881_s3 + $0x4] ss:$8 sps:$4 sm:$0xff]  }
 0x13b   : > { %v3354_v18 = vld [vmem:[#allocation3 + $0x70] sm:$0x11]  ;;  %1346 = vst [vmem:[#allocation3 + $0x18] sm:$0x88] %v1345_v61  ;;  %1577 = vst [vmem:[#allocation3 + $0x38] sm:$0x11] %v1576_v38 }
 0x13c   : > { %v6321_v32 = vcombine.low %v3350_v23, %v3354_v18  ;;  %v6322_v14 = vcombine.high %v3350_v23, %v3354_v18  ;;  %v1782_v43 = vsel %vm9997_vm3, %v10165_v44, %v1774_v45  ;;  %v2009_v12 = vsel %vm9997_vm3, %v10166_v20, %v2001_v6  ;;  %v2478_v61 = vld [vmem:[#allocation3 + $0x58] sm:$0x11] }
 0x13d   : > { %v1783_v27 = vsel %vm10167_vm15, %v8545_v26, %v1782_v43  ;;  %v2010_v57 = vsel %vm10168_vm5, %v8571_v47, %v2009_v12  ;;  %v2224_v10 = vpop.permute.xlu0 %2223  ;;  %v2450_v0 = vpop.permute.xlu1 %2449  ;;  %v2252_v47 = vld [vmem:[#allocation3 + $0x38] sm:$0x88]  ;;  %v10169_v38 = vrot.slane %v8569_v58, 4  ;;  %v10170_v6 = vrot.slane %v8595_v5, 4 }
 0x13e   : > { %v3458_v41 = vand.u32 %v6322_v14, %v8263_v62  ;;  %v3455_v2 = vand.u32 %v6321_v32, %v8263_v62  ;;  %v1798_v42 = vsel %vm7593_vm11, %v1783_v27, %v1797_v13  ;;  %v2025_v46 = vsel %vm7559_vm7, %v2010_v57, %v2024_v37  ;;  %v6896_v14 = vld [vmem:[%s9881_s3 + $0x14] ss:$8 sps:$4 sm:$0xff]  }
 0x13f   : > { %v2229_v26 = vrot.slane %v2224_v10, 4  ;;  %v2455_v4 = vrot.slane %v2450_v0, 4  ;;  %1799 = vst [vmem:[#allocation3 + $0x38] sm:$0x22] %v1798_v42  ;;  %2026 = vst [vmem:[#allocation3 + $0x38] sm:$0x44] %v2025_v46 }
 0x140   : > { %3550 = vmatprep.subr.bf16.mxu0 %v3458_v41  ;;  %vm10171_vm7 = vcmask 490496   ;;  %v3112_v27 = vld [vmem:[#allocation3 + $0x58] sm:$0x88]  ;;  %vm10173_vm15 = vcmask 203776   ;;  %v10175_v10 = vrot.slane %v8619_v34, 4  ;;  %vm10176_vm5 = vcmask 236544  }
 0x141   : > { %v2237_v45 = vsel %vm9997_vm3, %v10169_v38, %v2229_v26  ;;  %v2463_v23 = vsel %vm9997_vm3, %v10170_v6, %v2455_v4  ;;  %3551 = vmatpush1.bf16.msra.mxu0 %v3455_v2  ;;  %v2672_v37 = vpop.permute.xlu0 %2671  ;;  %v3085_v32 = vpop.permute.xlu1 %3084  ;;  %v6894_v41 = vld [vmem:[%s9881_s3 + $0x10] ss:$8 sps:$4 sm:$0xff]   ;;  %v6899_v46 = vld [vmem:[%s9881_s3 + $0x24] ss:$8 sps:$4 sm:$0xff]  }
 0x142   : > { %v2238_v18 = vsel %vm10171_vm7, %v8569_v58, %v2237_v45  ;;  %v2464_v13 = vsel %vm10172_vm9, %v8595_v5, %v2463_v23  ;;  %4454 = vmatprep.subr.bf16.mxu0 %v6893_v49  ;;  %v2677_v20 = vrot.slane %v2672_v37, 4  ;;  %v3090_v12 = vrot.slane %v3085_v32, 4  ;;  %v2700_v58 = vld [vmem:[#allocation3 + $0x58] sm:$0x22]  ;;  %v772_v6 = vld [vmem:[#allocation3 + $0x18] sm:$0x11] }
 0x143   : > { %v2253_v44 = vsel %vm7621_vm6, %v2238_v18, %v2252_v47  ;;  %v2479_v43 = vsel %vm10037_vm8, %v2464_v13, %v2478_v61  ;;  %v10174_v5 = vrot.slane %v8593_v30, 4  ;;  %vm10177_vm7 = vcmask 1031168   ;;  %v6897_v23 = vld [vmem:[%s9881_s3 + $0x20] ss:$8 sps:$4 sm:$0xff]   ;;  %v6902_v37 = vld [vmem:[%s9881_s3 + $0x34] ss:$8 sps:$4 sm:$0xff]  }
 0x144   : > { %2254 = vst [vmem:[#allocation3 + $0x38] sm:$0x88] %v2253_v44  ;;  %2480 = vst [vmem:[#allocation3 + $0x58] sm:$0x11] %v2479_v43  ;;  %6327 = vmatmul.mubr.msk.bf16.vlgmr.msra.gmra.mrb[8].mxu0 %vm10173_vm15, %v8312_v21  ;;  %v3097_v0 = vsel %vm9997_vm3, %v10175_v10, %v3090_v12  ;;  %v1005_v10 = vld [vmem:[#allocation3 + $0x18] sm:$0x22] }
 0x145   : > { %v2685_v57 = vsel %vm9997_vm3, %v10174_v5, %v2677_v20  ;;  %4455 = vmatpush1.bf16.msra.mxu0 %v6891_v55  ;;  %v3098_v49 = vsel %vm10177_vm7, %v8619_v34, %v3097_v0  ;;  %v6872_v21 = vpop.permute.xlu0 %6871  ;;  %v6877_v42 = vpop.permute.xlu1 %6876  ;;  %v3008_v55 = vld [vmem:[#allocation3 + $0x58] sm:$0x44]  ;;  %v10178_v20 = vunpack.i.l.bf16 %v8621_v40  ;;  %v10182_v0 = vunpack.i.l.bf16 %v8648_v11 }
 0x146   : > { %v2686_v2 = vsel %vm10176_vm5, %v8593_v30, %v2685_v57  ;;  %4456 = vmatprep.subr.bf16.mxu0 %v6896_v14  ;;  %v3113_v4 = vsel %vm7621_vm6, %v3098_v49, %v3112_v27  ;;  %v6874_v47 = vunpack.i.h.bf16 %v6872_v21  ;;  %v6873_v61 = vunpack.i.l.bf16 %v6872_v21 }
 0x147   : > { %v2701_v26 = vsel %vm7593_vm11, %v2686_v2, %v2700_v58  ;;  %3114 = vst [vmem:[#allocation3 + $0x58] sm:$0x88] %v3113_v4  ;;  %v6879_v30 = vunpack.i.h.bf16 %v6877_v42  ;;  %v6878_v38 = vunpack.i.l.bf16 %v6877_v42  ;;  %vm10179_vm11 = vcmask 1039360   ;;  %v1238_v42 = vld [vmem:[#allocation3 + $0x18] sm:$0x44] }
 0x148   : > { %2702 = vst [vmem:[#allocation3 + $0x58] sm:$0x22] %v2701_v26  ;;  %v2986_v34 = vrot.slane %v6874_v47, 4  ;;  %v743_v45 = vrot.slane %v6873_v61, 4  ;;  %v10180_v58 = vunpack.i.h.bf16 %v8621_v40  ;;  %vm10181_vm6 = vmmov %vm10179_vm11  ;;  %vm10183_vm9 = vcmask 1022976  }
 0x149   : > { %4457 = vmatpush1.bf16.msra.mxu0 %v6894_v41  ;;  %v3212_v1 = vrot.slane %v6879_v30, 4  ;;  %v977_v18 = vrot.slane %v6878_v38, 4  ;;  %v1205_v13 = vpop.permute.xlu0 %1204  ;;  %v1439_v7 = vpop.permute.xlu1 %1438  ;;  %v6900_v40 = vld [vmem:[%s9881_s3 + $0x30] ss:$8 sps:$4 sm:$0xff]   ;;  %vm10185_vm15 = vmmov %vm10183_vm9  ;;  %v10186_v49 = vrot.slane %v8650_v25, 4  ;;  %vm10187_vm5 = vcmask 785408  }
 0x14a   : > { %4458 = vmatprep.subr.bf16.mxu0 %v6899_v46  ;;  %v752_v32 = vsel %vm9997_vm3, %v8646_v60, %v743_v45  ;;  %v2993_v14 = vsel %vm9997_vm3, %v8639_v9, %v2986_v34  ;;  %v1210_v44 = vrot.slane %v1205_v13, 4  ;;  %v1444_v43 = vrot.slane %v1439_v7, 4  ;;  %v1472_v30 = vld [vmem:[#allocation3 + $0x18] sm:$0x88]  ;;  %v1920_v13 = vld [vmem:[#allocation3 + $0x38] sm:$0x22] }
 0x14b   : > { %v753_v12 = vsel %vm10179_vm11, %v10178_v20, %v752_v32  ;;  %v2994_v27 = vsel %vm10181_vm6, %v10180_v58, %v2993_v14  ;;  %v3219_v5 = vsel %vm9997_vm3, %v8673_v33, %v3212_v1  ;;  %v985_v57 = vsel %vm9997_vm3, %v8677_v16, %v977_v18  ;;  %v1693_v18 = vld [vmem:[#allocation3 + $0x38] sm:$0x11]  ;;  %v2147_v58 = vld [vmem:[#allocation3 + $0x38] sm:$0x44] }
 0x14c   : > { %v773_v60 = vsel %vm8013_vm13, %v753_v12, %v772_v6  ;;  %v3009_v9 = vsel %vm7572_vm14, %v2994_v27, %v3008_v55  ;;  %v986_v41 = vsel %vm10183_vm9, %v10182_v0, %v985_v57  ;;  %v10184_v33 = vunpack.i.h.bf16 %v8648_v11  ;;  %v6905_v11 = vld [vmem:[%s9881_s3 + $0x44] ss:$8 sps:$4 sm:$0xff]   ;;  %v6903_v55 = vld [vmem:[%s9881_s3 + $0x40] ss:$8 sps:$4 sm:$0xff]   ;;  %v6906_v20 = vld [vmem:[%s9881_s3 + $0x50] ss:$8 sps:$4 sm:$0xff]  }
 0x14d   : > { %4459 = vmatpush1.bf16.msra.mxu0 %v6897_v23  ;;  %774 = vst [vmem:[#allocation3 + $0x18] sm:$0x11] %v773_v60  ;;  %3010 = vst [vmem:[#allocation3 + $0x58] sm:$0x44] %v3009_v9  ;;  %v1006_v2 = vsel %vm7550_vm10, %v986_v41, %v1005_v10  ;;  %v1218_v21 = vsel %vm9997_vm3, %v10186_v49, %v1210_v44  ;;  %v1452_v46 = vsel %vm9997_vm3, %v1443_v24, %v1444_v43  ;;  %v1665_v26 = vpop.permute.xlu0 %1664  ;;  %v1892_v4 = vpop.permute.xlu1 %1891  ;;  %vm10188_vm7 = vcmask 769024  }
 0x14e   : > { %v3220_v16 = vsel %vm10185_vm15, %v10184_v33, %v3219_v5  ;;  %4460 = vmatprep.subr.bf16.mxu0 %v6902_v37  ;;  %v3234_v47 = vld [vmem:[#allocation3 + $0x58] sm:$0x88]  ;;  %1007 = vst [vmem:[#allocation3 + $0x18] sm:$0x22] %v1006_v2  ;;  %v1219_v61 = vsel %vm10187_vm5, %v8650_v25, %v1218_v21  ;;  %v1453_v38 = vsel %vm10188_vm7, %v8686_v53, %v1452_v46  ;;  %v1670_v34 = vrot.slane %v1665_v26, 4 }
 0x14f   : > { %v1897_v45 = vrot.slane %v1892_v4, 4  ;;  %v3235_v24 = vsel %vm8041_vm2, %v3220_v16, %v3234_v47  ;;  %v1239_v6 = vsel %vm7572_vm14, %v1219_v61, %v1238_v42  ;;  %v1473_v23 = vsel %vm8041_vm2, %v1453_v38, %v1472_v30  ;;  %v2375_v27 = vld [vmem:[#allocation3 + $0x38] sm:$0x88]  ;;  %v2596_v41 = vld [vmem:[#allocation3 + $0x58] sm:$0x11] }
 0x150   : > { %3236 = vst [vmem:[#allocation3 + $0x58] sm:$0x88] %v3235_v24  ;;  %1240 = vst [vmem:[#allocation3 + $0x18] sm:$0x44] %v1239_v6  ;;  %v1678_v25 = vsel %vm9997_vm3, %v1669_v36, %v1670_v34  ;;  %v6908_v36 = vld [vmem:[%s9881_s3 + $0x54] ss:$8 sps:$4 sm:$0xff]  }
 0x151   : > { %1474 = vst [vmem:[#allocation3 + $0x18] sm:$0x88] %v1473_v23  ;;  %v1905_v53 = vsel %vm9997_vm3, %v1896_v29, %v1897_v45  ;;  %4461 = vmatpush1.bf16.msra.mxu0 %v6900_v40  ;;  %v1679_v1 = vsel %vm1672_vm4, %v8688_v48, %v1678_v25  ;;  %v2119_v37 = vpop.permute.xlu0 %2118  ;;  %v2823_v40 = vld [vmem:[#allocation3 + $0x58] sm:$0x22]  ;;  %vm10191_vm4 = vcmask 1014784   ;;  %vm4649_vm11 = vcmask 556039  }
 0x152   : > { %v1906_v7 = vsel %vm1899_vm0, %v8722_v35, %v1905_v53  ;;  %v2347_v32 = vpop.permute.xlu1 %2346  ;;  %4462 = vmatprep.subr.bf16.mxu0 %v6905_v11  ;;  %v1694_v29 = vsel %vm8013_vm13, %v1679_v1, %v1693_v18  ;;  %v2124_v44 = vrot.slane %v2119_v37, 4  ;;  %vm10190_vm0 = vcmask 228352   ;;  %v6912_v21 = vld [vmem:[%s9881_s3 + $0x70] ss:$8 sps:$4 sm:$0xff]   ;;  %v6915_v11 = vld [vmem:[%s9881_s3 + $0x80] ss:$8 sps:$4 sm:$0xff]   ;;  %vm10195_vm6 = vmmov %vm10191_vm4 }
 0x153   : > { %v1921_v14 = vsel %vm7550_vm10, %v1906_v7, %v1920_v13  ;;  %v2352_v48 = vrot.slane %v2347_v32, 4  ;;  %1695 = vst [vmem:[#allocation3 + $0x38] sm:$0x11] %v1694_v29  ;;  %v6923_v47 = vld [vmem:[%s9881_s3 + $0xa4] ss:$8 sps:$4 sm:$0xff]   ;;  %vm10196_vm9 = vcmask 1043459  }
 0x154   : > { %1922 = vst [vmem:[#allocation3 + $0x38] sm:$0x22] %v1921_v14  ;;  %v2132_v35 = vsel %vm9997_vm3, %v2123_v28, %v2124_v44  ;;  %v6911_v28 = vld [vmem:[%s9881_s3 + $0x64] ss:$8 sps:$4 sm:$0xff]   ;;  %v6921_v45 = vld [vmem:[%s9881_s3 + $0xa0] ss:$8 sps:$4 sm:$0xff]   ;;  %vm9407_vm15 = vmor %vm4649_vm11, %vm10196_vm9 }
 0x155   : > { %v2360_v43 = vsel %vm9997_vm3, %v2351_v17, %v2352_v48  ;;  %4463 = vmatpush1.bf16.msra.mxu0 %v6903_v55  ;;  %v2133_v12 = vsel %vm2126_vm12, %v8724_v51, %v2132_v35  ;;  %v2568_v57 = vpop.permute.xlu0 %2567  ;;  %v6926_v23 = vld [vmem:[%s9881_s3 + $0xb4] ss:$8 sps:$4 sm:$0xff]   ;;  %v6924_v25 = vld [vmem:[%s9881_s3 + $0xb0] ss:$8 sps:$4 sm:$0xff]   ;;  %v6929_v53 = vld [vmem:[%s9881_s3 + $0xc4] ss:$8 sps:$4 sm:$0xff]  }
 0x156   : > { %v2361_v5 = vsel %vm2354_vm1, %v8750_v31, %v2360_v43  ;;  %v2795_v60 = vpop.permute.xlu1 %2794  ;;  %4464 = vmatprep.subr.bf16.mxu0 %v6908_v36  ;;  %v2148_v17 = vsel %vm7572_vm14, %v2133_v12, %v2147_v58  ;;  %v2573_v10 = vrot.slane %v2568_v57, 4  ;;  %vm10189_vm14 = vcmask 244736   ;;  %v6927_v55 = vld [vmem:[%s9881_s3 + $0xc0] ss:$8 sps:$4 sm:$0xff]   ;;  %v6932_v1 = vld [vmem:[%s9881_s3 + $0xd4] ss:$8 sps:$4 sm:$0xff]  }
 0x157   : > { %v2376_v9 = vsel %vm8041_vm2, %v2361_v5, %v2375_v27  ;;  %v2800_v51 = vrot.slane %v2795_v60, 4  ;;  %2149 = vst [vmem:[#allocation3 + $0x38] sm:$0x44] %v2148_v17  ;;  %v6930_v18 = vld [vmem:[%s9881_s3 + $0xd0] ss:$8 sps:$4 sm:$0xff]   ;;  %vm4630_vm2 = vcmask 1042976  }
 0x158   : > { %2377 = vst [vmem:[#allocation3 + $0x38] sm:$0x88] %v2376_v9  ;;  %v2581_v31 = vsel %vm9997_vm3, %v2572_v52, %v2573_v10  ;;  %v6914_v52 = vld [vmem:[%s9881_s3 + $0x74] ss:$8 sps:$4 sm:$0xff]   ;;  %v6935_v13 = vld [vmem:[%s9881_s3 + $0xe4] ss:$8 sps:$4 sm:$0xff]  }
 0x159   : > { %v2808_v0 = vsel %vm9997_vm3, %v2799_v3, %v2800_v51  ;;  %4465 = vmatpush1.bf16.msra.mxu0 %v6906_v20  ;;  %v2582_v22 = vsel %vm10189_vm14, %v8752_v56, %v2581_v31  ;;  %v3309_v16 = vpop.permute.xlu0 %3308  ;;  %v3336_v56 = vld [vmem:[#allocation3 + $0x78] sm:$0x11]  ;;  %v6933_v7 = vld [vmem:[%s9881_s3 + $0xe0] ss:$8 sps:$4 sm:$0xff]   ;;  %v6941_v36 = vld [vmem:[%s9881_s3 + $0x104] ss:$8 sps:$4 sm:$0xff]  }
 0x15a   : > { %v2809_v33 = vsel %vm10190_vm0, %v8774_v15, %v2808_v0  ;;  %4466 = vmatprep.subr.bf16.mxu0 %v6911_v28  ;;  %v2597_v3 = vsel %vm8013_vm13, %v2582_v22, %v2596_v41  ;;  %v3314_v49 = vrot.slane %v3309_v16, 4  ;;  %v3343_v46 = vld [vmem:[#allocation3 + $0x18] sm:$0xff]  ;;  %vm4627_vm13 = vcmask 555012  }
 0x15b   : > { %v2824_v2 = vsel %vm7550_vm10, %v2809_v33, %v2823_v40  ;;  %2598 = vst [vmem:[#allocation3 + $0x58] sm:$0x11] %v2597_v3  ;;  %vm10192_vm10 = vcmask 203776   ;;  %v6938_v37 = vld [vmem:[%s9881_s3 + $0xf4] ss:$8 sps:$4 sm:$0xff]   ;;  %vm5099_vm12 = vcmask 179200  }
 0x15c   : > { %2825 = vst [vmem:[#allocation3 + $0x58] sm:$0x22] %v2824_v2  ;;  %v3321_v15 = vsel %vm9997_vm3, %v3313_v8, %v3314_v49  ;;  %v6936_v32 = vld [vmem:[%s9881_s3 + $0xf0] ss:$8 sps:$4 sm:$0xff]   ;;  %v6939_v10 = vld [vmem:[%s9881_s3 + $0x100] ss:$8 sps:$4 sm:$0xff]  }
 0x15d   : > { %4467 = vmatpush1.bf16.msra.mxu0 %v6909_v59  ;;  %v3322_v19 = vsel %vm10191_vm4, %v8776_v39, %v3321_v15  ;;  %v6920_v39 = vld [vmem:[%s9881_s3 + $0x94] ss:$8 sps:$4 sm:$0xff]   ;;  %v6942_v0 = vld [vmem:[%s9881_s3 + $0x110] ss:$8 sps:$4 sm:$0xff]   ;;  %v6947_v59 = vld [vmem:[%s9881_s3 + $0x124] ss:$8 sps:$4 sm:$0xff]  }
 0x15e   : > { %4468 = vmatprep.subr.bf16.mxu0 %v6914_v52  ;;  %v3337_v42 = vsel %vm10037_vm8, %v3322_v19, %v3336_v56  ;;  %v6944_v31 = vld [vmem:[%s9881_s3 + $0x114] ss:$8 sps:$4 sm:$0xff]   ;;  %v6945_v22 = vld [vmem:[%s9881_s3 + $0x120] ss:$8 sps:$4 sm:$0xff]   ;;  %v6948_v40 = vld [vmem:[%s9881_s3 + $0x130] ss:$8 sps:$4 sm:$0xff]  }
 0x15f   : > { %v3347_v26 = vld [vmem:[#allocation3 + $0x38] sm:$0xff]  ;;  %3338 = vst [vmem:[#allocation3 + $0x78] sm:$0x11] %v3337_v42  ;;  %v6953_v33 = vld [vmem:[%s9881_s3 + $0x144] ss:$8 sps:$4 sm:$0xff]   ;;  %vm4626_vm8 = vcmask 1042432  }
 0x160   : > { %v6316_v8 = vcombine.high %v3343_v46, %v3347_v26  ;;  %v6315_v4 = vcombine.low %v3343_v46, %v3347_v26  ;;  %v6950_v41 = vld [vmem:[%s9881_s3 + $0x134] ss:$8 sps:$4 sm:$0xff]   ;;  %v6951_v2 = vld [vmem:[%s9881_s3 + $0x140] ss:$8 sps:$4 sm:$0xff]   ;;  %v6954_v19 = vld [vmem:[%s9881_s3 + $0x150] ss:$8 sps:$4 sm:$0xff]  }
 0x161   : > { %4469 = vmatpush1.bf16.msra.mxu0 %v6912_v21  ;;  %v6956_v56 = vld [vmem:[%s9881_s3 + $0x154] ss:$8 sps:$4 sm:$0xff]   ;;  %v6957_v42 = vld [vmem:[%s9881_s3 + $0x160] ss:$8 sps:$4 sm:$0xff]   ;;  %vm9371_vm1 = vmor %vm4627_vm13, %vm4626_vm8  ;;  %vm4747_vm5 = vcmask 908288   ;;  %vm4670_vm7 = vcmask 1043458  }
 0x162   : > { %3589 = vmatprep.subr.bf16.mxu1 %v6316_v8  ;;  %4470 = vmatprep.subr.bf16.mxu0 %v6917_v54  ;;  %v6959_v54 = vld [vmem:[%s9881_s3 + $0x164] ss:$8 sps:$4 sm:$0xff]   ;;  %v6962_v46 = vld [vmem:[%s9881_s3 + $0x174] ss:$8 sps:$4 sm:$0xff]   ;;  %v6960_v8 = vld [vmem:[%s9881_s3 + $0x170] ss:$8 sps:$4 sm:$0xff]  }
 0x163   : > { %3590 = vmatpush1.bf16.msra.mxu1 %v6315_v4  ;;  %v3351_v61 = vld [vmem:[#allocation3 + $0x58] sm:$0xff]  ;;  %v6965_v4 = vld [vmem:[%s9881_s3 + $0x184] ss:$8 sps:$4 sm:$0xff]   ;;  %vm4671_vm14 = vcmask 556038   ;;  %vm10199_vm0 = vcmask 1039360   ;;  %vm4686_vm13 = vcmask 1043457  }
 0x164   : > { %vm9416_vm4 = vmor %vm4671_vm14, %vm4670_vm7  ;;  %vm10205_vm9 = vcmask 1022976   ;;  %vm4905_vm7 = vcmask 588800   ;;  %vm4725_vm14 = vcmask 924672   ;;  %vm10212_vm3 = vcmask 1031168  }
 0x165   : > { %4471 = vmatpush1.bf16.msra.mxu0 %v6915_v11 }
 0x166   : > { %4472 = vmatprep.subr.bf16.mxu0 %v6920_v39  ;;  %v3355_v30 = vld [vmem:[#allocation3 + $0x78] sm:$0x11] }
 0x167   : > { %v6324_v38 = vcombine.high %v3351_v61, %v3355_v30  ;;  %v6323_v34 = vcombine.low %v3351_v61, %v3355_v30  ;;  %v9072_v29 = vpop.permute.xlu1 %3359  ;;  %v6968_v61 = vld [vmem:[%s9881_s3 + $0x194] ss:$8 sps:$4 sm:$0xff]   ;;  %v6966_v30 = vld [vmem:[%s9881_s3 + $0x190] ss:$8 sps:$4 sm:$0xff]  }
 0x169   : > { %4473 = vmatpush1.bf16.msra.mxu0 %v6918_v50  ;;  %v3464_v24 = vand.u32 %v6324_v38, %v8263_v62  ;;  %v3461_v6 = vand.u32 %v6323_v34, %v8263_v62  ;;  %v7289_v62 = vld [vmem:[%s9879_s1] sm:$0x7]  ;;  %v6971_v38 = vld [vmem:[%s9881_s3 + $0x1a4] ss:$8 sps:$4 sm:$0xff]  }
 0x16a   : > { %4474 = vmatprep.subr.bf16.mxu0 %v6923_v47  ;;  %v6963_v47 = vld [vmem:[%s9881_s3 + $0x180] ss:$8 sps:$4 sm:$0xff]  }
 0x16b   : > { %3591 = vmatprep.subr.bf16.mxu1 %v3464_v24  ;;  %v6969_v34 = vld [vmem:[%s9881_s3 + $0x1a0] ss:$8 sps:$4 sm:$0xff]  }
 0x16c   : > { %3592 = vmatpush1.bf16.msra.mxu1 %v3461_v6  ;;  %v6972_v6 = vld [vmem:[%s9881_s3 + $0x1b0] ss:$8 sps:$4 sm:$0xff]  }
 0x16d   : > { %4475 = vmatpush1.bf16.msra.mxu0 %v6921_v45  ;;  %v6974_v45 = vld [vmem:[%s9881_s3 + $0x1b4] ss:$8 sps:$4 sm:$0xff]  }
 0x16e   : > { %4476 = vmatprep.subr.bf16.mxu0 %v6926_v23 }
 0x16f   : > { %6328 = vmatmul.mubr.msk.bf16.vlgmr.msra.gmra.mrb[0].mxu1 %vm10192_vm10, %v7289_v62  ;;  %vm4800_vm10 = vcmask 801792  }
 0x171   : > { %4477 = vmatpush1.bf16.msra.mxu0 %v6924_v25 }
 0x172   : > { %4478 = vmatprep.subr.bf16.mxu0 %v6929_v53  ;;  %v6977_v53 = vld [vmem:[%s9881_s3 + $0x1c4] ss:$8 sps:$4 sm:$0xff]  }
 0x175   : > { %4479 = vmatpush1.bf16.msra.mxu0 %v6927_v55  ;;  %v6975_v55 = vld [vmem:[%s9881_s3 + $0x1c0] ss:$8 sps:$4 sm:$0xff]  }
 0x176   : > { %4480 = vmatprep.subr.bf16.mxu0 %v6932_v1  ;;  %v6980_v1 = vld [vmem:[%s9881_s3 + $0x1d4] ss:$8 sps:$4 sm:$0xff]  }
 0x179   : > { %4481 = vmatpush1.bf16.msra.mxu0 %v6930_v18  ;;  %v6978_v18 = vld [vmem:[%s9881_s3 + $0x1d0] ss:$8 sps:$4 sm:$0xff]  }
 0x17a   : > { %4482 = vmatprep.subr.bf16.mxu0 %v6935_v13  ;;  %v6983_v13 = vld [vmem:[%s9881_s3 + $0x1e4] ss:$8 sps:$4 sm:$0xff]  }
 0x17d   : > { %4483 = vmatpush1.bf16.msra.mxu0 %v6933_v7 }
 0x17e   : > { %4484 = vmatprep.subr.bf16.mxu0 %v6938_v37 }
 0x181   : > { %4485 = vmatpush1.bf16.msra.mxu0 %v6936_v32 }
 0x182   : > { %4495 = vmatprep.subr.bf16.mxu0 %v6941_v36  ;;  %v6981_v36 = vld [vmem:[%s9881_s3 + $0x1e0] ss:$8 sps:$4 sm:$0xff]  }
 0x1c2   : > { %v3500_v14 = vpop.f32.mrb[0].mxu0 }
 0x1c3   : > { %v3501_v44 = vadd.f32 %v3500_v14, %v9072_v29  ;;  %v3502_v48 = vpop.f32.mrb[1].mxu0 }
 0x1c4   : > { %v3503_v35 = vadd.f32 %v3502_v48, %v9072_v29  ;;  %v3504_v43 = vpop.f32.mrb[2].mxu0 }
 0x1c5   : > { %v6329_v20 = vmul.f32 -1.442695, %v3501_v44  ;;  %v3505_v12 = vpop.f32.mrb[3].mxu0  ;;  %v6986_v44 = vld [vmem:[%s9881_s3 + $0x1f4] ss:$8 sps:$4 sm:$0xff]  }
 0x1c6   : > { %v6330_v58 = vmul.f32 -1.442695, %v3503_v35  ;;  %v6984_v43 = vld [vmem:[%s9881_s3 + $0x1f0] ss:$8 sps:$4 sm:$0xff]  }
 0x1c7   : > { %7181 = vpow2.f32 %v6329_v20  ;;  %v6989_v20 = vld [vmem:[%s9881_s3 + $0x204] ss:$8 sps:$4 sm:$0xff]  }
 0x1c8   : > { %7183 = vpow2.f32 %v6330_v58  ;;  %v6987_v58 = vld [vmem:[%s9881_s3 + $0x200] ss:$8 sps:$4 sm:$0xff]  }
 0x1d1   : > { %v7182_v27 = vpop.eup %7181 }
 0x1d2   : > { %v7184_v5 = vpop.eup %7183  ;;  %v3654_v57 = vadd.f32 1.0, %v7182_v27 }
 0x1d3   : > { %v3655_v60 = vadd.f32 1.0, %v7184_v5  ;;  %v6992_v5 = vld [vmem:[%s9881_s3 + $0x214] ss:$8 sps:$4 sm:$0xff]  }
 0x1d4   : > { %7185 = vrcp.f32 %v3654_v57  ;;  %v6990_v57 = vld [vmem:[%s9881_s3 + $0x210] ss:$8 sps:$4 sm:$0xff]  }
 0x1d5   : > { %7187 = vrcp.f32 %v3655_v60  ;;  %v6995_v60 = vld [vmem:[%s9881_s3 + $0x224] ss:$8 sps:$4 sm:$0xff]  }
 0x1de   : > { %v7186_v28 = vpop.eup %7185 }
 0x1df   : > { %v7188_v17 = vpop.eup %7187  ;;  %v3678_v51 = vpack.c.bf16 %v7186_v28, %v7186_v28 }
 0x1e0   : > { %v3679_v9 = vpack.c.bf16 %v7188_v17, %v7188_v17 }
 0x1e2   : > { %4486 = vmatprep.mubr.bf16.mxu0 %v3679_v9  ;;  %v6993_v9 = vld [vmem:[%s9881_s3 + $0x220] ss:$8 sps:$4 sm:$0xff]  }
 0x1e3   : > { %4487 = vmatmul.mubr.bf16.vlgmr.msra.gmra.mrb[12].mxu0 %v3678_v51  ;;  %v6996_v51 = vld [vmem:[%s9881_s3 + $0x230] ss:$8 sps:$4 sm:$0xff]  }
 0x1e4   : > { %4496 = vmatpush1.bf16.msra.mxu0 %v6939_v10  ;;  %v6998_v10 = vld [vmem:[%s9881_s3 + $0x234] ss:$8 sps:$4 sm:$0xff]  }
 0x1e5   : > { %4497 = vmatprep.subr.bf16.mxu0 %v6944_v31  ;;  %v7001_v31 = vld [vmem:[%s9881_s3 + $0x244] ss:$8 sps:$4 sm:$0xff]  }
 0x1e8   : > { %4498 = vmatpush1.bf16.msra.mxu0 %v6942_v0  ;;  %v6999_v0 = vld [vmem:[%s9881_s3 + $0x240] ss:$8 sps:$4 sm:$0xff]  }
 0x1e9   : > { %4499 = vmatprep.subr.bf16.mxu0 %v6947_v59  ;;  %v7004_v59 = vld [vmem:[%s9881_s3 + $0x254] ss:$8 sps:$4 sm:$0xff]  }
 0x1ec   : > { %4500 = vmatpush1.bf16.msra.mxu0 %v6945_v22 }
 0x1ed   : > { %4501 = vmatprep.subr.bf16.mxu0 %v6950_v41  ;;  %v7002_v41 = vld [vmem:[%s9881_s3 + $0x250] ss:$8 sps:$4 sm:$0xff]  }
 0x1ee   : > { %v3541_v16 = vpop.f32.mrb[4].mxu0 }
 0x1ef   : > { %v3543_v52 = vpop.f32.mrb[5].mxu0  ;;  %v3542_v26 = vadd.f32 %v3541_v16, %v9072_v29  ;;  %v7005_v16 = vld [vmem:[%s9881_s3 + $0x260] ss:$8 sps:$4 sm:$0xff]  }
 0x1f0   : > { %v3544_v3 = vadd.f32 %v3543_v52, %v9072_v29  ;;  %4502 = vmatpush1.bf16.msra.mxu0 %v6948_v40  ;;  %v3545_v49 = vpop.f32.mrb[6].mxu0  ;;  %v7010_v52 = vld [vmem:[%s9881_s3 + $0x274] ss:$8 sps:$4 sm:$0xff]  }
 0x1f1   : > { %4503 = vmatprep.subr.bf16.mxu0 %v6953_v33  ;;  %v3546_v15 = vpop.f32.mrb[7].mxu0  ;;  %v6331_v39 = vmul.f32 -1.442695, %v3542_v26  ;;  %v7007_v33 = vld [vmem:[%s9881_s3 + $0x264] ss:$8 sps:$4 sm:$0xff]  }
 0x1f2   : > { %v6332_v21 = vmul.f32 -1.442695, %v3544_v3  ;;  %v7013_v49 = vld [vmem:[%s9881_s3 + $0x284] ss:$8 sps:$4 sm:$0xff]   ;;  %v7011_v15 = vld [vmem:[%s9881_s3 + $0x280] ss:$8 sps:$4 sm:$0xff]  }
 0x1f4   : > { %7189 = vpow2.f32 %v6332_v21  ;;  %4504 = vmatpush1.bf16.msra.mxu0 %v6951_v2  ;;  %v7008_v2 = vld [vmem:[%s9881_s3 + $0x270] ss:$8 sps:$4 sm:$0xff]   ;;  %v7016_v21 = vld [vmem:[%s9881_s3 + $0x294] ss:$8 sps:$4 sm:$0xff]  }
 0x1f5   : > { %4505 = vmatprep.subr.bf16.mxu0 %v6956_v56 }
 0x1f8   : > { %4506 = vmatpush1.bf16.msra.mxu0 %v6954_v19 }
 0x1f9   : > { %4507 = vmatprep.subr.bf16.mxu0 %v6959_v54 }
 0x1fc   : > { %4508 = vmatpush1.bf16.msra.mxu0 %v6957_v42 }
 0x1fd   : > { %4509 = vmatprep.subr.bf16.mxu0 %v6962_v46  ;;  %v7014_v46 = vld [vmem:[%s9881_s3 + $0x290] ss:$8 sps:$4 sm:$0xff]  }
 0x1fe   : > { %v7190_v11 = vpop.eup %7189 }
 0x1ff   : > { %v3657_v50 = vadd.f32 1.0, %v7190_v11 }
 0x200   : > { %4510 = vmatpush1.bf16.msra.mxu0 %v6960_v8  ;;  %v7019_v8 = vld [vmem:[%s9881_s3 + $0x2a4] ss:$8 sps:$4 sm:$0xff]  }
 0x201   : > { %7191 = vrcp.f32 %v3657_v50  ;;  %4511 = vmatprep.subr.bf16.mxu0 %v6965_v4  ;;  %v7022_v50 = vld [vmem:[%s9881_s3 + $0x2b4] ss:$8 sps:$4 sm:$0xff]  }
 0x202   : > { %7193 = vpow2.f32 %v6331_v39  ;;  %v7017_v39 = vld [vmem:[%s9881_s3 + $0x2a0] ss:$8 sps:$4 sm:$0xff]  }
 0x204   : > { %4512 = vmatpush1.bf16.msra.mxu0 %v6963_v47  ;;  %v7020_v47 = vld [vmem:[%s9881_s3 + $0x2b0] ss:$8 sps:$4 sm:$0xff]  }
 0x205   : > { %4513 = vmatprep.subr.bf16.mxu0 %v6968_v61 }
 0x208   : > { %4514 = vmatpush1.bf16.msra.mxu0 %v6966_v30  ;;  %v7025_v30 = vld [vmem:[%s9881_s3 + $0x2c4] ss:$8 sps:$4 sm:$0xff]  }
 0x209   : > { %4515 = vmatprep.subr.bf16.mxu0 %v6971_v38 }
 0x20b   : > { %v7192_v24 = vpop.eup %7191 }
 0x20c   : > { %4516 = vmatpush1.bf16.msra.mxu0 %v6969_v34  ;;  %v3681_v23 = vpack.c.bf16 %v7192_v24, %v7192_v24  ;;  %v7194_v25 = vpop.eup %7193  ;;  %v7023_v34 = vld [vmem:[%s9881_s3 + $0x2c0] ss:$8 sps:$4 sm:$0xff]  }
 0x20d   : > { %4517 = vmatprep.subr.bf16.mxu0 %v6974_v45  ;;  %v3656_v62 = vadd.f32 1.0, %v7194_v25  ;;  %v7028_v45 = vld [vmem:[%s9881_s3 + $0x2d4] ss:$8 sps:$4 sm:$0xff]   ;;  %v7031_v25 = vld [vmem:[%s9881_s3 + $0x2e4] ss:$8 sps:$4 sm:$0xff]  }
 0x20e   : > { %4527 = vmatprep.mubr.bf16.mxu0 %v3681_v23  ;;  %v7026_v23 = vld [vmem:[%s9881_s3 + $0x2d0] ss:$8 sps:$4 sm:$0xff]  }
 0x20f   : > { %7195 = vrcp.f32 %v3656_v62  ;;  %v7034_v62 = vld [vmem:[%s9881_s3 + $0x2f4] ss:$8 sps:$4 sm:$0xff]  }
 0x210   : > { %4518 = vmatpush1.bf16.msra.mxu0 %v6972_v6 }
 0x211   : > { %4519 = vmatprep.subr.bf16.mxu0 %v6977_v53  ;;  %v7029_v53 = vld [vmem:[%s9881_s3 + $0x2e0] ss:$8 sps:$4 sm:$0xff]  }
 0x214   : > { %4520 = vmatpush1.bf16.msra.mxu0 %v6975_v55  ;;  %v7032_v55 = vld [vmem:[%s9881_s3 + $0x2f0] ss:$8 sps:$4 sm:$0xff]  }
 0x215   : > { %4521 = vmatprep.subr.bf16.mxu0 %v6980_v1  ;;  %v7037_v1 = vld [vmem:[%s9881_s3 + $0x304] ss:$8 sps:$4 sm:$0xff]  }
 0x217   : > { %v3582_v7 = vpop.f32.mrb[8].mxu0 }
 0x218   : > { %v3584_v37 = vpop.f32.mrb[9].mxu0  ;;  %4522 = vmatpush1.bf16.msra.mxu0 %v6978_v18  ;;  %v3583_v3 = vadd.f32 %v3582_v7, %v9072_v29  ;;  %v7035_v7 = vld [vmem:[%s9881_s3 + $0x300] ss:$8 sps:$4 sm:$0xff]  }
 0x219   : > { %v3585_v32 = vadd.f32 %v3584_v37, %v9072_v29  ;;  %v3586_v14 = vpop.f32.mrb[10].mxu0  ;;  %4523 = vmatprep.subr.bf16.mxu0 %v6983_v13  ;;  %v7196_v12 = vpop.eup %7195 }
 0x21a   : > { %v3587_v48 = vpop.f32.mrb[11].mxu0  ;;  %v3680_v27 = vpack.c.bf16 %v7196_v12, %v7196_v12  ;;  %v6333_v56 = vmul.f32 -1.442695, %v3583_v3  ;;  %v7038_v14 = vld [vmem:[%s9881_s3 + $0x310] ss:$8 sps:$4 sm:$0xff]  }
 0x21b   : > { %v6334_v35 = vmul.f32 -1.442695, %v3585_v32  ;;  %v7041_v48 = vld [vmem:[%s9881_s3 + $0x320] ss:$8 sps:$4 sm:$0xff]   ;;  %v7076_v3 = vld [vmem:[%s9881_s3 + $0x3d4] ss:$8 sps:$4 sm:$0xff]  }
 0x21c   : > { %4524 = vmatpush1.bf16.msra.mxu0 %v6981_v36  ;;  %v7040_v36 = vld [vmem:[%s9881_s3 + $0x314] ss:$8 sps:$4 sm:$0xff]   ;;  %v7047_v12 = vld [vmem:[%s9881_s3 + $0x340] ss:$8 sps:$4 sm:$0xff]  }
 0x21d   : > { %7197 = vpow2.f32 %v6334_v35  ;;  %4525 = vmatprep.subr.bf16.mxu0 %v6986_v44  ;;  %v7043_v44 = vld [vmem:[%s9881_s3 + $0x324] ss:$8 sps:$4 sm:$0xff]   ;;  %v7046_v35 = vld [vmem:[%s9881_s3 + $0x334] ss:$8 sps:$4 sm:$0xff]  }
 0x220   : > { %4526 = vmatpush1.bf16.msra.mxu0 %v6984_v43  ;;  %v7044_v43 = vld [vmem:[%s9881_s3 + $0x330] ss:$8 sps:$4 sm:$0xff]  }
 0x221   : > { %4536 = vmatprep.subr.bf16.mxu0 %v6989_v20  ;;  %v7049_v20 = vld [vmem:[%s9881_s3 + $0x344] ss:$8 sps:$4 sm:$0xff]  }
 0x223   : > { %4528 = vmatmul.mubr.bf16.vlgmr.msra.gmra.mrb[12].mxu0 %v3680_v27  ;;  %v7050_v27 = vld [vmem:[%s9881_s3 + $0x350] ss:$8 sps:$4 sm:$0xff]  }
 0x224   : > { %4537 = vmatpush1.bf16.msra.mxu0 %v6987_v58  ;;  %v7052_v58 = vld [vmem:[%s9881_s3 + $0x354] ss:$8 sps:$4 sm:$0xff]  }
 0x225   : > { %4538 = vmatprep.subr.bf16.mxu0 %v6992_v5  ;;  %v7055_v5 = vld [vmem:[%s9881_s3 + $0x364] ss:$8 sps:$4 sm:$0xff]  }
 0x227   : > { %v7198_v28 = vpop.eup %7197 }
 0x228   : > { %v3659_v17 = vadd.f32 1.0, %v7198_v28  ;;  %4539 = vmatpush1.bf16.msra.mxu0 %v6990_v57  ;;  %v7053_v57 = vld [vmem:[%s9881_s3 + $0x360] ss:$8 sps:$4 sm:$0xff]  }
 0x229   : > { %4540 = vmatprep.subr.bf16.mxu0 %v6995_v60  ;;  %v7058_v60 = vld [vmem:[%s9881_s3 + $0x374] ss:$8 sps:$4 sm:$0xff]  }
 0x22a   : > { %7199 = vrcp.f32 %v3659_v17  ;;  %v7056_v17 = vld [vmem:[%s9881_s3 + $0x370] ss:$8 sps:$4 sm:$0xff]  }
 0x22b   : > { %7201 = vpow2.f32 %v6333_v56  ;;  %v7077_v56 = vld [vmem:[%s9881_s3 + $0x3e0] ss:$8 sps:$4 sm:$0xff]  }
 0x22c   : > { %4541 = vmatpush1.bf16.msra.mxu0 %v6993_v9  ;;  %v7061_v9 = vld [vmem:[%s9881_s3 + $0x384] ss:$8 sps:$4 sm:$0xff]  }
 0x22d   : > { %4542 = vmatprep.subr.bf16.mxu0 %v6998_v10 }
 0x230   : > { %4543 = vmatpush1.bf16.msra.mxu0 %v6996_v51  ;;  %v7059_v51 = vld [vmem:[%s9881_s3 + $0x380] ss:$8 sps:$4 sm:$0xff]  }
 0x231   : > { %4544 = vmatprep.subr.bf16.mxu0 %v7001_v31  ;;  %v7062_v31 = vld [vmem:[%s9881_s3 + $0x390] ss:$8 sps:$4 sm:$0xff]  }
 0x234   : > { %v7200_v22 = vpop.eup %7199  ;;  %4545 = vmatpush1.bf16.msra.mxu0 %v6999_v0  ;;  %v7067_v0 = vld [vmem:[%s9881_s3 + $0x3a4] ss:$8 sps:$4 sm:$0xff]  }
 0x235   : > { %v3683_v40 = vpack.c.bf16 %v7200_v22, %v7200_v22  ;;  %4546 = vmatprep.subr.bf16.mxu0 %v7004_v59  ;;  %v7202_v61 = vpop.eup %7201  ;;  %v7065_v59 = vld [vmem:[%s9881_s3 + $0x3a0] ss:$8 sps:$4 sm:$0xff]   ;;  %v7070_v22 = vld [vmem:[%s9881_s3 + $0x3b4] ss:$8 sps:$4 sm:$0xff]  }
 0x236   : > { %v3658_v38 = vadd.f32 1.0, %v7202_v61 }
 0x237   : > { %4568 = vmatprep.mubr.bf16.mxu0 %v3683_v40 }
 0x238   : > { %4547 = vmatpush1.bf16.msra.mxu0 %v7002_v41  ;;  %v7068_v41 = vld [vmem:[%s9881_s3 + $0x3b0] ss:$8 sps:$4 sm:$0xff]  }
 0x239   : > { %4548 = vmatprep.subr.bf16.mxu0 %v7007_v33  ;;  %v7073_v33 = vld [vmem:[%s9881_s3 + $0x3c4] ss:$8 sps:$4 sm:$0xff]  }
 0x23c   : > { %4549 = vmatpush1.bf16.msra.mxu0 %v7005_v16 }
 0x23d   : > { %4550 = vmatprep.subr.bf16.mxu0 %v7010_v52  ;;  %v7071_v52 = vld [vmem:[%s9881_s3 + $0x3c0] ss:$8 sps:$4 sm:$0xff]  }
 0x240   : > { %4551 = vmatpush1.bf16.msra.mxu0 %v7008_v2  ;;  %v7074_v2 = vld [vmem:[%s9881_s3 + $0x3d0] ss:$8 sps:$4 sm:$0xff]  }
 0x241   : > { %4552 = vmatprep.subr.bf16.mxu0 %v7013_v49  ;;  %v7079_v49 = vld [vmem:[%s9881_s3 + $0x3e4] ss:$8 sps:$4 sm:$0xff]  }
 0x242   : > { %v9230_v19 = vpop.f32.mrb[0].mxu1 }
 0x243   : > { %v3625_v54 = vpop.f32.mrb[1].mxu1  ;;  %v3624_v28 = vadd.f32 %v9230_v19, %v9072_v29 }
 0x244   : > { %v3626_v42 = vadd.f32 %v3625_v54, %v9072_v29  ;;  %4553 = vmatpush1.bf16.msra.mxu0 %v7011_v15  ;;  %v3627_v26 = vpop.f32.mrb[2].mxu1  ;;  %v7064_v29 = vld [vmem:[%s9881_s3 + $0x394] ss:$8 sps:$4 sm:$0xff]  }
 0x245   : > { %4554 = vmatprep.subr.bf16.mxu0 %v7016_v21  ;;  %v3628_v4 = vpop.f32.mrb[3].mxu1  ;;  %v6335_v10 = vmul.f32 -1.442695, %v3624_v28  ;;  %v7082_v15 = vld [vmem:[%s9881_s3 + $0x3f4] ss:$8 sps:$4 sm:$0xff]  }
 0x246   : > { %v6336_v11 = vmul.f32 -1.442695, %v3626_v42  ;;  %v7080_v21 = vld [vmem:[%s9881_s3 + $0x3f0] ss:$8 sps:$4 sm:$0xff]  }
 0x248   : > { %7203 = vpow2.f32 %v6336_v11  ;;  %4555 = vmatpush1.bf16.msra.mxu0 %v7014_v46 }
 0x249   : > { %4556 = vmatprep.subr.bf16.mxu0 %v7019_v8  ;;  %7205 = vrcp.f32 %v3658_v38 }
 0x24c   : > { %4557 = vmatpush1.bf16.msra.mxu0 %v7017_v39 }
 0x24d   : > { %4558 = vmatprep.subr.bf16.mxu0 %v7022_v50 }
 0x250   : > { %4559 = vmatpush1.bf16.msra.mxu0 %v7020_v47 }
 0x251   : > { %4560 = vmatprep.subr.bf16.mxu0 %v7025_v30 }
 0x252   : > { %v7204_v24 = vpop.eup %7203 }
 0x253   : > { %v3661_v6 = vadd.f32 1.0, %v7204_v24  ;;  %v7206_v18 = vpop.eup %7205 }
 0x254   : > { %4561 = vmatpush1.bf16.msra.mxu0 %v7023_v34  ;;  %v3682_v32 = vpack.c.bf16 %v7206_v18, %v7206_v18 }
 0x255   : > { %7207 = vrcp.f32 %v3661_v6  ;;  %4562 = vmatprep.subr.bf16.mxu0 %v7028_v45 }
 0x256   : > { %7209 = vpow2.f32 %v6335_v10 }
 0x258   : > { %4563 = vmatpush1.bf16.msra.mxu0 %v7026_v23 }
 0x259   : > { %4564 = vmatprep.subr.bf16.mxu0 %v7031_v25 }
 0x25c   : > { %4565 = vmatpush1.bf16.msra.mxu0 %v7029_v53 }
 0x25d   : > { %4566 = vmatprep.subr.bf16.mxu0 %v7034_v62 }
 0x25f   : > { %v7208_v13 = vpop.eup %7207 }
 0x260   : > { %4567 = vmatpush1.bf16.msra.mxu0 %v7032_v55  ;;  %v3685_v37 = vpack.c.bf16 %v7208_v13, %v7208_v13  ;;  %v7210_v40 = vpop.eup %7209 }
 0x261   : > { %4577 = vmatprep.subr.bf16.mxu0 %v7037_v1  ;;  %v3660_v16 = vadd.f32 1.0, %v7210_v40 }
 0x263   : > { %4569 = vmatmul.mubr.bf16.vlgmr.msra.gmra.mrb[12].mxu0 %v3682_v32  ;;  %7211 = vrcp.f32 %v3660_v16 }
 0x264   : > { %4578 = vmatpush1.bf16.msra.mxu0 %v7035_v7  ;;  %4609 = vmatprep.mubr.bf16.mxu0 %v3685_v37 }
 0x265   : > { %4579 = vmatprep.subr.bf16.mxu0 %v7040_v36 }
 0x268   : > { %4580 = vmatpush1.bf16.msra.mxu0 %v7038_v14 }
 0x269   : > { %4581 = vmatprep.subr.bf16.mxu0 %v7043_v44 }
 0x26c   : > { %4582 = vmatpush1.bf16.msra.mxu0 %v7041_v48 }
 0x26d   : > { %4583 = vmatprep.subr.bf16.mxu0 %v7046_v35  ;;  %v7212_v19 = vpop.eup %7211 }
 0x26e   : > { %v3684_v54 = vpack.c.bf16 %v7212_v19, %v7212_v19  ;;  %v4984_v19 = vld [vmem:[%s9883_s5 + $0x8] sm:$0xff] }
 0x270   : > { %4584 = vmatpush1.bf16.msra.mxu0 %v7044_v43 }
 0x271   : > { %4585 = vmatprep.subr.bf16.mxu0 %v7049_v20 }
 0x274   : > { %4586 = vmatpush1.bf16.msra.mxu0 %v7047_v12 }
 0x275   : > { %4587 = vmatprep.subr.bf16.mxu0 %v7052_v58 }
 0x278   : > { %4588 = vmatpush1.bf16.msra.mxu0 %v7050_v27 }
 0x279   : > { %4589 = vmatprep.subr.bf16.mxu0 %v7055_v5 }
 0x27c   : > { %4590 = vmatpush1.bf16.msra.mxu0 %v7053_v57 }
 0x27d   : > { %4591 = vmatprep.subr.bf16.mxu0 %v7058_v60 }
 0x280   : > { %4592 = vmatpush1.bf16.msra.mxu0 %v7056_v17 }
 0x281   : > { %4593 = vmatprep.subr.bf16.mxu0 %v7061_v9 }
 0x284   : > { %4594 = vmatpush1.bf16.msra.mxu0 %v7059_v51 }
 0x285   : > { %4595 = vmatprep.subr.bf16.mxu0 %v7064_v29 }
 0x288   : > { %4596 = vmatpush1.bf16.msra.mxu0 %v7062_v31 }
 0x289   : > { %4597 = vmatprep.subr.bf16.mxu0 %v7067_v0 }
 0x28c   : > { %4598 = vmatpush1.bf16.msra.mxu0 %v7065_v59 }
 0x28d   : > { %4599 = vmatprep.subr.bf16.mxu0 %v7070_v22 }
 0x290   : > { %4600 = vmatpush1.bf16.msra.mxu0 %v7068_v41 }
 0x291   : > { %4601 = vmatprep.subr.bf16.mxu0 %v7073_v33 }
 0x294   : > { %4602 = vmatpush1.bf16.msra.mxu0 %v7071_v52 }
 0x295   : > { %4603 = vmatprep.subr.bf16.mxu0 %v7076_v3 }
 0x298   : > { %4604 = vmatpush1.bf16.msra.mxu0 %v7074_v2 }
 0x299   : > { %4605 = vmatprep.subr.bf16.mxu0 %v7079_v49 }
 0x29c   : > { %4606 = vmatpush1.bf16.msra.mxu0 %v7077_v56 }
 0x29d   : > { %4607 = vmatprep.subr.bf16.mxu0 %v7082_v15 }
 0x2a0   : > { %4608 = vmatpush1.bf16.msra.mxu0 %v7080_v21 }
 0x2a3   : > { %4610 = vmatmul.mubr.bf16.vlgmr.msra.gmra.mrb[12].mxu0 %v3684_v54  ;;  %v7112_v54 = vld [vmem:[%s9882_s4 + $0x4] ss:$8 sps:$4 sm:$0xff]  }
 0x2a4   : > { %6489 = vmatprep.mubr.msk.bf16.mxu1 %vm5099_vm12, %v7112_v54  ;;  %vm10202_vm12 = vcmask 1031168  }
 0x376   : > { %v4611_v42 = vpop.f32.mrb[12].mxu0 }
 0x377   : > { %v4613_v46 = vpop.f32.mrb[13].mxu0 }
 0x378   : > { %v6580_v8 = vpack.c.bf16 %v4613_v46, %v4611_v42  ;;  %v4615_v4 = vpop.f32.mrb[14].mxu0  ;;  %v4983_v42 = vld [vmem:[%s9883_s5] sm:$0xff] }
 0x379   : > { %v4616_v11 = vpop.f32.mrb[15].mxu0 }
 0x37a   : > { %4629 = vst.msk [vmem:[#allocation4] sm:$0x77] %vm9371_vm1, %v6580_v8 }
 0x37b   : > { %4631 = vst.msk [vmem:[#allocation4 + $0x4] sm:$0x7] %vm4630_vm2, %v10097_v63  ;;  %vm4687_vm2 = vcmask 556037  }
 0x37c   : > { %vm9425_vm11 = vmor %vm4687_vm2, %vm4686_vm13  ;;  %vm4738_vm2 = vcmask 916480  }
 0x382   : > { %v4632_v39 = vld [vmem:[#allocation4] sm:$0x77] }
 0x383   : > { %v4690_v50 = vld [vmem:[#allocation4] sm:$0x77]  ;;  %4633 = vst.msk [vmem:[#allocation5] sm:$0x77] %vm9371_vm1, %v4632_v39 }
 0x384   : > { %v4634_v47 = vld [vmem:[#allocation4] sm:$0x77]  ;;  %4692 = vrot.lane.b32.xlu1 %v4690_v50, %s10047_s28 }
 0x385   : > { %v4636_v61 = vrot.slane %v4634_v47, 5  ;;  %v4656_v30 = vld [vmem:[#allocation4] sm:$0x77] }
 0x386   : > { %v4742_v38 = vld [vmem:[#allocation4] sm:$0x77]  ;;  %v4658_v34 = vrot.slane %v4656_v30, 6 }
 0x387   : > { %4638 = vrot.lane.b32.xlu0 %v4636_v61, %s7310_s24  ;;  %v4678_v45 = vld [vmem:[#allocation4] sm:$0x77]  ;;  %v4637_v13 = vrot.slane %v4636_v61, 4 }
 0x388   : > { %4744 = vrot.lane.b32.xlu1 %v4742_v38, %s9994_s22  ;;  %v4795_v24 = vld [vmem:[#allocation4] sm:$0x77]  ;;  %v4680_v6 = vrot.slane %v4678_v45, 7  ;;  %v4659_v32 = vrot.slane %v4658_v34, 4  ;;  %s6579_s22 = sshll.u32 %s10222_s26, 4 }
 0x389   : > { %v4698_v23 = vld [vmem:[#allocation4] sm:$0x77] }
 0x38a   : > { %v4847_v25 = vld [vmem:[#allocation4] sm:$0x77]  ;;  %v4700_v53 = vrot.slane %v4698_v23, 5 }
 0x38b   : > { %4660 = vrot.lane.b32.xlu0 %v4658_v34, %s7301_s15  ;;  %v4715_v62 = vld [vmem:[#allocation4] sm:$0x77] }
 0x38c   : > { %4797 = vrot.lane.b32.xlu1 %v4795_v24, %s7322_s27  ;;  %v4900_v55 = vld [vmem:[#allocation4] sm:$0x77]  ;;  %v4717_v1 = vrot.slane %v4715_v62, 6  ;;  %v4701_v44 = vrot.slane %v4700_v53, 4  ;;  %s7331_s27 = smov 97  }
 0x38d   : > { %v4732_v18 = vld [vmem:[#allocation4] sm:$0x77] }
 0x38e   : > { %v4734_v7 = vrot.slane %v4732_v18, 7  ;;  %v4751_v37 = vld [vmem:[#allocation4] sm:$0x77]  ;;  %v4718_v43 = vrot.slane %v4717_v1, 4 }
 0x38f   : > { %4681 = vrot.lane.b32.xlu0 %v4680_v6, %s7309_s23  ;;  %v4753_v36 = vrot.slane %v4751_v37, 5  ;;  %v4768_v14 = vld [vmem:[#allocation4] sm:$0x77] }
 0x390   : > { %4849 = vrot.lane.b32.xlu1 %v4847_v25, %s7323_s29  ;;  %v4770_v48 = vrot.slane %v4768_v14, 6  ;;  %v4785_v35 = vld [vmem:[#allocation4] sm:$0x77]  ;;  %s7332_s29 = smov 86  }
 0x391   : > { %v4787_v20 = vrot.slane %v4785_v35, 7  ;;  %v4804_v12 = vld [vmem:[#allocation4] sm:$0x77]  ;;  %v4754_v58 = vrot.slane %v4753_v36, 4 }
 0x392   : > { %v4806_v27 = vrot.slane %v4804_v12, 5  ;;  %v4821_v5 = vld [vmem:[#allocation4] sm:$0x77]  ;;  %v4771_v57 = vrot.slane %v4770_v48, 4 }
 0x393   : > { %4702 = vrot.lane.b32.xlu0 %v4700_v53, %s7324_s30  ;;  %v4823_v60 = vrot.slane %v4821_v5, 6  ;;  %v4837_v28 = vld [vmem:[#allocation4] sm:$0x77] }
 0x394   : > { %4902 = vrot.lane.b32.xlu1 %v4900_v55, %s7325_s20  ;;  %v4807_v17 = vrot.slane %v4806_v27, 4  ;;  %v4856_v9 = vld [vmem:[#allocation4] sm:$0x77]  ;;  %v4839_v10 = vrot.slane %v4837_v28, 7  ;;  %s7333_s20 = smov 84  }
 0x395   : > { %v4824_v51 = vrot.slane %v4823_v60, 4  ;;  %v4858_v29 = vrot.slane %v4856_v9, 5  ;;  %v4873_v31 = vld [vmem:[#allocation4] sm:$0x77] }
 0x396   : > { %v4875_v59 = vrot.slane %v4873_v31, 6  ;;  %v4909_v22 = vld [vmem:[#allocation4] sm:$0x77] }
 0x397   : > { %4719 = vrot.lane.b32.xlu0 %v4717_v1, %s7326_s14  ;;  %v4859_v0 = vrot.slane %v4858_v29, 4  ;;  %v4890_v41 = vld [vmem:[#allocation4] sm:$0x77]  ;;  %v4911_v33 = vrot.slane %v4909_v22, 5 }
 0x398   : > { %4640 = vrot.lane.b32.xlu1 %v4637_v13, %s7310_s24  ;;  %v4876_v40 = vrot.slane %v4875_v59, 4  ;;  %v4926_v16 = vld [vmem:[#allocation4] sm:$0x77]  ;;  %v4892_v52 = vrot.slane %v4890_v41, 7 }
 0x399   : > { %v4912_v3 = vrot.slane %v4911_v33, 4  ;;  %v4928_v2 = vrot.slane %v4926_v16, 6  ;;  %v4943_v56 = vld [vmem:[#allocation4] sm:$0x77] }
 0x39a   : > { %v4953_v15 = vld [vmem:[#allocation4] sm:$0x77]  ;;  %v4945_v21 = vrot.slane %v4943_v56, 7 }
 0x39b   : > { %4735 = vrot.lane.b32.xlu0 %v4734_v7, %s9996_s16  ;;  %v4929_v49 = vrot.slane %v4928_v2, 4  ;;  %v7115_v55 = vld [vmem:[%s9884_s6] sm:$0xff]   ;;  %s7340_s16 = smov 119  }
 0x39c   : > { %4662 = vrot.lane.b32.xlu1 %v4659_v32, %s7301_s15 }
 0x39f   : > { %4755 = vrot.lane.b32.xlu0 %v4753_v36, %s9995_s17 }
 0x3a0   : > { %4704 = vrot.lane.b32.xlu1 %v4701_v44, %s7324_s30 }
 0x3a3   : > { %4772 = vrot.lane.b32.xlu0 %v4770_v48, %s7329_s18 }
 0x3a4   : > { %4721 = vrot.lane.b32.xlu1 %v4718_v43, %s7326_s14 }
 0x3a7   : > { %4788 = vrot.lane.b32.xlu0 %v4787_v20, %s7330_s21  ;;  %s7335_s21 = smov 82  }
 0x3a8   : > { %4757 = vrot.lane.b32.xlu1 %v4754_v58, %s9995_s17  ;;  %s7341_s17 = smov 120  }
 0x3ab   : > { %4808 = vrot.lane.b32.xlu0 %v4806_v27, %s7331_s27 }
 0x3ac   : > { %4774 = vrot.lane.b32.xlu1 %v4771_v57, %s7329_s18  ;;  %s7334_s18 = smov 83  }
 0x3af   : > { %4825 = vrot.lane.b32.xlu0 %v4823_v60, %s10039_s19 }
 0x3b0   : > { %4810 = vrot.lane.b32.xlu1 %v4807_v17, %s7331_s27  ;;  %s7336_s27 = smov 71  }
 0x3b3   : > { %4840 = vrot.lane.b32.xlu0 %v4839_v10, %s7332_s29  ;;  %s7338_s29 = smov 68  }
 0x3b4   : > { %4827 = vrot.lane.b32.xlu1 %v4824_v51, %s10039_s19  ;;  %s7337_s19 = smov 70  }
 0x3b7   : > { %4860 = vrot.lane.b32.xlu0 %v4858_v29, %s7333_s20 }
 0x3b8   : > { %4862 = vrot.lane.b32.xlu1 %v4859_v0, %s7333_s20  ;;  %s7344_s20 = smov 116  }
 0x3bb   : > { %4877 = vrot.lane.b32.xlu0 %v4875_v59, %s7334_s18 }
 0x3bc   : > { %4879 = vrot.lane.b32.xlu1 %v4876_v40, %s7334_s18  ;;  %s7339_s18 = smov 69  }
 0x3bf   : > { %4893 = vrot.lane.b32.xlu0 %v4892_v52, %s7335_s21  ;;  %s7346_s21 = smov 123  }
 0x3c0   : > { %4915 = vrot.lane.b32.xlu1 %v4912_v3, %s7336_s27 }
 0x3c3   : > { %4913 = vrot.lane.b32.xlu0 %v4911_v33, %s7336_s27  ;;  %s7347_s27 = smov 122  }
 0x3c4   : > { %4932 = vrot.lane.b32.xlu1 %v4929_v49, %s7337_s19 }
 0x3c7   : > { %4930 = vrot.lane.b32.xlu0 %v4928_v2, %s7337_s19  ;;  %s7342_s19 = smov 118  }
 0x3c8   : > { %4955 = vrot.lane.b32.xlu1 %v4953_v15, %s7338_s29  ;;  %s7343_s29 = smov 117  }
 0x3cb   : > { %4946 = vrot.lane.b32.xlu0 %v4945_v21, %s7339_s18  ;;  %s7345_s18 = smov 115  }
 0x3cc   : > { %4992 = vperm.xlu1 %6880, %v4984_v19  }
 0x3cf   : > { %4987 = vperm.xlu0 %6881, %v4983_v42  }
 0x3f6   : > { %v4693_v46 = vpop.permute.xlu1 %4692 }
 0x3f7   : > { %v4694_v8 = vrot.slane %v4693_v46, 4 }
 0x3f9   : > { %v4639_v4 = vpop.permute.xlu0 %4638  ;;  %v4695_v11 = vsel %vm10195_vm6, %v4693_v46, %v4694_v8  ;;  %vm4852_vm6 = vcmask 695296  }
 0x3fa   : > { %v4642_v50 = vrot.slane %v4639_v4, 4  ;;  %4697 = vst.msk [vmem:[#allocation5 + $0x18] sm:$0x77] %vm9371_vm1, %v4695_v11  ;;  %v4745_v47 = vpop.permute.xlu1 %4744 }
 0x3fb   : > { %v4746_v30 = vrot.slane %v4745_v47, 4 }
 0x3fc   : > { %v4644_v61 = vsel %vm10199_vm0, %v4639_v4, %v4642_v50  ;;  %vm4652_vm0 = vcmask 1041408  }
 0x3fd   : > { %4651 = vst.msk [vmem:[#allocation5] sm:$0x88] %vm9407_vm15, %v4644_v61  ;;  %v4661_v38 = vpop.permute.xlu0 %4660  ;;  %v4748_v34 = vsel %vm4747_vm5, %v4745_v47, %v4746_v30  ;;  %vm4708_vm5 = vcmask 932864  }
 0x3fe   : > { %v4664_v24 = vrot.slane %v4661_v38, 4  ;;  %4750 = vst.msk [vmem:[#allocation5 + $0x30] sm:$0x77] %vm9371_vm1, %v4748_v34  ;;  %v4798_v6 = vpop.permute.xlu1 %4797 }
 0x3ff   : > { %v4799_v25 = vrot.slane %v4798_v6, 4 }
 0x400   : > { %v4666_v23 = vsel %vm10202_vm12, %v4661_v38, %v4664_v24  ;;  %vm4675_vm12 = vcmask 552964  }
 0x401   : > { %4673 = vst.msk [vmem:[#allocation5 + $0x8] sm:$0xcc] %vm9416_vm4, %v4666_v23  ;;  %v4682_v53 = vpop.permute.xlu0 %4681  ;;  %v4801_v62 = vsel %vm4800_vm10, %v4798_v6, %v4799_v25  ;;  %vm4653_vm10 = vcmask 553988  }
 0x402   : > { %v4683_v1 = vrot.slane %v4682_v53, 4  ;;  %4803 = vst.msk [vmem:[#allocation5 + $0x48] sm:$0x77] %vm9371_vm1, %v4801_v62  ;;  %v4850_v18 = vpop.permute.xlu1 %4849  ;;  %vm9443_vm13 = vmor %vm4653_vm10, %vm4652_vm0  ;;  %vm4761_vm10 = vcmask 900096  }
 0x403   : > { %v4851_v7 = vrot.slane %v4850_v18, 4 }
 0x404   : > { %v4684_v13 = vsel %vm10205_vm9, %v4682_v53, %v4683_v1  ;;  %vm10209_vm9 = vcmask 1040384  }
 0x405   : > { %4689 = vst.msk [vmem:[#allocation5 + $0x10] sm:$0xee] %vm9425_vm11, %v4684_v13  ;;  %v4703_v37 = vpop.permute.xlu0 %4702  ;;  %v4853_v32 = vsel %vm4852_vm6, %v4850_v18, %v4851_v7  ;;  %vm10208_vm6 = vcmask 1039360  }
 0x406   : > { %v4706_v36 = vrot.slane %v4703_v37, 4  ;;  %4855 = vst.msk [vmem:[#allocation5 + $0x60] sm:$0x77] %vm9371_vm1, %v4853_v32  ;;  %v4903_v14 = vpop.permute.xlu1 %4902 }
 0x407   : > { %v4904_v48 = vrot.slane %v4903_v14, 4 }
 0x408   : > { %v4709_v44 = vsel %vm4708_vm5, %v4703_v37, %v4706_v36 }
 0x409   : > { %4713 = vst.msk [vmem:[#allocation5 + $0x18] sm:$0x88] %vm9407_vm15, %v4709_v44  ;;  %v4720_v35 = vpop.permute.xlu0 %4719  ;;  %v4906_v43 = vsel %vm4905_vm7, %v4903_v14, %v4904_v48  ;;  %vm9453_vm7 = vmor %vm4675_vm12, %vm10209_vm9  ;;  %vm4843_vm12 = vcmask 703488  }
 0x40a   : > { %v4723_v20 = vrot.slane %v4720_v35, 4  ;;  %4908 = vst.msk [vmem:[#allocation5 + $0x78] sm:$0x77] %vm9371_vm1, %v4906_v43  ;;  %v4641_v12 = vpop.permute.xlu1 %4640 }
 0x40b   : > { %v4643_v5 = vrot.slane %v4641_v12, 4 }
 0x40c   : > { %v4726_v58 = vsel %vm4725_vm14, %v4720_v35, %v4723_v20 }
 0x40d   : > { %4730 = vst.msk [vmem:[#allocation5 + $0x20] sm:$0xcc] %vm9416_vm4, %v4726_v58  ;;  %v4736_v57 = vpop.permute.xlu0 %4735  ;;  %v4645_v60 = vsel %vm10208_vm6, %v4641_v12, %v4643_v5  ;;  %vm4866_vm6 = vcmask 687104  }
 0x40e   : > { %v4737_v28 = vrot.slane %v4736_v57, 4  ;;  %4655 = vst.msk [vmem:[#allocation5 + $0x8] sm:$0x33] %vm9443_vm13, %v4645_v60  ;;  %v4663_v17 = vpop.permute.xlu1 %4662 }
 0x40f   : > { %v4665_v51 = vrot.slane %v4663_v17, 4 }
 0x410   : > { %v4739_v9 = vsel %vm4738_vm2, %v4736_v57, %v4737_v28  ;;  %vm4778_vm2 = vcmask 818176  }
 0x411   : > { %4741 = vst.msk [vmem:[#allocation5 + $0x28] sm:$0xee] %vm9425_vm11, %v4739_v9  ;;  %v4756_v29 = vpop.permute.xlu0 %4755  ;;  %v4667_v31 = vsel %vm10212_vm3, %v4663_v17, %v4665_v51  ;;  %vm4791_vm3 = vcmask 809984  }
 0x412   : > { %v4759_v0 = vrot.slane %v4756_v29, 4  ;;  %4677 = vst.msk [vmem:[#allocation5 + $0x10] sm:$0x11] %vm9453_vm7, %v4667_v31  ;;  %v4705_v59 = vpop.permute.xlu1 %4704 }
 0x413   : > { %v4707_v41 = vrot.slane %v4705_v59, 4 }
 0x414   : > { %v4762_v22 = vsel %vm4761_vm10, %v4756_v29, %v4759_v0 }
 0x415   : > { %4766 = vst.msk [vmem:[#allocation5 + $0x30] sm:$0x88] %vm9407_vm15, %v4762_v22  ;;  %v4773_v40 = vpop.permute.xlu0 %4772  ;;  %v4710_v33 = vsel %vm4708_vm5, %v4705_v59, %v4707_v41  ;;  %v7083_v52 = vld [vmem:[#allocation5] ss:$8 sps:$4 sm:$0xff]   ;;  %v7085_v3 = vld [vmem:[#allocation5 + $0x4] ss:$8 sps:$4 sm:$0xff]  }
 0x416   : > { %v4776_v16 = vrot.slane %v4773_v40, 4  ;;  %4714 = vst.msk [vmem:[#allocation5 + $0x20] sm:$0x33] %vm9443_vm13, %v4710_v33  ;;  %v4722_v2 = vpop.permute.xlu1 %4721  ;;  %5109 = vmatprep.subr.bf16.mxu1 %v7085_v3  ;;  %vm4814_vm5 = vcmask 793600  }
 0x417   : > { %v4724_v56 = vrot.slane %v4722_v2, 4  ;;  %5110 = vmatpush1.bf16.msra.mxu1 %v7083_v52 }
 0x418   : > { %v4779_v49 = vsel %vm4778_vm2, %v4773_v40, %v4776_v16 }
 0x419   : > { %4783 = vst.msk [vmem:[#allocation5 + $0x38] sm:$0xcc] %vm9416_vm4, %v4779_v49  ;;  %v4789_v15 = vpop.permute.xlu0 %4788  ;;  %v4727_v21 = vsel %vm4725_vm14, %v4722_v2, %v4724_v56  ;;  %v7086_v54 = vld [vmem:[#allocation5 + $0x10] ss:$8 sps:$4 sm:$0xff]   ;;  %v7088_v42 = vld [vmem:[#allocation5 + $0x14] ss:$8 sps:$4 sm:$0xff]  }
 0x41a   : > { %v4790_v19 = vrot.slane %v4789_v15, 4  ;;  %4731 = vst.msk [vmem:[#allocation5 + $0x28] sm:$0x11] %vm9453_vm7, %v4727_v21  ;;  %v4758_v46 = vpop.permute.xlu1 %4757  ;;  %5111 = vmatprep.subr.bf16.mxu1 %v7088_v42  ;;  %vm10213_vm14 = vcmask 785408  }
 0x41b   : > { %v4760_v4 = vrot.slane %v4758_v46, 4  ;;  %5112 = vmatpush1.bf16.msra.mxu1 %v7086_v54  ;;  %vm10214_vm9 = vmmov %vm10213_vm14 }
 0x41c   : > { %v4792_v8 = vsel %vm4791_vm3, %v4789_v15, %v4790_v19  ;;  %vm4919_vm3 = vcmask 580608  }
 0x41d   : > { %4794 = vst.msk [vmem:[#allocation5 + $0x40] sm:$0xee] %vm9425_vm11, %v4792_v8  ;;  %v4809_v11 = vpop.permute.xlu0 %4808  ;;  %v4763_v50 = vsel %vm4761_vm10, %v4758_v46, %v4760_v4  ;;  %vm4883_vm10 = vcmask 678912  }
 0x41e   : > { %v4812_v47 = vrot.slane %v4809_v11, 4  ;;  %4767 = vst.msk [vmem:[#allocation5 + $0x38] sm:$0x33] %vm9443_vm13, %v4763_v50  ;;  %v4775_v61 = vpop.permute.xlu1 %4774 }
 0x41f   : > { %v4777_v38 = vrot.slane %v4775_v61, 4 }
 0x420   : > { %v4815_v30 = vsel %vm4814_vm5, %v4809_v11, %v4812_v47 }
 0x421   : > { %4819 = vst.msk [vmem:[#allocation5 + $0x48] sm:$0x88] %vm9407_vm15, %v4815_v30  ;;  %v4826_v34 = vpop.permute.xlu0 %4825  ;;  %v4780_v24 = vsel %vm4778_vm2, %v4775_v61, %v4777_v38  ;;  %v7089_v23 = vld [vmem:[#allocation5 + $0x20] ss:$8 sps:$4 sm:$0xff]   ;;  %v7091_v25 = vld [vmem:[#allocation5 + $0x24] ss:$8 sps:$4 sm:$0xff]  }
 0x422   : > { %v4829_v6 = vrot.slane %v4826_v34, 4  ;;  %4784 = vst.msk [vmem:[#allocation5 + $0x40] sm:$0x11] %vm9453_vm7, %v4780_v24  ;;  %v4811_v53 = vpop.permute.xlu1 %4810  ;;  %5113 = vmatprep.subr.bf16.mxu1 %v7091_v25  ;;  %vm4896_vm2 = vcmask 670720   ;;  %v7117_v25 = vld [vmem:[%s9884_s6 + $0x10] sm:$0xff]  }
 0x423   : > { %v4813_v1 = vrot.slane %v4811_v53, 4  ;;  %5114 = vmatpush1.bf16.msra.mxu1 %v7089_v23  ;;  %v7116_v23 = vld [vmem:[%s9884_s6 + $0x8] sm:$0xff]  }
 0x424   : > { %v4831_v62 = vsel %vm10213_vm14, %v4826_v34, %v4829_v6  ;;  %vm4958_vm14 = vcmask 556032   ;;  %v7114_v6 = vld [vmem:[%s9882_s4] ss:$8 sps:$4 sm:$0xff]  }
 0x425   : > { %4835 = vst.msk [vmem:[#allocation5 + $0x50] sm:$0xcc] %vm9416_vm4, %v4831_v62  ;;  %v4841_v18 = vpop.permute.xlu0 %4840  ;;  %v4816_v13 = vsel %vm4814_vm5, %v4811_v53, %v4813_v1  ;;  %v7092_v37 = vld [vmem:[#allocation5 + $0x30] ss:$8 sps:$4 sm:$0xff]   ;;  %v7094_v32 = vld [vmem:[#allocation5 + $0x34] ss:$8 sps:$4 sm:$0xff]  }
 0x426   : > { %v4842_v7 = vrot.slane %v4841_v18, 4  ;;  %4820 = vst.msk [vmem:[#allocation5 + $0x50] sm:$0x33] %vm9443_vm13, %v4816_v13  ;;  %v4828_v36 = vpop.permute.xlu1 %4827  ;;  %5115 = vmatprep.subr.bf16.mxu1 %v7094_v32  ;;  %vm4936_vm5 = vcmask 572416   ;;  %v7118_v53 = vld [vmem:[%s9884_s6 + $0x18] sm:$0xff]   ;;  %v7119_v62 = vld [vmem:[%s9884_s6 + $0x20] sm:$0xff]  }
 0x427   : > { %v4830_v44 = vrot.slane %v4828_v36, 4  ;;  %5116 = vmatpush1.bf16.msra.mxu1 %v7092_v37  ;;  %v7120_v1 = vld [vmem:[%s9884_s6 + $0x28] sm:$0xff]   ;;  %v7122_v13 = vld [vmem:[%s9884_s6 + $0x38] sm:$0xff]   ;;  %v7125_v32 = vld [vmem:[%s9884_s6 + $0x50] sm:$0xff]  }
 0x428   : > { %v4844_v14 = vsel %vm4843_vm12, %v4841_v18, %v4842_v7  ;;  %v7121_v18 = vld [vmem:[%s9884_s6 + $0x30] sm:$0xff]   ;;  %v7123_v7 = vld [vmem:[%s9884_s6 + $0x40] sm:$0xff]   ;;  %v7124_v37 = vld [vmem:[%s9884_s6 + $0x48] sm:$0xff]   ;;  %vm7356_vm12 = vmmov 0  }
 0x429   : > { %4846 = vst.msk [vmem:[#allocation5 + $0x58] sm:$0xee] %vm9425_vm11, %v4844_v14  ;;  %v4861_v48 = vpop.permute.xlu0 %4860  ;;  %v4832_v35 = vsel %vm10214_vm9, %v4828_v36, %v4830_v44  ;;  %v7095_v20 = vld [vmem:[#allocation5 + $0x40] ss:$8 sps:$4 sm:$0xff]   ;;  %v7097_v12 = vld [vmem:[#allocation5 + $0x44] ss:$8 sps:$4 sm:$0xff]  }
 0x42a   : > { %v4864_v43 = vrot.slane %v4861_v48, 4  ;;  %4836 = vst.msk [vmem:[#allocation5 + $0x58] sm:$0x11] %vm9453_vm7, %v4832_v35  ;;  %v4863_v58 = vpop.permute.xlu1 %4862  ;;  %5117 = vmatprep.subr.bf16.mxu1 %v7097_v12  ;;  %v7126_v36 = vld [vmem:[%s9884_s6 + $0x58] sm:$0xff]  }
 0x42b   : > { %v4865_v57 = vrot.slane %v4863_v58, 4  ;;  %5118 = vmatpush1.bf16.msra.mxu1 %v7095_v20  ;;  %v7127_v14 = vld [vmem:[%s9884_s6 + $0x60] ss:$0 sps:$4 sm:$0x33]  }
 0x42c   : > { %v4867_v5 = vsel %vm4866_vm6, %v4861_v48, %v4864_v43  ;;  %v5283_v44 = vsel %vm4652_vm0, %v7127_v14, 0 }
 0x42d   : > { %4871 = vst.msk [vmem:[#allocation5 + $0x60] sm:$0x88] %vm9407_vm15, %v4867_v5  ;;  %v4878_v60 = vpop.permute.xlu0 %4877  ;;  %v4868_v28 = vsel %vm4866_vm6, %v4863_v58, %v4865_v57 }
 0x42e   : > { %v4881_v17 = vrot.slane %v4878_v60, 4  ;;  %4872 = vst.msk [vmem:[#allocation5 + $0x68] sm:$0x33] %vm9443_vm13, %v4868_v28  ;;  %v4880_v9 = vpop.permute.xlu1 %4879 }
 0x42f   : > { %v4882_v29 = vrot.slane %v4880_v9, 4 }
 0x430   : > { %v4884_v51 = vsel %vm4883_vm10, %v4878_v60, %v4881_v17 }
 0x431   : > { %4888 = vst.msk [vmem:[#allocation5 + $0x68] sm:$0xcc] %vm9416_vm4, %v4884_v51  ;;  %v4894_v31 = vpop.permute.xlu0 %4893  ;;  %v4885_v0 = vsel %vm4883_vm10, %v4880_v9, %v4882_v29  ;;  %v7098_v22 = vld [vmem:[#allocation5 + $0x50] ss:$8 sps:$4 sm:$0xff]   ;;  %v7100_v41 = vld [vmem:[#allocation5 + $0x54] ss:$8 sps:$4 sm:$0xff]  }
 0x432   : > { %v4895_v59 = vrot.slane %v4894_v31, 4  ;;  %4889 = vst.msk [vmem:[#allocation5 + $0x70] sm:$0x11] %vm9453_vm7, %v4885_v0  ;;  %v4916_v40 = vpop.permute.xlu1 %4915  ;;  %5119 = vmatprep.subr.bf16.mxu1 %v7100_v41 }
 0x433   : > { %v4918_v16 = vrot.slane %v4916_v40, 4  ;;  %5120 = vmatpush1.bf16.msra.mxu1 %v7098_v22 }
 0x434   : > { %v4897_v33 = vsel %vm4896_vm2, %v4894_v31, %v4895_v59 }
 0x435   : > { %4899 = vst.msk [vmem:[#allocation5 + $0x70] sm:$0xee] %vm9425_vm11, %v4897_v33  ;;  %v4914_v52 = vpop.permute.xlu0 %4913  ;;  %v4921_v3 = vsel %vm4919_vm3, %v4916_v40, %v4918_v16 }
 0x436   : > { %v4917_v2 = vrot.slane %v4914_v52, 4  ;;  %4925 = vst.msk [vmem:[#allocation5 + $0x80] sm:$0x33] %vm9443_vm13, %v4921_v3  ;;  %v4933_v49 = vpop.permute.xlu1 %4932  ;;  %vm4949_vm13 = vcmask 564224  }
 0x437   : > { %v4935_v15 = vrot.slane %v4933_v49, 4 }
 0x438   : > { %v4920_v56 = vsel %vm4919_vm3, %v4914_v52, %v4917_v2  ;;  %v7101_v21 = vld [vmem:[#allocation5 + $0x60] ss:$8 sps:$4 sm:$0xff]   ;;  %v7103_v19 = vld [vmem:[#allocation5 + $0x64] ss:$8 sps:$4 sm:$0xff]  }
 0x439   : > { %4924 = vst.msk [vmem:[#allocation5 + $0x78] sm:$0x88] %vm9407_vm15, %v4920_v56  ;;  %v4931_v54 = vpop.permute.xlu0 %4930  ;;  %v4938_v42 = vsel %vm4936_vm5, %v4933_v49, %v4935_v15  ;;  %5121 = vmatprep.subr.bf16.mxu1 %v7103_v19  ;;  %vm5691_vm15 = vcmask 130048  }
 0x43a   : > { %v4934_v46 = vrot.slane %v4931_v54, 4  ;;  %4942 = vst.msk [vmem:[#allocation5 + $0x88] sm:$0x11] %vm9453_vm7, %v4938_v42  ;;  %v4956_v8 = vpop.permute.xlu1 %4955  ;;  %5122 = vmatpush1.bf16.msra.mxu1 %v7101_v21 }
 0x43b   : > { %v4957_v4 = vrot.slane %v4956_v8, 4 }
 0x43c   : > { %v4937_v27 = vsel %vm4936_vm5, %v4931_v54, %v4934_v46 }
 0x43d   : > { %4941 = vst.msk [vmem:[#allocation5 + $0x80] sm:$0xcc] %vm9416_vm4, %v4937_v27  ;;  %v4947_v11 = vpop.permute.xlu0 %4946  ;;  %v4959_v39 = vsel %vm4958_vm14, %v4956_v8, %v4957_v4  ;;  %v7130_v27 = vld [vmem:[%s9885_s7 + $0x4] ss:$16 sps:$4 sm:$0xff]   ;;  %vm6056_vm4 = vcmask 982016  }
 0x43e   : > { %v4948_v50 = vrot.slane %v4947_v11, 4  ;;  %4961 = vst.msk [vmem:[#allocation5 + $0x90] sm:$0x77] %vm9371_vm1, %v4959_v39  ;;  %vm5329_vm1 = vcmask 7168  }
 0x440   : > { %v4950_v47 = vsel %vm4949_vm13, %v4947_v11, %v4948_v50  ;;  %v7104_v61 = vld [vmem:[#allocation5 + $0x70] ss:$8 sps:$4 sm:$0xff]   ;;  %v7106_v10 = vld [vmem:[#allocation5 + $0x74] ss:$8 sps:$4 sm:$0xff]  }
 0x441   : > { %4952 = vst.msk [vmem:[#allocation5 + $0x88] sm:$0xee] %vm9425_vm11, %v4950_v47  ;;  %5123 = vmatprep.subr.bf16.mxu1 %v7106_v10  ;;  %vm10219_vm11 = vcmask 1043456  }
 0x442   : > { %5124 = vmatpush1.bf16.msra.mxu1 %v7104_v61  ;;  %vm10220_vm7 = vmmov %vm10219_vm11 }
 0x445   : > { %v4982_v30 = vld [vmem:[#allocation5 + $0x90] sm:$0x77] }
 0x446   : > { %v6487_v34 = vcombine.high %v4982_v30, %v4982_v30  ;;  %v6486_v24 = vcombine.low %v4982_v30, %v4982_v30 }
 0x448   : > { %v7107_v38 = vld [vmem:[#allocation5 + $0x80] ss:$8 sps:$4 sm:$0xff]   ;;  %v7109_v45 = vld [vmem:[#allocation5 + $0x84] ss:$8 sps:$4 sm:$0xff]   ;;  %v5104_v26 = vsel %vm4626_vm8, %v6486_v24, 0 }
 0x449   : > { %5125 = vmatprep.subr.bf16.mxu1 %v7109_v45 }
 0x44a   : > { %5126 = vmatpush1.bf16.msra.mxu1 %v7107_v38 }
 0x44b   : > { %6488 = vmatprep.subr.msk.bf16.mxu1 %vm4626_vm8, %v6487_v34  ;;  %v4993_v12 = vpop.permute.xlu1 %4992  ;;  %vm10215_vm8 = vcmask 203776  }
 0x44e   : > { %5128 = vmatpush1.bf16.msra.mxu1 %v5104_v26  ;;  %v4988_v48 = vpop.permute.xlu0 %4987 }
 0x44f   : > { %5285 = vmatprep.subr.bf16.mxu1 %v10097_v63 }
 0x451   : > { %5142 = vmatmul.mubr.bf16.vlgmr.msra.gmra.mrb[4].mxu1 %v7114_v6 }
 0x452   : > { %5286 = vmatpush1.bf16.msra.mxu1 %v7115_v55 }
 0x453   : > { %5287 = vmatprep.subr.bf16.mxu1 %v10097_v63 }
 0x456   : > { %5288 = vmatpush1.bf16.msra.mxu1 %v7116_v23 }
 0x457   : > { %5289 = vmatprep.subr.bf16.mxu1 %v10097_v63 }
 0x45a   : > { %5290 = vmatpush1.bf16.msra.mxu1 %v7117_v25 }
 0x45b   : > { %5291 = vmatprep.subr.bf16.mxu1 %v10097_v63 }
 0x45e   : > { %5292 = vmatpush1.bf16.msra.mxu1 %v7118_v53 }
 0x45f   : > { %5293 = vmatprep.subr.bf16.mxu1 %v10097_v63 }
 0x462   : > { %5294 = vmatpush1.bf16.msra.mxu1 %v7119_v62 }
 0x463   : > { %5295 = vmatprep.subr.bf16.mxu1 %v10097_v63 }
 0x466   : > { %5296 = vmatpush1.bf16.msra.mxu1 %v7120_v1 }
 0x467   : > { %5297 = vmatprep.subr.bf16.mxu1 %v10097_v63 }
 0x46a   : > { %5298 = vmatpush1.bf16.msra.mxu1 %v7121_v18 }
 0x46b   : > { %5299 = vmatprep.subr.bf16.mxu1 %v10097_v63 }
 0x46e   : > { %5300 = vmatpush1.bf16.msra.mxu1 %v7122_v13 }
 0x46f   : > { %5301 = vmatprep.subr.bf16.mxu1 %v10097_v63 }
 0x472   : > { %5302 = vmatpush1.bf16.msra.mxu1 %v7123_v7 }
 0x473   : > { %5303 = vmatprep.subr.bf16.mxu1 %v10097_v63 }
 0x476   : > { %5304 = vmatpush1.bf16.msra.mxu1 %v7124_v37 }
 0x477   : > { %5305 = vmatprep.subr.bf16.mxu1 %v10097_v63 }
 0x47a   : > { %5306 = vmatpush1.bf16.msra.mxu1 %v7125_v32 }
 0x47b   : > { %5307 = vmatprep.subr.bf16.mxu1 %v10097_v63 }
 0x47e   : > { %5308 = vmatpush1.bf16.msra.mxu1 %v7126_v36 }
 0x47f   : > { %5309 = vmatprep.subr.bf16.mxu1 %v10097_v63 }
 0x482   : > { %5310 = vmatpush1.bf16.msra.mxu1 %v5283_v44 }
 0x524   : > { %v5143_v35 = vpop.f32.mrb[4].mxu1 }
 0x525   : > { %v5144_v43 = vadd.f32 %v5143_v35, %v4988_v48  ;;  %v5145_v20 = vpop.f32.mrb[5].mxu1 }
 0x526   : > { %v5146_v58 = vadd.f32 %v5145_v20, %v4988_v48  ;;  %v5147_v5 = vpop.f32.mrb[6].mxu1 }
 0x527   : > { %v6490_v57 = vmul.f32 -1.442695, %v5144_v43  ;;  %v5148_v60 = vadd.f32 %v5147_v5, %v4993_v12  ;;  %v5149_v28 = vpop.f32.mrb[7].mxu1 }
 0x528   : > { %v6491_v17 = vmul.f32 -1.442695, %v5146_v58  ;;  %v5150_v9 = vadd.f32 %v5149_v28, %v4993_v12  ;;  %v7131_v28 = vld [vmem:[%s9885_s7 + $0x24] ss:$16 sps:$4 sm:$0xff]  }
 0x529   : > { %7213 = vpow2.f32 %v6490_v57  ;;  %v6492_v51 = vmul.f32 -1.442695, %v5148_v60  ;;  %v7128_v60 = vld [vmem:[%s9885_s7] ss:$16 sps:$4 sm:$0xff]  }
 0x52a   : > { %7215 = vpow2.f32 %v6491_v17  ;;  %v6493_v29 = vmul.f32 -1.442695, %v5150_v9 }
 0x52b   : > { %7217 = vpow2.f32 %v6492_v51 }
 0x52c   : > { %7219 = vpow2.f32 %v6493_v29 }
 0x533   : > { %v7214_v31 = vpop.eup %7213 }
 0x534   : > { %v7216_v0 = vpop.eup %7215  ;;  %v5164_v59 = vadd.f32 1.0, %v7214_v31 }
 0x535   : > { %v7218_v22 = vpop.eup %7217  ;;  %v5165_v41 = vadd.f32 1.0, %v7216_v0 }
 0x536   : > { %v7220_v40 = vpop.eup %7219  ;;  %7221 = vrcp.f32 %v5164_v59  ;;  %v5166_v33 = vadd.f32 1.0, %v7218_v22  ;;  %v7133_v59 = vld [vmem:[%s9885_s7 + $0x20] ss:$16 sps:$4 sm:$0xff]   ;;  %v7134_v22 = vld [vmem:[%s9885_s7 + $0x44] ss:$16 sps:$4 sm:$0xff]  }
 0x537   : > { %7223 = vrcp.f32 %v5165_v41  ;;  %v5167_v16 = vadd.f32 1.0, %v7220_v40 }
 0x538   : > { %7225 = vrcp.f32 %v5166_v33  ;;  %v7136_v33 = vld [vmem:[%s9885_s7 + $0x40] ss:$16 sps:$4 sm:$0xff]  }
 0x539   : > { %7227 = vrcp.f32 %v5167_v16  ;;  %v7137_v16 = vld [vmem:[%s9885_s7 + $0x64] ss:$16 sps:$4 sm:$0xff]  }
 0x540   : > { %v7222_v52 = vpop.eup %7221 }
 0x541   : > { %v7224_v3 = vpop.eup %7223 }
 0x542   : > { %v7226_v2 = vpop.eup %7225 }
 0x543   : > { %v7228_v49 = vpop.eup %7227  ;;  %v5176_v56 = vpack.c.bf16 %v7226_v2, %v7222_v52  ;;  %v7139_v2 = vld [vmem:[%s9885_s7 + $0x60] ss:$16 sps:$4 sm:$0xff]  }
 0x544   : > { %v5177_v15 = vpack.c.bf16 %v7228_v49, %v7224_v3  ;;  %v7140_v49 = vld [vmem:[%s9885_s7 + $0x84] ss:$16 sps:$4 sm:$0xff]  }
 0x546   : > { %6507 = vmatprep.mubr.msk.bf16.mxu1 %vm4958_vm14, %v5177_v15 }
 0x547   : > { %5318 = vmatmul.mubr.bf16.vlgmr.msra.gmra.mrb[8].mxu1 %v5176_v56 }
 0x548   : > { %5748 = vmatprep.mubr.bf16.mxu1 %v7130_v27 }
 0x61a   : > { %v5319_v21 = vpop.f32.mrb[8].mxu1 }
 0x61b   : > { %v5321_v19 = vpop.f32.mrb[9].mxu1 }
 0x61c   : > { %v5322_v54 = vpop.f32.mrb[10].mxu1  ;;  %v7143_v19 = vld [vmem:[%s9885_s7 + $0xa4] ss:$16 sps:$4 sm:$0xff]  }
 0x61d   : > { %v5326_v42 = vpack.c.bf16 %v5322_v54, %v5319_v21  ;;  %v5324_v46 = vpop.f32.mrb[11].mxu1  ;;  %v7142_v21 = vld [vmem:[%s9885_s7 + $0x80] ss:$16 sps:$4 sm:$0xff]  }
 0x61e   : > { %v7146_v46 = vld [vmem:[%s9885_s7 + $0xc4] ss:$16 sps:$4 sm:$0xff]  }
 0x61f   : > { %5327 = vst.msk [vmem:[#allocation6] sm:$0xff] %vm10215_vm8, %v5326_v42  ;;  %v7145_v42 = vld [vmem:[%s9885_s7 + $0xa0] ss:$16 sps:$4 sm:$0xff]  }
 0x626   : > { %v5328_v8 = vld [vmem:[#allocation6] sm:$0xff] }
 0x627   : > { %5381 = vrot.lane.b32.xlu0 %v5328_v8, %s7340_s16  ;;  %5375 = vrot.lane.b32.xlu1 %v5328_v8, %s7341_s17  ;;  %5330 = vst.msk [vmem:[#allocation7] sm:$0xff] %vm5329_vm1, %v5328_v8  ;;  %s10217_s16 = smov 110   ;;  %s7350_s17 = smov 109  }
 0x62b   : > { %5387 = vrot.lane.b32.xlu0 %v5328_v8, %s7342_s19  ;;  %5333 = vrot.lane.b32.xlu1 %v5328_v8, %s7310_s24  ;;  %s7352_s19 = smov 107  }
 0x62e   : > { %v5505_v30 = vld [vmem:[#allocation7] sm:$0xff] }
 0x62f   : > { %5393 = vrot.lane.b32.xlu0 %v5328_v8, %s7343_s29  ;;  %5339 = vrot.lane.b32.xlu1 %v5328_v8, %s7301_s15  ;;  %s10216_s15 = smov 112   ;;  %s7353_s29 = smov 104  }
 0x633   : > { %5399 = vrot.lane.b32.xlu0 %v5328_v8, %s7344_s20  ;;  %5345 = vrot.lane.b32.xlu1 %v5328_v8, %s7309_s23  ;;  %s7348_s23 = smov 121   ;;  %s7354_s20 = smov 105  }
 0x637   : > { %5405 = vrot.lane.b32.xlu0 %v5328_v8, %s7345_s18  ;;  %5351 = vrot.lane.b32.xlu1 %v5328_v8, %s10047_s28  ;;  %s10218_s28 = smov 111  }
 0x63b   : > { %5411 = vrot.lane.b32.xlu0 %v5328_v8, %s7324_s30  ;;  %5357 = vrot.lane.b32.xlu1 %v5328_v8, %s7346_s21  ;;  %s7349_s30 = smov 108  }
 0x63f   : > { %5417 = vrot.lane.b32.xlu0 %v5328_v8, %s7326_s14  ;;  %5363 = vrot.lane.b32.xlu1 %v5328_v8, %s7347_s27  ;;  %s7351_s14 = smov 106  }
 0x643   : > { %5423 = vrot.lane.b32.xlu0 %v5328_v8, %s10216_s15  ;;  %5369 = vrot.lane.b32.xlu1 %v5328_v8, %s7348_s23 }
 0x647   : > { %5435 = vrot.lane.b32.xlu0 %v5328_v8, %s10217_s16  ;;  %5429 = vrot.lane.b32.xlu1 %v5328_v8, %s10218_s28 }
 0x64b   : > { %5447 = vrot.lane.b32.xlu0 %v5328_v8, %s7349_s30  ;;  %5441 = vrot.lane.b32.xlu1 %v5328_v8, %s7350_s17  ;;  %s437_s30 = scalar_lea.vmem %s9891_s13, %s6579_s22 }
 0x64f   : > { %5459 = vrot.lane.b32.xlu0 %v5328_v8, %s7351_s14  ;;  %5453 = vrot.lane.b32.xlu1 %v5328_v8, %s7352_s19 }
 0x653   : > { %5471 = vrot.lane.b32.xlu0 %v5328_v8, %s7353_s29  ;;  %5465 = vrot.lane.b32.xlu1 %v5328_v8, %s7354_s20  ;;  %v5503_v8 = vld [vmem:[%s9885_s7 + $0xe0] sm:$0xff] }
 0x654   : > { %v6537_v27 = vcombine.high %v5503_v8, %v5503_v8 }
 0x699   : > { %v5382_v4 = vpop.permute.xlu0 %5381  ;;  %v5376_v11 = vpop.permute.xlu1 %5375 }
 0x69a   : > { %5384 = vst.msk [vmem:[#allocation7 + $0x48] sm:$0xff] %vm5329_vm1, %v5382_v4  ;;  %5378 = vst.msk [vmem:[#allocation7 + $0x40] sm:$0xff] %vm5329_vm1, %v5376_v11  ;;  %v6536_v4 = vcombine.low %v5503_v8, %v5503_v8  ;;  %v7153_v11 = vld [vmem:[%s9885_s7 + $0xc] ss:$16 sps:$4 sm:$0xff]  }
 0x69d   : > { %v5388_v39 = vpop.permute.xlu0 %5387  ;;  %v5334_v50 = vpop.permute.xlu1 %5333 }
 0x69e   : > { %5390 = vst.msk [vmem:[#allocation7 + $0x50] sm:$0xff] %vm5329_vm1, %v5388_v39  ;;  %5336 = vst.msk [vmem:[#allocation7 + $0x8] sm:$0xff] %vm5329_vm1, %v5334_v50  ;;  %v7151_v39 = vld [vmem:[%s9885_s7 + $0x8] ss:$16 sps:$4 sm:$0xff]   ;;  %v7154_v50 = vld [vmem:[%s9885_s7 + $0x2c] ss:$16 sps:$4 sm:$0xff]  }
 0x6a1   : > { %v5394_v47 = vpop.permute.xlu0 %5393  ;;  %v5340_v61 = vpop.permute.xlu1 %5339  ;;  %v5513_v10 = vld [vmem:[#allocation7 + $0x40] sm:$0xff]  ;;  %v5514_v38 = vld [vmem:[#allocation7 + $0x48] sm:$0xff] }
 0x6a2   : > { %5396 = vst.msk [vmem:[#allocation7 + $0x58] sm:$0xff] %vm5329_vm1, %v5394_v47  ;;  %5342 = vst.msk [vmem:[#allocation7 + $0x10] sm:$0xff] %vm5329_vm1, %v5340_v61  ;;  %6581 = vmatprep.subr.bf16.mxu1 %v5513_v10  ;;  %v7156_v47 = vld [vmem:[%s9885_s7 + $0x28] ss:$16 sps:$4 sm:$0xff]   ;;  %v7157_v61 = vld [vmem:[%s9885_s7 + $0x4c] ss:$16 sps:$4 sm:$0xff]  }
 0x6a3   : > { %6582 = vmatpush3.bf16.msra.mxu1 %v5505_v30  ;;  %v7159_v10 = vld [vmem:[%s9885_s7 + $0x48] ss:$16 sps:$4 sm:$0xff]   ;;  %v7160_v30 = vld [vmem:[%s9885_s7 + $0x6c] ss:$16 sps:$4 sm:$0xff]  }
 0x6a4   : > { %6583 = vmatprep.subr.bf16.mxu1 %v5514_v38  ;;  %v7162_v38 = vld [vmem:[%s9885_s7 + $0x68] ss:$16 sps:$4 sm:$0xff]  }
 0x6a5   : > { %v5400_v45 = vpop.permute.xlu0 %5399  ;;  %v5346_v34 = vpop.permute.xlu1 %5345  ;;  %v5506_v24 = vld [vmem:[#allocation7 + $0x8] sm:$0xff]  ;;  %v5515_v26 = vld [vmem:[#allocation7 + $0x50] sm:$0xff] }
 0x6a6   : > { %5402 = vst.msk [vmem:[#allocation7 + $0x60] sm:$0xff] %vm5329_vm1, %v5400_v45  ;;  %5348 = vst.msk [vmem:[#allocation7 + $0x18] sm:$0xff] %vm5329_vm1, %v5346_v34  ;;  %v7163_v45 = vld [vmem:[%s9885_s7 + $0x8c] ss:$16 sps:$4 sm:$0xff]   ;;  %v7165_v34 = vld [vmem:[%s9885_s7 + $0x88] ss:$16 sps:$4 sm:$0xff]  }
 0x6a7   : > { %6584 = vmatpush3.bf16.msra.mxu1 %v5506_v24  ;;  %v7166_v24 = vld [vmem:[%s9885_s7 + $0xac] ss:$16 sps:$4 sm:$0xff]  }
 0x6a8   : > { %6585 = vmatprep.subr.bf16.mxu1 %v5515_v26  ;;  %v7168_v26 = vld [vmem:[%s9885_s7 + $0xa8] ss:$16 sps:$4 sm:$0xff]  }
 0x6a9   : > { %v5406_v6 = vpop.permute.xlu0 %5405  ;;  %v5352_v55 = vpop.permute.xlu1 %5351  ;;  %v5507_v23 = vld [vmem:[#allocation7 + $0x10] sm:$0xff]  ;;  %v5516_v25 = vld [vmem:[#allocation7 + $0x58] sm:$0xff] }
 0x6aa   : > { %5408 = vst.msk [vmem:[#allocation7 + $0x68] sm:$0xff] %vm5329_vm1, %v5406_v6  ;;  %5354 = vst.msk [vmem:[#allocation7 + $0x20] sm:$0xff] %vm5329_vm1, %v5352_v55  ;;  %v7169_v6 = vld [vmem:[%s9885_s7 + $0xcc] ss:$16 sps:$4 sm:$0xff]  }
 0x6ab   : > { %6586 = vmatpush3.bf16.msra.mxu1 %v5507_v23  ;;  %v5504_v55 = vld [vmem:[%s9885_s7 + $0xe8] sm:$0xff] }
 0x6ac   : > { %6587 = vmatprep.subr.bf16.mxu1 %v5516_v25  ;;  %v7171_v23 = vld [vmem:[%s9885_s7 + $0xc8] ss:$16 sps:$4 sm:$0xff]   ;;  %v6539_v25 = vcombine.high %v5504_v55, %v5504_v55 }
 0x6ad   : > { %v5412_v53 = vpop.permute.xlu0 %5411  ;;  %v5358_v62 = vpop.permute.xlu1 %5357  ;;  %v5508_v1 = vld [vmem:[#allocation7 + $0x18] sm:$0xff]  ;;  %v5517_v18 = vld [vmem:[#allocation7 + $0x60] sm:$0xff] }
 0x6ae   : > { %5414 = vst.msk [vmem:[#allocation7 + $0x70] sm:$0xff] %vm5329_vm1, %v5412_v53  ;;  %5360 = vst.msk [vmem:[#allocation7 + $0x28] sm:$0xff] %vm5329_vm1, %v5358_v62  ;;  %v6538_v53 = vcombine.low %v5504_v55, %v5504_v55 }
 0x6af   : > { %6588 = vmatpush3.bf16.msra.mxu1 %v5508_v1 }
 0x6b0   : > { %6589 = vmatprep.subr.bf16.mxu1 %v5517_v18 }
 0x6b1   : > { %v5418_v13 = vpop.permute.xlu0 %5417  ;;  %v5364_v7 = vpop.permute.xlu1 %5363  ;;  %v5509_v37 = vld [vmem:[#allocation7 + $0x20] sm:$0xff]  ;;  %v5518_v32 = vld [vmem:[#allocation7 + $0x68] sm:$0xff] }
 0x6b2   : > { %5420 = vst.msk [vmem:[#allocation7 + $0x78] sm:$0xff] %vm5329_vm1, %v5418_v13  ;;  %5366 = vst.msk [vmem:[#allocation7 + $0x30] sm:$0xff] %vm5329_vm1, %v5364_v7 }
 0x6b3   : > { %6590 = vmatpush3.bf16.msra.mxu1 %v5509_v37 }
 0x6b4   : > { %6591 = vmatprep.subr.bf16.mxu1 %v5518_v32 }
 0x6b5   : > { %v5424_v36 = vpop.permute.xlu0 %5423  ;;  %v5370_v14 = vpop.permute.xlu1 %5369  ;;  %v5510_v44 = vld [vmem:[#allocation7 + $0x28] sm:$0xff]  ;;  %v5519_v48 = vld [vmem:[#allocation7 + $0x70] sm:$0xff] }
 0x6b6   : > { %5426 = vst.msk [vmem:[#allocation7 + $0x80] sm:$0xff] %vm5329_vm1, %v5424_v36  ;;  %5372 = vst.msk [vmem:[#allocation7 + $0x38] sm:$0xff] %vm5329_vm1, %v5370_v14 }
 0x6b7   : > { %6592 = vmatpush3.bf16.msra.mxu1 %v5510_v44 }
 0x6b8   : > { %6593 = vmatprep.subr.bf16.mxu1 %v5519_v48 }
 0x6b9   : > { %v5436_v35 = vpop.permute.xlu0 %5435  ;;  %v5430_v43 = vpop.permute.xlu1 %5429  ;;  %v5511_v20 = vld [vmem:[#allocation7 + $0x30] sm:$0xff]  ;;  %v5520_v12 = vld [vmem:[#allocation7 + $0x78] sm:$0xff] }
 0x6ba   : > { %5438 = vst.msk [vmem:[#allocation7 + $0x90] sm:$0xff] %vm5329_vm1, %v5436_v35  ;;  %5432 = vst.msk [vmem:[#allocation7 + $0x88] sm:$0xff] %vm5329_vm1, %v5430_v43 }
 0x6bb   : > { %6594 = vmatpush3.bf16.msra.mxu1 %v5511_v20 }
 0x6bc   : > { %6595 = vmatprep.subr.bf16.mxu1 %v5520_v12 }
 0x6bd   : > { %v5448_v58 = vpop.permute.xlu0 %5447  ;;  %v5442_v5 = vpop.permute.xlu1 %5441  ;;  %v5512_v57 = vld [vmem:[#allocation7 + $0x38] sm:$0xff]  ;;  %v5521_v51 = vld [vmem:[#allocation7 + $0x80] sm:$0xff] }
 0x6be   : > { %5450 = vst.msk [vmem:[#allocation7 + $0xa0] sm:$0xff] %vm5329_vm1, %v5448_v58  ;;  %5444 = vst.msk [vmem:[#allocation7 + $0x98] sm:$0xff] %vm5329_vm1, %v5442_v5 }
 0x6bf   : > { %6596 = vmatpush3.bf16.msra.mxu1 %v5512_v57 }
 0x6c0   : > { %5812 = vmatprep.subr.bf16.mxu1 %v10097_v63 }
 0x6c1   : > { %v5460_v17 = vpop.permute.xlu0 %5459  ;;  %v5454_v9 = vpop.permute.xlu1 %5453  ;;  %v5522_v0 = vld [vmem:[#allocation7 + $0x88] sm:$0xff]  ;;  %v5523_v41 = vld [vmem:[#allocation7 + $0x90] sm:$0xff] }
 0x6c2   : > { %5462 = vst.msk [vmem:[#allocation7 + $0xb0] sm:$0xff] %vm5329_vm1, %v5460_v17  ;;  %5456 = vst.msk [vmem:[#allocation7 + $0xa8] sm:$0xff] %vm5329_vm1, %v5454_v9  ;;  %5749 = vmatmul.mubr.bf16.vlgmr.msra.gmra.mrb[12].mxu1 %v7128_v60 }
 0x6c3   : > { %5813 = vmatpush1.bf16.msra.mxu1 %v5521_v51  ;;  %5756 = vmatprep.mubr.bf16.mxu1 %v7131_v28  ;;  %v7174_v28 = vld [vmem:[%s9887_s9] sm:$0xff]  }
 0x6c4   : > { %5814 = vmatprep.subr.bf16.mxu1 %v10097_v63 }
 0x6c5   : > { %v5472_v29 = vpop.permute.xlu0 %5471  ;;  %v5466_v31 = vpop.permute.xlu1 %5465  ;;  %v5524_v40 = vld [vmem:[#allocation7 + $0x98] sm:$0xff]  ;;  %v5525_v52 = vld [vmem:[#allocation7 + $0xa0] sm:$0xff] }
 0x6c6   : > { %5474 = vst.msk [vmem:[#allocation7 + $0xc0] sm:$0xff] %vm5329_vm1, %v5472_v29  ;;  %5468 = vst.msk [vmem:[#allocation7 + $0xb8] sm:$0xff] %vm5329_vm1, %v5466_v31 }
 0x6c7   : > { %5815 = vmatpush1.bf16.msra.mxu1 %v5522_v0 }
 0x6c8   : > { %5816 = vmatprep.subr.bf16.mxu1 %v10097_v63 }
 0x6c9   : > { %v5526_v3 = vld [vmem:[#allocation7 + $0xa8] sm:$0xff]  ;;  %v5527_v56 = vld [vmem:[#allocation7 + $0xb0] sm:$0xff] }
 0x6ca   : > { %5757 = vmatmul.mubr.bf16.gmra.mrb[16].mxu1 %v7133_v59 }
 0x6cb   : > { %5817 = vmatpush1.bf16.msra.mxu1 %v5523_v41  ;;  %5764 = vmatprep.mubr.bf16.mxu1 %v7134_v22 }
 0x6cc   : > { %5818 = vmatprep.subr.bf16.mxu1 %v10097_v63 }
 0x6cd   : > { %v5528_v15 = vld [vmem:[#allocation7 + $0xb8] sm:$0xff]  ;;  %v5529_v54 = vld [vmem:[#allocation7 + $0xc0] sm:$0xff] }
 0x6cf   : > { %5819 = vmatpush1.bf16.msra.mxu1 %v5524_v40 }
 0x6d0   : > { %5820 = vmatprep.subr.bf16.mxu1 %v10097_v63 }
 0x6d2   : > { %5765 = vmatmul.mubr.bf16.gmra.mrb[20].mxu1 %v7136_v33 }
 0x6d3   : > { %5821 = vmatpush1.bf16.msra.mxu1 %v5525_v52  ;;  %5772 = vmatprep.mubr.bf16.mxu1 %v7137_v16 }
 0x6d4   : > { %5822 = vmatprep.subr.bf16.mxu1 %v10097_v63 }
 0x6d7   : > { %5823 = vmatpush1.bf16.msra.mxu1 %v5526_v3 }
 0x6d8   : > { %5824 = vmatprep.subr.bf16.mxu1 %v10097_v63 }
 0x6da   : > { %5773 = vmatmul.mubr.bf16.gmra.mrb[24].mxu1 %v7139_v2 }
 0x6db   : > { %5825 = vmatpush1.bf16.msra.mxu1 %v5527_v56  ;;  %5780 = vmatprep.mubr.bf16.mxu1 %v7140_v49 }
 0x6dc   : > { %5826 = vmatprep.subr.bf16.mxu1 %v10097_v63 }
 0x6df   : > { %5827 = vmatpush1.bf16.msra.mxu1 %v5528_v15 }
 0x6e0   : > { %5828 = vmatprep.subr.bf16.mxu1 %v10097_v63  ;;  %v7148_v63 = vld [vmem:[%s9885_s7 + $0xc0] ss:$16 sps:$4 sm:$0xff]  }
 0x6e2   : > { %5781 = vmatmul.mubr.bf16.gmra.mrb[28].mxu1 %v7142_v21 }
 0x6e3   : > { %5829 = vmatpush1.bf16.msra.mxu1 %v5529_v54  ;;  %5788 = vmatprep.mubr.bf16.mxu1 %v7143_v19 }
 0x6ea   : > { %5789 = vmatmul.mubr.bf16.gmra.mrb[32].mxu1 %v7145_v42 }
 0x6eb   : > { %5796 = vmatprep.mubr.bf16.mxu1 %v7146_v46 }
 0x6f2   : > { %5797 = vmatmul.mubr.bf16.gmra.mrb[36].mxu1 %v7148_v63 }
 0x6f3   : > { %5804 = vmatprep.mubr.bf16.mxu1 %v6537_v27 }
 0x6fa   : > { %5805 = vmatmul.mubr.bf16.gmra.mrb[40].mxu1 %v6536_v4 }
 0x6fb   : > { %6540 = vmatprep.mubr.msk.bf16.mxu1 %vm5691_vm15, %v7153_v11 }
 0x702   : > { %5845 = vmatmul.mubr.bf16.vlgmr.msra.gmra.mrb[44].mxu1 %v7151_v39  ;;  %v5530_v39 = vld [vmem:[%s9886_s8] sm:$0xff] }
 0x703   : > { %6541 = vmatprep.mubr.msk.bf16.mxu1 %vm5691_vm15, %v7154_v50  ;;  %v5531_v50 = vld [vmem:[%s9886_s8 + $0x8] sm:$0xff] }
 0x70a   : > { %5853 = vmatmul.mubr.bf16.gmra.mrb[48].mxu1 %v7156_v47 }
 0x70b   : > { %6542 = vmatprep.mubr.msk.bf16.mxu1 %vm5691_vm15, %v7157_v61 }
 0x712   : > { %5861 = vmatmul.mubr.bf16.gmra.mrb[52].mxu1 %v7159_v10 }
 0x713   : > { %6543 = vmatprep.mubr.msk.bf16.mxu1 %vm5691_vm15, %v7160_v30 }
 0x71a   : > { %5869 = vmatmul.mubr.bf16.gmra.mrb[56].mxu1 %v7162_v38 }
 0x71b   : > { %6544 = vmatprep.mubr.msk.bf16.mxu1 %vm5691_vm15, %v7163_v45 }
 0x722   : > { %5877 = vmatmul.mubr.bf16.gmra.mrb[60].mxu1 %v7165_v34 }
 0x723   : > { %6545 = vmatprep.mubr.msk.bf16.mxu1 %vm5691_vm15, %v7166_v24 }
 0x72a   : > { %5885 = vmatmul.mubr.bf16.gmra.mrb[64].mxu1 %v7168_v26 }
 0x72b   : > { %6546 = vmatprep.mubr.msk.bf16.mxu1 %vm5691_vm15, %v7169_v6  ;;  %v5532_v6 = vld [vmem:[%s9886_s8 + $0x10] sm:$0xff] }
 0x732   : > { %5893 = vmatmul.mubr.bf16.gmra.mrb[68].mxu1 %v7171_v23  ;;  %v5533_v23 = vld [vmem:[%s9886_s8 + $0x18] sm:$0xff] }
 0x733   : > { %6547 = vmatprep.mubr.msk.bf16.mxu1 %vm5691_vm15, %v6539_v25 }
 0x73a   : > { %5901 = vmatmul.mubr.bf16.gmra.mrb[72].mxu1 %v6538_v53 }
 0x73b   : > { %6682 = vmatprep.mubr.msk.bf16.mxu1 %vm6056_vm4, %v7174_v28 }
 0x795   : > { %v6597_v62 = vpop.f32.mrb[12].mxu1 }
 0x796   : > { %v6598_v1 = vpop.f32.mrb[13].mxu1 }
 0x797   : > { %v6599_v18 = vadd.f32 %v6598_v1, %v6597_v62  ;;  %v6600_v13 = vpop.f32.mrb[14].mxu1 }
 0x798   : > { %v6601_v7 = vpop.f32.mrb[15].mxu1 }
 0x799   : > { %v6602_v37 = vadd.f32 %v6601_v7, %v6600_v13  ;;  %v5751_v47 = vadd.f32 %v6599_v18, %v5530_v39  ;;  %v5538_v39 = vld [vmem:[%s9886_s8 + $0x40] sm:$0xff] }
 0x79b   : > { %v5754_v38 = vadd.f32 %v6602_v37, %v5531_v50 }
 0x79d   : > { %v6603_v32 = vpop.f32.mrb[16].mxu1 }
 0x79e   : > { %v6604_v36 = vpop.f32.mrb[17].mxu1 }
 0x79f   : > { %v6605_v14 = vadd.f32 %v6604_v36, %v6603_v32  ;;  %v6606_v44 = vpop.f32.mrb[18].mxu1  ;;  %v5534_v36 = vld [vmem:[%s9886_s8 + $0x20] sm:$0xff] }
 0x7a0   : > { %v6607_v48 = vpop.f32.mrb[19].mxu1 }
 0x7a1   : > { %v6608_v35 = vadd.f32 %v6607_v48, %v6606_v44  ;;  %v5759_v25 = vadd.f32 %v6605_v14, %v5532_v6  ;;  %v5535_v48 = vld [vmem:[%s9886_s8 + $0x28] sm:$0xff] }
 0x7a3   : > { %v5762_v18 = vadd.f32 %v6608_v35, %v5533_v23 }
 0x7a5   : > { %v6609_v43 = vpop.f32.mrb[20].mxu1 }
 0x7a6   : > { %v6610_v20 = vpop.f32.mrb[21].mxu1 }
 0x7a7   : > { %v9722_v12 = vadd.f32 %v6610_v20, %v6609_v43  ;;  %v6612_v58 = vpop.f32.mrb[22].mxu1 }
 0x7a8   : > { %v6613_v5 = vpop.f32.mrb[23].mxu1 }
 0x7a9   : > { %v9724_v57 = vadd.f32 %v6613_v5, %v6612_v58  ;;  %v5767_v14 = vadd.f32 %v9722_v12, %v5534_v36 }
 0x7ab   : > { %v5770_v28 = vadd.f32 %v9724_v57, %v5535_v48 }
 0x7ad   : > { %v6615_v60 = vpop.f32.mrb[24].mxu1 }
 0x7ae   : > { %v6616_v17 = vpop.f32.mrb[25].mxu1 }
 0x7af   : > { %v9729_v9 = vadd.f32 %v6616_v17, %v6615_v60  ;;  %v6618_v51 = vpop.f32.mrb[26].mxu1 }
 0x7b0   : > { %v6619_v29 = vpop.f32.mrb[27].mxu1 }
 0x7b1   : > { %v9732_v31 = vadd.f32 %v6619_v29, %v6618_v51 }
 0x7b5   : > { %v6621_v0 = vpop.f32.mrb[28].mxu1 }
 0x7b6   : > { %v6622_v59 = vpop.f32.mrb[29].mxu1 }
 0x7b7   : > { %v9734_v22 = vadd.f32 %v6622_v59, %v6621_v0  ;;  %v6624_v41 = vpop.f32.mrb[30].mxu1 }
 0x7b8   : > { %v6625_v40 = vpop.f32.mrb[31].mxu1 }
 0x7b9   : > { %v9736_v33 = vadd.f32 %v6625_v40, %v6624_v41  ;;  %v5536_v41 = vld [vmem:[%s9886_s8 + $0x30] sm:$0xff]  ;;  %v5537_v40 = vld [vmem:[%s9886_s8 + $0x38] sm:$0xff] }
 0x7ba   : > { %v5775_v57 = vadd.f32 %v9729_v9, %v5536_v41 }
 0x7bd   : > { %v6627_v16 = vpop.f32.mrb[32].mxu1 }
 0x7be   : > { %v6628_v52 = vpop.f32.mrb[33].mxu1 }
 0x7bf   : > { %v9738_v3 = vadd.f32 %v6628_v52, %v6627_v16  ;;  %v6630_v2 = vpop.f32.mrb[34].mxu1 }
 0x7c0   : > { %v6631_v49 = vpop.f32.mrb[35].mxu1 }
 0x7c1   : > { %v9740_v56 = vadd.f32 %v6631_v49, %v6630_v2 }
 0x7c5   : > { %v6633_v15 = vpop.f32.mrb[36].mxu1 }
 0x7c6   : > { %v6634_v21 = vpop.f32.mrb[37].mxu1 }
 0x7c7   : > { %v9742_v19 = vadd.f32 %v6634_v21, %v6633_v15  ;;  %v6636_v54 = vpop.f32.mrb[38].mxu1 }
 0x7c8   : > { %v6637_v42 = vpop.f32.mrb[39].mxu1 }
 0x7c9   : > { %v9744_v46 = vadd.f32 %v6637_v42, %v6636_v54  ;;  %v5778_v54 = vadd.f32 %v9732_v31, %v5537_v40 }
 0x7cd   : > { %v6639_v8 = vpop.f32.mrb[40].mxu1 }
 0x7ce   : > { %v6640_v63 = vpop.f32.mrb[41].mxu1 }
 0x7cf   : > { %v9746_v27 = vadd.f32 %v6640_v63, %v6639_v8  ;;  %v6642_v4 = vpop.f32.mrb[42].mxu1 }
 0x7d0   : > { %v6643_v11 = vpop.f32.mrb[43].mxu1 }
 0x7d5   : > { %v5846_v61 = vpop.f32.mrb[44].mxu1 }
 0x7d6   : > { %v5847_v10 = vadd.f32 %v5846_v61, %v5751_v47  ;;  %v5848_v30 = vpop.f32.mrb[45].mxu1  ;;  %v5539_v61 = vld [vmem:[%s9886_s8 + $0x48] sm:$0xff] }
 0x7d7   : > { %v5849_v45 = vpop.f32.mrb[46].mxu1  ;;  %v5786_v6 = vadd.f32 %v9736_v33, %v5539_v61  ;;  %v5541_v33 = vld [vmem:[%s9886_s8 + $0x58] sm:$0xff] }
 0x7d8   : > { %v6548_v34 = vmul.f32 -1.442695, %v5847_v10  ;;  %v5850_v24 = vadd.f32 %v5849_v45, %v5754_v38  ;;  %v5851_v26 = vpop.f32.mrb[47].mxu1  ;;  %v5783_v10 = vadd.f32 %v9734_v22, %v5538_v39  ;;  %v5540_v22 = vld [vmem:[%s9886_s8 + $0x50] sm:$0xff] }
 0x7da   : > { %7229 = vpow2.f32 %v6548_v34  ;;  %v6549_v55 = vmul.f32 -1.442695, %v5850_v24 }
 0x7dc   : > { %7231 = vpow2.f32 %v6549_v55 }
 0x7dd   : > { %v5854_v53 = vpop.f32.mrb[48].mxu1 }
 0x7de   : > { %v5855_v62 = vadd.f32 %v5854_v53, %v5759_v25  ;;  %v5856_v1 = vpop.f32.mrb[49].mxu1 }
 0x7df   : > { %v5857_v13 = vpop.f32.mrb[50].mxu1 }
 0x7e0   : > { %v6550_v7 = vmul.f32 -1.442695, %v5855_v62  ;;  %v5858_v37 = vadd.f32 %v5857_v13, %v5762_v18  ;;  %v5859_v32 = vpop.f32.mrb[51].mxu1 }
 0x7e2   : > { %7233 = vpow2.f32 %v6550_v7  ;;  %v6551_v44 = vmul.f32 -1.442695, %v5858_v37  ;;  %v5791_v37 = vadd.f32 %v9738_v3, %v5540_v22  ;;  %v5542_v3 = vld [vmem:[%s9886_s8 + $0x60] sm:$0xff] }
 0x7e4   : > { %v7230_v43 = vpop.eup %7229  ;;  %7235 = vpow2.f32 %v6551_v44 }
 0x7e5   : > { %v5953_v20 = vadd.f32 1.0, %v7230_v43  ;;  %v5862_v35 = vpop.f32.mrb[52].mxu1 }
 0x7e6   : > { %v7232_v58 = vpop.eup %7231  ;;  %v5863_v5 = vadd.f32 %v5862_v35, %v5767_v14  ;;  %v5864_v60 = vpop.f32.mrb[53].mxu1 }
 0x7e7   : > { %v5954_v17 = vadd.f32 1.0, %v7232_v58  ;;  %v5865_v51 = vpop.f32.mrb[54].mxu1  ;;  %7237 = vrcp.f32 %v5953_v20  ;;  %v5794_v20 = vadd.f32 %v9740_v56, %v5541_v33  ;;  %v5543_v56 = vld [vmem:[%s9886_s8 + $0x68] sm:$0xff] }
 0x7e8   : > { %v6552_v29 = vmul.f32 -1.442695, %v5863_v5  ;;  %v5866_v0 = vadd.f32 %v5865_v51, %v5770_v28  ;;  %v5867_v59 = vpop.f32.mrb[55].mxu1 }
 0x7e9   : > { %7239 = vrcp.f32 %v5954_v17  ;;  %v5799_v59 = vadd.f32 %v9742_v19, %v5542_v3  ;;  %v5544_v19 = vld [vmem:[%s9886_s8 + $0x70] sm:$0xff]  ;;  %v6018_v3 = vld [vmem:[%s9888_s10 + $0x8] sm:$0xff] }
 0x7ea   : > { %7241 = vpow2.f32 %v6552_v29  ;;  %v6553_v12 = vmul.f32 -1.442695, %v5866_v0 }
 0x7ec   : > { %v7234_v16 = vpop.eup %7233  ;;  %7243 = vpow2.f32 %v6553_v12 }
 0x7ed   : > { %v5955_v52 = vadd.f32 1.0, %v7234_v16  ;;  %v5870_v2 = vpop.f32.mrb[56].mxu1 }
 0x7ee   : > { %v7236_v49 = vpop.eup %7235  ;;  %v5871_v15 = vadd.f32 %v5870_v2, %v5775_v57  ;;  %v5872_v21 = vpop.f32.mrb[57].mxu1  ;;  %v5802_v2 = vadd.f32 %v9744_v46, %v5543_v56  ;;  %v5807_v46 = vadd.f32 %v9746_v27, %v5544_v19 }
 0x7ef   : > { %v5956_v42 = vadd.f32 1.0, %v7236_v49  ;;  %v5873_v8 = vpop.f32.mrb[58].mxu1  ;;  %7245 = vrcp.f32 %v5955_v52 }
 0x7f0   : > { %v6554_v63 = vmul.f32 -1.442695, %v5871_v15  ;;  %v5874_v4 = vadd.f32 %v5873_v8, %v5778_v54  ;;  %v5875_v11 = vpop.f32.mrb[59].mxu1 }
 0x7f1   : > { %7247 = vrcp.f32 %v5956_v42  ;;  %v7238_v50 = vpop.eup %7237 }
 0x7f2   : > { %7249 = vpow2.f32 %v6554_v63  ;;  %v6555_v9 = vmul.f32 -1.442695, %v5874_v4 }
 0x7f3   : > { %v7240_v47 = vpop.eup %7239 }
 0x7f4   : > { %v7242_v31 = vpop.eup %7241  ;;  %7251 = vpow2.f32 %v6555_v9  ;;  %v6009_v30 = vpack.c.bf16 %v7240_v47, %v7238_v50 }
 0x7f5   : > { %v5957_v38 = vadd.f32 1.0, %v7242_v31  ;;  %v5878_v45 = vpop.f32.mrb[60].mxu1 }
 0x7f6   : > { %v7244_v34 = vpop.eup %7243  ;;  %v5879_v24 = vadd.f32 %v5878_v45, %v5783_v10  ;;  %v5880_v26 = vpop.f32.mrb[61].mxu1  ;;  %6666 = vmatprep.subr.bf16.mxu1 %v6009_v30 }
 0x7f7   : > { %v5958_v55 = vadd.f32 1.0, %v7244_v34  ;;  %v5881_v23 = vpop.f32.mrb[62].mxu1  ;;  %6667 = vmatpush3.bf16.msra.mxu1 %v6009_v30  ;;  %7253 = vrcp.f32 %v5957_v38 }
 0x7f8   : > { %v6556_v25 = vmul.f32 -1.442695, %v5879_v24  ;;  %v5882_v53 = vadd.f32 %v5881_v23, %v5786_v6  ;;  %v5883_v62 = vpop.f32.mrb[63].mxu1 }
 0x7f9   : > { %7255 = vrcp.f32 %v5958_v55  ;;  %v7246_v1 = vpop.eup %7245 }
 0x7fa   : > { %7257 = vpow2.f32 %v6556_v25  ;;  %v6557_v18 = vmul.f32 -1.442695, %v5882_v53 }
 0x7fb   : > { %v7248_v13 = vpop.eup %7247 }
 0x7fc   : > { %v7250_v7 = vpop.eup %7249  ;;  %7259 = vpow2.f32 %v6557_v18  ;;  %v6010_v32 = vpack.c.bf16 %v7248_v13, %v7246_v1 }
 0x7fd   : > { %v5959_v36 = vadd.f32 1.0, %v7250_v7  ;;  %v5886_v44 = vpop.f32.mrb[64].mxu1 }
 0x7fe   : > { %v7252_v48 = vpop.eup %7251  ;;  %v5887_v43 = vadd.f32 %v5886_v44, %v5791_v37  ;;  %v5888_v14 = vpop.f32.mrb[65].mxu1  ;;  %6668 = vmatprep.subr.bf16.mxu1 %v6010_v32  ;;  %v7176_v44 = vld [vmem:[%s9887_s9 + $0x10] sm:$0xff]  }
 0x7ff   : > { %v5960_v35 = vadd.f32 1.0, %v7252_v48  ;;  %v5889_v58 = vpop.f32.mrb[66].mxu1  ;;  %6669 = vmatpush3.bf16.msra.mxu1 %v6010_v32  ;;  %7261 = vrcp.f32 %v5959_v36  ;;  %v7175_v36 = vld [vmem:[%s9887_s9 + $0x8] sm:$0xff]   ;;  %v7177_v48 = vld [vmem:[%s9887_s9 + $0x18] sm:$0xff]  }
 0x800   : > { %v6558_v5 = vmul.f32 -1.442695, %v5887_v43  ;;  %v5890_v60 = vadd.f32 %v5889_v58, %v5794_v20  ;;  %v5891_v28 = vpop.f32.mrb[67].mxu1  ;;  %v7178_v43 = vld [vmem:[%s9887_s9 + $0x20] sm:$0xff]   ;;  %v7355_v20 = vmov 0.0  }
 0x801   : > { %7263 = vrcp.f32 %v5960_v35  ;;  %v7254_v17 = vpop.eup %7253  ;;  %v7179_v14 = vld [vmem:[%s9887_s9 + $0x28] ss:$0 sps:$4 sm:$0x33]   ;;  %v6019_v35 = vld [vmem:[%s9888_s10 + $0x10] sm:$0xff]  ;;  %v6017_v28 = vld [vmem:[%s9888_s10] sm:$0xff] }
 0x802   : > { %7265 = vpow2.f32 %v6558_v5  ;;  %v6559_v51 = vmul.f32 -1.442695, %v5890_v60  ;;  %v6020_v5 = vld [vmem:[%s9888_s10 + $0x18] sm:$0xff] }
 0x803   : > { %v7256_v29 = vpop.eup %7255 }
 0x804   : > { %v7258_v0 = vpop.eup %7257  ;;  %7267 = vpow2.f32 %v6559_v51  ;;  %v6011_v41 = vpack.c.bf16 %v7256_v29, %v7254_v17 }
 0x805   : > { %v5961_v12 = vadd.f32 1.0, %v7258_v0  ;;  %v5894_v40 = vpop.f32.mrb[68].mxu1 }
 0x806   : > { %v7260_v16 = vpop.eup %7259  ;;  %v5895_v57 = vadd.f32 %v5894_v40, %v5799_v59  ;;  %v5896_v52 = vpop.f32.mrb[69].mxu1  ;;  %6670 = vmatprep.subr.bf16.mxu1 %v6011_v41  ;;  %v6023_v40 = vld [vmem:[%s9888_s10 + $0x30] sm:$0xff] }
 0x807   : > { %v5962_v49 = vadd.f32 1.0, %v7260_v16  ;;  %v5897_v15 = vpop.f32.mrb[70].mxu1  ;;  %6671 = vmatpush3.bf16.msra.mxu1 %v6011_v41  ;;  %7269 = vrcp.f32 %v5961_v12 }
 0x808   : > { %v6560_v21 = vmul.f32 -1.442695, %v5895_v57  ;;  %v5898_v54 = vadd.f32 %v5897_v15, %v5802_v2  ;;  %v5899_v42 = vpop.f32.mrb[71].mxu1  ;;  %v6024_v57 = vld [vmem:[%s9888_s10 + $0x38] sm:$0xff]  ;;  %v6021_v2 = vld [vmem:[%s9888_s10 + $0x20] sm:$0xff] }
 0x809   : > { %7271 = vrcp.f32 %v5962_v49  ;;  %v7262_v8 = vpop.eup %7261  ;;  %v6022_v49 = vld [vmem:[%s9888_s10 + $0x28] sm:$0xff] }
 0x80a   : > { %7273 = vpow2.f32 %v6560_v21  ;;  %v6561_v63 = vmul.f32 -1.442695, %v5898_v54 }
 0x80b   : > { %v7264_v4 = vpop.eup %7263 }
 0x80c   : > { %v7266_v11 = vpop.eup %7265  ;;  %7275 = vpow2.f32 %v6561_v63  ;;  %v6012_v39 = vpack.c.bf16 %v7264_v4, %v7262_v8 }
 0x80d   : > { %v5963_v50 = vadd.f32 1.0, %v7266_v11  ;;  %v5902_v9 = vpop.f32.mrb[72].mxu1  ;;  %v6027_v11 = vld [vmem:[%s9888_s10 + $0x50] sm:$0xf] }
 0x80e   : > { %v7268_v47 = vpop.eup %7267  ;;  %v5903_v61 = vadd.f32 %v5902_v9, %v5807_v46  ;;  %v5904_v31 = vpop.f32.mrb[73].mxu1  ;;  %6672 = vmatprep.subr.bf16.mxu1 %v6012_v39  ;;  %v6026_v9 = vld [vmem:[%s9888_s10 + $0x48] sm:$0xff] }
 0x80f   : > { %v5964_v10 = vadd.f32 1.0, %v7268_v47  ;;  %v5905_v30 = vpop.f32.mrb[74].mxu1  ;;  %6673 = vmatpush3.bf16.msra.mxu1 %v6012_v39  ;;  %7277 = vrcp.f32 %v5963_v50  ;;  %v6025_v50 = vld [vmem:[%s9888_s10 + $0x40] sm:$0xff] }
 0x810   : > { %v6562_v38 = vmul.f32 -1.442695, %v5903_v61  ;;  %v5906_v45 = vpop.f32.mrb[75].mxu1 }
 0x811   : > { %7279 = vrcp.f32 %v5964_v10  ;;  %v7270_v34 = vpop.eup %7269 }
 0x812   : > { %7281 = vpow2.f32 %v6562_v38 }
 0x813   : > { %v7272_v24 = vpop.eup %7271 }
 0x814   : > { %v7274_v26 = vpop.eup %7273  ;;  %v6013_v6 = vpack.c.bf16 %v7272_v24, %v7270_v34  ;;  %v7180_v24 = vld [vmem:[%s9889_s11] sm:$0x1f]  }
 0x815   : > { %v5965_v27 = vadd.f32 1.0, %v7274_v26  ;;  %v6166_v26 = vld [vmem:[%s9890_s12] sm:$0xff] }
 0x816   : > { %v7276_v55 = vpop.eup %7275  ;;  %6674 = vmatprep.subr.bf16.mxu1 %v6013_v6 }
 0x817   : > { %v5966_v23 = vadd.f32 1.0, %v7276_v55  ;;  %6675 = vmatpush3.bf16.msra.mxu1 %v6013_v6  ;;  %7283 = vrcp.f32 %v5965_v27  ;;  %v6167_v27 = vld [vmem:[%s9890_s12 + $0x8] sm:$0x3] }
 0x819   : > { %7285 = vrcp.f32 %v5966_v23  ;;  %v7278_v25 = vpop.eup %7277 }
 0x81b   : > { %v7280_v53 = vpop.eup %7279 }
 0x81c   : > { %v7282_v62 = vpop.eup %7281  ;;  %v6014_v22 = vpack.c.bf16 %v7280_v53, %v7278_v25 }
 0x81d   : > { %v5967_v1 = vadd.f32 1.0, %v7282_v62 }
 0x81e   : > { %6676 = vmatprep.subr.bf16.mxu1 %v6014_v22 }
 0x81f   : > { %7287 = vrcp.f32 %v5967_v1  ;;  %6677 = vmatpush3.bf16.msra.mxu1 %v6014_v22 }
 0x821   : > { %v7284_v18 = vpop.eup %7283 }
 0x823   : > { %v7286_v13 = vpop.eup %7285 }
 0x824   : > { %v6015_v33 = vpack.c.bf16 %v7286_v13, %v7284_v18 }
 0x826   : > { %6678 = vmatprep.subr.bf16.mxu1 %v6015_v33 }
 0x827   : > { %6679 = vmatpush3.bf16.msra.mxu1 %v6015_v33 }
 0x829   : > { %v7288_v7 = vpop.eup %7287 }
 0x82a   : > { %v6016_v37 = vpack.c.bf16 %v7288_v7, %v7288_v7 }
 0x82c   : > { %6722 = vmatprep.subr.msk.bf16.mxu1 %vm10219_vm11, %v6016_v37  ;;  %v6076_v32 = vsel %vm10220_vm7, %v6016_v37, 0 }
 0x82d   : > { %6681 = vmatpush3.bf16.msra.mxu1 %v6076_v32 }
 0x82e   : > { %6694 = vmatprep.subr.bf16.mxu1 %v7355_v20 }
 0x830   : > { %6683 = vmatmul.mubr.msk.bf16.vlgmr.msra.gmra.mrb[76].mxu1 %vm6056_vm4, %v7175_v36 }
 0x831   : > { %6686 = vmatprep.mubr.msk.bf16.mxu1 %vm6056_vm4, %v7176_v44 }
 0x838   : > { %6687 = vmatmul.mubr.msk.bf16.gmra.mrb[80].mxu1 %vm6056_vm4, %v7177_v48 }
 0x839   : > { %6690 = vmatprep.mubr.msk.bf16.mxu1 %vm6056_vm4, %v7178_v43 }
 0x840   : > { %6691 = vmatmul.mubr.msk.bf16.gmra.mrb[84].mxu1 %vm6056_vm4, %v7179_v14 }
 0x841   : > { %6706 = vmatprep.mubr.msk.bf16.mxu1 %vm7356_vm12, %v7355_v20 }
 0x903   : > { %v6684_v58 = vpop.f32.mrb[76].mxu1 }
 0x904   : > { %v6112_v60 = vpop.f32.mrb[77].mxu1  ;;  %v6121_v51 = vadd.f32 %v6684_v58, %v6019_v35 }
 0x905   : > { %v6685_v17 = vpop.f32.mrb[78].mxu1  ;;  %v6113_v0 = vadd.f32 %v6112_v60, %v6017_v28 }
 0x906   : > { %v6124_v29 = vadd.f32 %v6685_v17, %v6020_v5  ;;  %v6115_v56 = vpop.f32.mrb[79].mxu1 }
 0x907   : > { %v6116_v59 = vadd.f32 %v6115_v56, %v6018_v3 }
 0x908   : > { %v6161_v41 = vpack.c.bf16 %v6124_v29, %v6121_v51 }
 0x909   : > { %v6160_v12 = vpack.c.bf16 %v6116_v59, %v6113_v0 }
 0x90b   : > { %v6688_v16 = vpop.f32.mrb[80].mxu1  ;;  %6695 = vmatpush3.bf16.msra.mxu1 %v6160_v12 }
 0x90c   : > { %v6128_v52 = vpop.f32.mrb[81].mxu1  ;;  %6696 = vmatprep.subr.bf16.mxu1 %v7355_v20  ;;  %v6137_v21 = vadd.f32 %v6688_v16, %v6023_v40 }
 0x90d   : > { %v6689_v15 = vpop.f32.mrb[82].mxu1  ;;  %v6129_v19 = vadd.f32 %v6128_v52, %v6021_v2 }
 0x90e   : > { %v6140_v54 = vadd.f32 %v6689_v15, %v6024_v57  ;;  %v6131_v42 = vpop.f32.mrb[83].mxu1 }
 0x90f   : > { %v6132_v8 = vadd.f32 %v6131_v42, %v6022_v49  ;;  %6697 = vmatpush3.bf16.msra.mxu1 %v6161_v41 }
 0x910   : > { %v6163_v63 = vpack.c.bf16 %v6140_v54, %v6137_v21  ;;  %6698 = vmatprep.subr.bf16.mxu1 %v7355_v20 }
 0x911   : > { %v6162_v4 = vpack.c.bf16 %v6132_v8, %v6129_v19 }
 0x913   : > { %v6692_v46 = vpop.f32.mrb[84].mxu1  ;;  %6699 = vmatpush3.bf16.msra.mxu1 %v6162_v4 }
 0x914   : > { %v6144_v39 = vpop.f32.mrb[85].mxu1  ;;  %6700 = vmatprep.subr.bf16.mxu1 %v7355_v20  ;;  %v6153_v61 = vadd.f32 %v6692_v46, %v6027_v11 }
 0x915   : > { %v6693_v47 = vpop.f32.mrb[86].mxu1  ;;  %v6145_v10 = vadd.f32 %v6144_v39, %v6025_v50 }
 0x916   : > { %v6147_v31 = vpop.f32.mrb[87].mxu1  ;;  %v6165_v45 = vpack.c.bf16 %v6153_v61, %v6153_v61 }
 0x917   : > { %v6148_v30 = vadd.f32 %v6147_v31, %v6026_v9  ;;  %6701 = vmatpush3.bf16.msra.mxu1 %v6163_v63 }
 0x918   : > { %6702 = vmatprep.subr.bf16.mxu1 %v7355_v20  ;;  %v6178_v34 = vsel %vm4652_vm0, %v6165_v45, 0  ;;  %vm6222_vm0 = vcmask 1024  }
 0x919   : > { %v6164_v38 = vpack.c.bf16 %v6148_v30, %v6145_v10 }
 0x91b   : > { %6703 = vmatpush3.bf16.msra.mxu1 %v6164_v38 }
 0x91c   : > { %6704 = vmatprep.subr.bf16.mxu1 %v7355_v20 }
 0x91f   : > { %6705 = vmatpush3.bf16.msra.mxu1 %v6178_v34 }
 0x922   : > { %6707 = vmatmul.mubr.msk.bf16.vlgmr.msra.gmra.mrb[88].mxu1 %vm4866_vm6, %v7180_v24 }
 0x9f5   : > { %v6214_v6 = vpop.f32.mrb[88].mxu1 }
 0x9f6   : > { %v6215_v55 = vadd.f32 %v6214_v6, %v6166_v26  ;;  %v6708_v23 = vpop.f32.mrb[89].mxu1 }
 0x9f7   : > { %v6217_v25 = vpop.f32.mrb[90].mxu1 }
 0x9f8   : > { %6221 = vst.msk [vmem:[%s437_s30] sm:$0xff] %vm5329_vm1, %v6215_v55  ;;  %v6218_v53 = vadd.f32 %v6217_v25, %v6167_v27  ;;  %v6709_v62 = vpop.f32.mrb[91].mxu1 }
 0x9fa   : > { %6223 = vst.msk [vmem:[%s437_s30 + $0x8] sm:$0x3] %vm6222_vm0, %v6218_v53 }
 0x9fb PF: > { %s23_s25 = sadd.s32 1, %s7296_s25  }
 0x9fc   : > { %p20_p4 = scmp.ge.s32.totalorder %s23_s25, 4  }
 0x9fe   :  { %22 = sbr.rel (!%p20_p4) target bundleno = 1 (0x1), region = 102 }

</bundles_post_ra>
